<compile_context>
chip_gen: v7x
topology: tpu7x:2x2x1
jax: 0.10.0
libtpu: 0.0.40
codegen_flags: <defaults>
</compile_context>

<pallas_src>
import math

import jax
import jax.numpy as jnp
import numpy as np
from jax.experimental import pallas as pl
from jax.experimental.pallas import tpu as pltpu


# ----------------------------------------------------------------------------
# In-kernel helpers (bf16 matmuls with f32 accumulation + VPU/EUP elementwise)
# ----------------------------------------------------------------------------
def _dot(a, b):
    return jnp.dot(a, b, preferred_element_type=jnp.float32)


def _leaky_relu(v):
    return jnp.maximum(v, 0.2 * v)          # nn.LeakyReLU(0.2)


def _relu(v):
    return jnp.maximum(v, 0.0)


def _tap_lhs(x):
    """Build the tap-stacked LHS for a 3x3 conv.

    x : (R, Wp*C) bf16 activation (R = B_tile * Hp, zero padding rows/cols).
    Returns (R, 3*Wp*C): [x shifted down | x | x shifted up] along lanes, so a
    single matmul with the K-stacked banded weights performs the whole conv.
    """
    z = jnp.zeros((1, x.shape[1]), x.dtype)
    dn = jnp.concatenate([z, x[:-1, :]], axis=0)   # row r holds x[r-1]
    up = jnp.concatenate([x[1:, :], z], axis=0)    # row r holds x[r+1]
    return jnp.concatenate([dn, x, up], axis=1)


def _conv3x3(x, w_ref, b_ref, m_ref, act):
    """3x3 conv (stride 1, pad 1) + folded BN + activation: ONE matmul."""
    pre = _dot(_tap_lhs(x), w_ref[...]) + b_ref[...]
    return (act(pre) * m_ref[...]).astype(jnp.bfloat16)


def _conv3x3_cat(xu, y, w_ref, b_ref, m_ref, act):
    """conv3x3(concat([upsampled, skip], channels)): still ONE matmul."""
    lhs = jnp.concatenate([_tap_lhs(xu), _tap_lhs(y)], axis=1)
    pre = _dot(lhs, w_ref[...]) + b_ref[...]
    return (act(pre) * m_ref[...]).astype(jnp.bfloat16)


def _maxpool2x2(y, s_ref, t_ref):
    """nn.MaxPool2d(2): max commutes with the 0/1 selection matrices, so
    rowmax first (2 matmuls) then colmax (2 matmuls)."""
    rowmax = jnp.maximum(_dot(s_ref[0], y), _dot(s_ref[1], y))
    rowmax = rowmax.astype(jnp.bfloat16)     # exact (pure selection of bf16)
    pooled = jnp.maximum(_dot(rowmax, t_ref[0]), _dot(rowmax, t_ref[1]))
    return pooled.astype(jnp.bfloat16)


def _upsample2x(x, ur_ref, uc_ref):
    """Bilinear 2x upsample (align_corners=False) as two constant matmuls."""
    t = _dot(ur_ref[...], x).astype(jnp.bfloat16)
    return _dot(t, uc_ref[...]).astype(jnp.bfloat16)


def _unet_body(x_ref, p, o_ref):
    x = x_ref[0].astype(jnp.bfloat16)
    shortcuts = []
    for blk in p["down"]:
        t = _conv3x3(x, blk["w1"], blk["b1"], blk["mask"], _leaky_relu)
        res = _conv3x3(t, blk["w2"], blk["b2"], blk["mask"], _leaky_relu)
        shortcuts.append(res)
        x = _maxpool2x2(res, blk["ps"], blk["pt"])
        # TODO(synk): training-mode dropout (identity in inference mode).
    x = _conv3x3(x, p["mid"]["w1"], p["mid"]["b1"], p["mid"]["mask"], _relu)
    x = _conv3x3(x, p["mid"]["w2"], p["mid"]["b2"], p["mid"]["mask"], _relu)
    for i, blk in enumerate(p["up"]):
        y = shortcuts[-i - 1]
        xu = _upsample2x(x, blk["ur"], blk["uc"])
        t = _conv3x3_cat(xu, y, blk["w1"], blk["b1"], blk["mask"], _relu)
        x = _conv3x3(t, blk["w2"], blk["b2"], blk["mask"], _relu)
    pre = _dot(x, p["final"]["w"][...]) + p["final"]["b"][...]
    o_ref[0] = jnp.tanh(pre).astype(o_ref.dtype)   # lane-dense 128-wide store


# ----------------------------------------------------------------------------
# Single-pallas_call forward
# ----------------------------------------------------------------------------
_OUT_LANES = 128     # lane-padded output slab (wp*3 <= 128 for the toy size)


@jax.jit
def unet_forward(x_nchw, params):
    n, c_in, h, w = x_nchw.shape
    hp, wp = h + 2, w + 2
    b_tile = params["final"]["b"].shape[0] // hp     # images per grid step
    assert n % b_tile == 0, (n, b_tile)
    g = n // b_tile                                  # grid steps
    rows = b_tile * hp

    # NCHW -> padded, channel-interleaved, batch-stacked layout
    #   (g, B_tile*(H+2), (W+2)*C), activations in bf16.
    x = jnp.transpose(x_nchw, (0, 2, 3, 1))
    x = jnp.pad(x, ((0, 0), (1, 1), (1, 1), (0, 0)))
    x = x.reshape(g, rows, wp * c_in).astype(jnp.bfloat16)

    flat, treedef = jax.tree_util.tree_flatten(params)

    def kernel(*refs):
        x_ref, o_ref = refs[0], refs[-1]
        p = jax.tree_util.tree_unflatten(treedef, refs[1:-1])
        _unet_body(x_ref, p, o_ref)

    def _const_spec(shape):
        nd = len(shape)
        return pl.BlockSpec(shape, lambda i, _nd=nd: (0,) * _nd)

    in_specs = [pl.BlockSpec((1, rows, wp * c_in), lambda i: (i, 0, 0))]
    in_specs += [_const_spec(a.shape) for a in flat]
    out_specs = pl.BlockSpec((1, rows, _OUT_LANES), lambda i: (i, 0, 0))

    out = pl.pallas_call(
        kernel,
        out_shape=jax.ShapeDtypeStruct((g, rows, _OUT_LANES), jnp.float32),
        grid_spec=pltpu.PrefetchScalarGridSpec(
            num_scalar_prefetch=0,
            grid=(g,),                       # one batch-tile per grid step
            in_specs=in_specs,
            out_specs=out_specs,
        ),
        compiler_params=pltpu.CompilerParams(
            dimension_semantics=("parallel",),
            vmem_limit_bytes=32 * 1024 * 1024),
    )(x, *flat)

    out = out.reshape(n, hp, _OUT_LANES)[:, 1:h + 1, :wp * 3]
    out = out.reshape(n, h, wp, 3)[:, :, 1:w + 1, :]
    return jnp.transpose(out, (0, 3, 1, 2))


# ----------------------------------------------------------------------------
# Parameter / constant-matrix construction (deterministic, synthetic).
# BatchNorm (eval) folded into the conv weights; convs are laid out as
# K-stacked banded matrices; pool / upsample as 0/1 / interpolation matrices
# (batched block-diagonal along the stacked-image row axis).
# ----------------------------------------------------------------------------
def _rand_np(key, shape, scale=1.0):
    return scale * np.asarray(jax.random.normal(key, shape, jnp.float32))


def _fold_bn_conv(key, cin, cout, eps=1e-5):
    ks = jax.random.split(key, 6)
    w = _rand_np(ks[0], (cout, cin, 3, 3), 1.0 / math.sqrt(9 * cin))
    b = _rand_np(ks[1], (cout,), 0.05)
    gamma = 1.0 + _rand_np(ks[2], (cout,), 0.1)
    beta = _rand_np(ks[3], (cout,), 0.1)
    mean = _rand_np(ks[4], (cout,), 0.1)
    var = 1.0 + np.abs(_rand_np(ks[5], (cout,), 0.1))
    scale = gamma / np.sqrt(var + eps)
    return w * scale[:, None, None, None], (b - mean) * scale + beta


def _stacked_conv_weight(w_f, hs, ws):
    """(cout,cin,3,3) folded weights -> K-stacked banded (3*wp*cin, wp*cout)."""
    cout, cin = w_f.shape[:2]
    wp = ws + 2
    wk = np.zeros((3, wp * cin, wp * cout), np.float32)
    for dh in range(3):
        for dw in range(3):
            blk = w_f[:, :, dh, dw].T                       # (cin, cout)
            for wo in range(ws):
                pi, po = wo + dw, wo + 1                    # padded positions
                wk[dh, pi * cin:(pi + 1) * cin,
                   po * cout:(po + 1) * cout] = blk
    return jnp.asarray(wk.reshape(3 * wp * cin, wp * cout), jnp.bfloat16)


def _bias_map(b_f, hs, ws, b_tile):
    cout = b_f.shape[0]
    hp, wp = hs + 2, ws + 2
    bm = np.zeros((hp, wp * cout), np.float32)
    bm[1:hs + 1, cout:(ws + 1) * cout] = np.tile(b_f, (hs, ws))
    return jnp.asarray(np.tile(bm, (b_tile, 1)), jnp.float32)


def _row_mask(hs, b_tile):
    hp = hs + 2
    m = np.zeros((hp, 1), np.float32)
    m[1:hs + 1] = 1.0
    return jnp.asarray(np.tile(m, (b_tile, 1)), jnp.float32)


def _pool_mats(hs, ws, c, b_tile):
    ho, wo = hs // 2, ws // 2
    hp_in, hp_out = hs + 2, ho + 2
    s = np.zeros((2, b_tile * hp_out, b_tile * hp_in), np.float32)
    t = np.zeros((2, (ws + 2) * c, (wo + 2) * c), np.float32)
    for a in range(2):
        for b in range(b_tile):
            for i in range(ho):
                s[a, b * hp_out + i + 1, b * hp_in + 2 * i + a + 1] = 1.0
        for j in range(wo):
            for ch in range(c):
                t[a, (2 * j + a + 1) * c + ch, (j + 1) * c + ch] = 1.0
    return jnp.asarray(s, jnp.bfloat16), jnp.asarray(t, jnp.bfloat16)


def _upsample_mats(hs, ws, c, b_tile):
    """Bilinear x2, align_corners=False (PyTorch semantics), separable."""
    def src(out_size, in_size):
        sidx = (np.arange(out_size) + 0.5) / 2.0 - 0.5
        sidx = np.maximum(sidx, 0.0)
        i0 = np.floor(sidx).astype(np.int64)
        i1 = np.minimum(i0 + 1, in_size - 1)
        return i0, i1, sidx - i0

    ho, wo = 2 * hs, 2 * ws
    hp_in, hp_out = hs + 2, ho + 2
    ur = np.zeros((b_tile * hp_out, b_tile * hp_in), np.float32)
    i0, i1, f = src(ho, hs)
    for b in range(b_tile):
        for i in range(ho):
            ur[b * hp_out + i + 1, b * hp_in + i0[i] + 1] += 1.0 - f[i]
            ur[b * hp_out + i + 1, b * hp_in + i1[i] + 1] += f[i]
    uc = np.zeros(((ws + 2) * c, (wo + 2) * c), np.float32)
    j0, j1, gf = src(wo, ws)
    for j in range(wo):
        for ch in range(c):
            uc[(j0[j] + 1) * c + ch, (j + 1) * c + ch] += 1.0 - gf[j]
            uc[(j1[j] + 1) * c + ch, (j + 1) * c + ch] += gf[j]
    return jnp.asarray(ur, jnp.bfloat16), jnp.asarray(uc, jnp.bfloat16)


def _final_1x1(key, cin, hs, ws, b_tile, out_lanes=_OUT_LANES):
    cout = 3
    hp, wp = hs + 2, ws + 2
    assert wp * cout <= out_lanes
    k1, k2 = jax.random.split(key)
    w = _rand_np(k1, (cout, cin), 1.0 / math.sqrt(cin))
    b = _rand_np(k2, (cout,), 0.05)
    mat = np.zeros((wp * cin, out_lanes), np.float32)
    for j in range(ws):
        mat[(j + 1) * cin:(j + 2) * cin, (j + 1) * cout:(j + 2) * cout] = w.T
    bm = np.zeros((hp, out_lanes), np.float32)
    bm[1:hs + 1, cout:(ws + 1) * cout] = np.tile(b, (hs, ws))
    return (jnp.asarray(mat, jnp.bfloat16),
            jnp.asarray(np.tile(bm, (b_tile, 1)), jnp.float32))


def init_unet_params(key, depth=3, d=8, height=16, width=16, batch_tile=2):
    # NOTE(v7x): pick batch_tile so batch/batch_tile is even when possible to
    # keep both TensorCores busy; for the demo batch=2 we use one big step.
    down_channels = [3] + [d * 2 ** i for i in range(depth - 1)]
    up_channels = [d * 2 ** (i - 1) for i in range(depth, 0, -1)]
    up_channels.append(up_channels[-1])
    mid_channels = [down_channels[-1], down_channels[-1] // 2,
                    up_channels[0] // 2]

    keys = iter(jax.random.split(key, 64))
    params = {"down": [], "up": []}
    h, w = height, width

    for cin, cout in zip(down_channels[:-1], down_channels[1:]):
        w1, b1 = _fold_bn_conv(next(keys), cin, cout)
        w2, b2 = _fold_bn_conv(next(keys), cout, cout)
        ps, pt = _pool_mats(h, w, cout, batch_tile)
        params["down"].append({
            "w1": _stacked_conv_weight(w1, h, w),
            "b1": _bias_map(b1, h, w, batch_tile),
            "w2": _stacked_conv_weight(w2, h, w),
            "b2": _bias_map(b2, h, w, batch_tile),
            "ps": ps, "pt": pt,
            "mask": _row_mask(h, batch_tile)})
        h, w = h // 2, w // 2

    wm1, bm1 = _fold_bn_conv(next(keys), mid_channels[0], mid_channels[1])
    wm2, bm2 = _fold_bn_conv(next(keys), mid_channels[1], mid_channels[2])
    params["mid"] = {
        "w1": _stacked_conv_weight(wm1, h, w),
        "b1": _bias_map(bm1, h, w, batch_tile),
        "w2": _stacked_conv_weight(wm2, h, w),
        "b2": _bias_map(bm2, h, w, batch_tile),
        "mask": _row_mask(h, batch_tile)}

    for cin, cout in zip(up_channels[:-2], up_channels[2:]):
        c_up = cin // 2                          # channels arriving from below
        ur, uc = _upsample_mats(h, w, c_up, batch_tile)
        h, w = 2 * h, 2 * w
        wc1, bc1 = _fold_bn_conv(next(keys), cin, cin // 2)
        # torch.cat((upsampled, skip), dim=1): first c_up in-channels are the
        # upsampled tensor, the rest the skip connection.
        w1x = _stacked_conv_weight(wc1[:, :c_up], h, w)
        w1y = _stacked_conv_weight(wc1[:, c_up:], h, w)
        wc2, bc2 = _fold_bn_conv(next(keys), cin // 2, cout)
        params["up"].append({
            "ur": ur, "uc": uc,
            "w1": jnp.concatenate([w1x, w1y], axis=0),
            "b1": _bias_map(bc1, h, w, batch_tile),
            "w2": _stacked_conv_weight(wc2, h, w),
            "b2": _bias_map(bc2, h, w, batch_tile),
            "mask": _row_mask(h, batch_tile)})

    fw, fb = _final_1x1(next(keys), up_channels[-1], h, w, batch_tile)
    params["final"] = {"w": fw, "b": fb}
    return params


# ----------------------------------------------------------------------------
if __name__ == "__main__":
    key = jax.random.PRNGKey(0)
    k_x, k_p = jax.random.split(key)

    # batch=2, in-channels=3 (required by UNet), spatial=16x16,
    # UNet(depth=3, d=8), inference mode; both images in one grid step.
    x_nchw = jax.random.normal(k_x, (2, 3, 16, 16), jnp.float32)
    params = init_unet_params(k_p, depth=3, d=8, height=16, width=16,
                              batch_tile=2)

    out = unet_forward(x_nchw, params)
    jax.block_until_ready(out)

    assert out.shape == (2, 3, 16, 16), out.shape
    assert bool(jnp.all(jnp.isfinite(out)))
    assert bool(jnp.all(jnp.abs(out) <= 1.0))    # tanh output range
    print("KERNEL_OK")
</pallas_src>

<mosaic_0001>
module attributes {stable_mosaic.version = 11 : i64} {
  func.func @kernel(%arg0: i32, %arg1: memref<1x36x54xbf16, #tpu.memory_space<vmem>>, %arg2: memref<36x144xf32, #tpu.memory_space<vmem>>, %arg3: memref<36x144xf32, #tpu.memory_space<vmem>>, %arg4: memref<36x1xf32, #tpu.memory_space<vmem>>, %arg5: memref<2x20x36xbf16, #tpu.memory_space<vmem>>, %arg6: memref<2x144x80xbf16, #tpu.memory_space<vmem>>, %arg7: memref<162x144xbf16, #tpu.memory_space<vmem>>, %arg8: memref<432x144xbf16, #tpu.memory_space<vmem>>, %arg9: memref<20x160xf32, #tpu.memory_space<vmem>>, %arg10: memref<20x160xf32, #tpu.memory_space<vmem>>, %arg11: memref<20x1xf32, #tpu.memory_space<vmem>>, %arg12: memref<2x12x20xbf16, #tpu.memory_space<vmem>>, %arg13: memref<2x160x96xbf16, #tpu.memory_space<vmem>>, %arg14: memref<240x160xbf16, #tpu.memory_space<vmem>>, %arg15: memref<480x160xbf16, #tpu.memory_space<vmem>>, %arg16: memref<36x128xf32, #tpu.memory_space<vmem>>, %arg17: memref<144x128xbf16, #tpu.memory_space<vmem>>, %arg18: memref<12x48xf32, #tpu.memory_space<vmem>>, %arg19: memref<12x96xf32, #tpu.memory_space<vmem>>, %arg20: memref<12x1xf32, #tpu.memory_space<vmem>>, %arg21: memref<288x48xbf16, #tpu.memory_space<vmem>>, %arg22: memref<144x96xbf16, #tpu.memory_space<vmem>>, %arg23: memref<20x160xf32, #tpu.memory_space<vmem>>, %arg24: memref<20x80xf32, #tpu.memory_space<vmem>>, %arg25: memref<20x1xf32, #tpu.memory_space<vmem>>, %arg26: memref<96x160xbf16, #tpu.memory_space<vmem>>, %arg27: memref<20x12xbf16, #tpu.memory_space<vmem>>, %arg28: memref<960x160xbf16, #tpu.memory_space<vmem>>, %arg29: memref<480x80xbf16, #tpu.memory_space<vmem>>, %arg30: memref<36x144xf32, #tpu.memory_space<vmem>>, %arg31: memref<36x144xf32, #tpu.memory_space<vmem>>, %arg32: memref<36x1xf32, #tpu.memory_space<vmem>>, %arg33: memref<80x144xbf16, #tpu.memory_space<vmem>>, %arg34: memref<36x20xbf16, #tpu.memory_space<vmem>>, %arg35: memref<864x144xbf16, #tpu.memory_space<vmem>>, %arg36: memref<432x144xbf16, #tpu.memory_space<vmem>>, %arg37: memref<1x36x128xf32, #tpu.memory_space<vmem>>) attributes {dimension_semantics = [#tpu.dimension_semantics<parallel>], iteration_bounds = array<i64: 1>, scalar_prefetch = 0 : i64, scratch_operands = 0 : i64, tpu.core_type = #tpu.core_type<tc>, window_params = [{transform_indices = @transform_0, window_bounds = array<i64: 1, 36, 54>}, {pipeline_mode = #tpu.pipeline_mode<synchronous>, transform_indices = @transform_1, window_bounds = array<i64: 36, 144>}, {pipeline_mode = #tpu.pipeline_mode<synchronous>, transform_indices = @transform_2, window_bounds = array<i64: 36, 144>}, {pipeline_mode = #tpu.pipeline_mode<synchronous>, transform_indices = @transform_3, window_bounds = array<i64: 36, 1>}, {pipeline_mode = #tpu.pipeline_mode<synchronous>, transform_indices = @transform_4, window_bounds = array<i64: 2, 20, 36>}, {pipeline_mode = #tpu.pipeline_mode<synchronous>, transform_indices = @transform_5, window_bounds = array<i64: 2, 144, 80>}, {pipeline_mode = #tpu.pipeline_mode<synchronous>, transform_indices = @transform_6, window_bounds = array<i64: 162, 144>}, {pipeline_mode = #tpu.pipeline_mode<synchronous>, transform_indices = @transform_7, window_bounds = array<i64: 432, 144>}, {pipeline_mode = #tpu.pipeline_mode<synchronous>, transform_indices = @transform_8, window_bounds = array<i64: 20, 160>}, {pipeline_mode = #tpu.pipeline_mode<synchronous>, transform_indices = @transform_9, window_bounds = array<i64: 20, 160>}, {pipeline_mode = #tpu.pipeline_mode<synchronous>, transform_indices = @transform_10, window_bounds = array<i64: 20, 1>}, {pipeline_mode = #tpu.pipeline_mode<synchronous>, transform_indices = @transform_11, window_bounds = array<i64: 2, 12, 20>}, {pipeline_mode = #tpu.pipeline_mode<synchronous>, transform_indices = @transform_12, window_bounds = array<i64: 2, 160, 96>}, {pipeline_mode = #tpu.pipeline_mode<synchronous>, transform_indices = @transform_13, window_bounds = array<i64: 240, 160>}, {pipeline_mode = #tpu.pipeline_mode<synchronous>, transform_indices = @transform_14, window_bounds = array<i64: 480, 160>}, {pipeline_mode = #tpu.pipeline_mode<synchronous>, transform_indices = @transform_15, window_bounds = array<i64: 36, 128>}, {pipeline_mode = #tpu.pipeline_mode<synchronous>, transform_indices = @transform_16, window_bounds = array<i64: 144, 128>}, {pipeline_mode = #tpu.pipeline_mode<synchronous>, transform_indices = @transform_17, window_bounds = array<i64: 12, 48>}, {pipeline_mode = #tpu.pipeline_mode<synchronous>, transform_indices = @transform_18, window_bounds = array<i64: 12, 96>}, {pipeline_mode = #tpu.pipeline_mode<synchronous>, transform_indices = @transform_19, window_bounds = array<i64: 12, 1>}, {pipeline_mode = #tpu.pipeline_mode<synchronous>, transform_indices = @transform_20, window_bounds = array<i64: 288, 48>}, {pipeline_mode = #tpu.pipeline_mode<synchronous>, transform_indices = @transform_21, window_bounds = array<i64: 144, 96>}, {pipeline_mode = #tpu.pipeline_mode<synchronous>, transform_indices = @transform_22, window_bounds = array<i64: 20, 160>}, {pipeline_mode = #tpu.pipeline_mode<synchronous>, transform_indices = @transform_23, window_bounds = array<i64: 20, 80>}, {pipeline_mode = #tpu.pipeline_mode<synchronous>, transform_indices = @transform_24, window_bounds = array<i64: 20, 1>}, {pipeline_mode = #tpu.pipeline_mode<synchronous>, transform_indices = @transform_25, window_bounds = array<i64: 96, 160>}, {pipeline_mode = #tpu.pipeline_mode<synchronous>, transform_indices = @transform_26, window_bounds = array<i64: 20, 12>}, {pipeline_mode = #tpu.pipeline_mode<synchronous>, transform_indices = @transform_27, window_bounds = array<i64: 960, 160>}, {pipeline_mode = #tpu.pipeline_mode<synchronous>, transform_indices = @transform_28, window_bounds = array<i64: 480, 80>}, {pipeline_mode = #tpu.pipeline_mode<synchronous>, transform_indices = @transform_29, window_bounds = array<i64: 36, 144>}, {pipeline_mode = #tpu.pipeline_mode<synchronous>, transform_indices = @transform_30, window_bounds = array<i64: 36, 144>}, {pipeline_mode = #tpu.pipeline_mode<synchronous>, transform_indices = @transform_31, window_bounds = array<i64: 36, 1>}, {pipeline_mode = #tpu.pipeline_mode<synchronous>, transform_indices = @transform_32, window_bounds = array<i64: 80, 144>}, {pipeline_mode = #tpu.pipeline_mode<synchronous>, transform_indices = @transform_33, window_bounds = array<i64: 36, 20>}, {pipeline_mode = #tpu.pipeline_mode<synchronous>, transform_indices = @transform_34, window_bounds = array<i64: 864, 144>}, {pipeline_mode = #tpu.pipeline_mode<synchronous>, transform_indices = @transform_35, window_bounds = array<i64: 432, 144>}, {transform_indices = @transform_36, window_bounds = array<i64: 1, 36, 128>}]} {
    %c0 = arith.constant 0 : index
    %c0_0 = arith.constant 0 : index
    %c0_1 = arith.constant 0 : index
    %0 = vector.load %arg1[%c0, %c0_0, %c0_1] : memref<1x36x54xbf16, #tpu.memory_space<vmem>>, vector<1x36x54xbf16>
    %1 = vector.shape_cast %0 : vector<1x36x54xbf16> to vector<36x54xbf16>
    %cst = arith.constant 0.000000e+00 : bf16
    %2 = vector.broadcast %cst : bf16 to vector<1x54xbf16>
    %3 = vector.extract_strided_slice %1 {offsets = [0, 0], sizes = [35, 54], strides = [1, 1]} : vector<36x54xbf16> to vector<35x54xbf16>
    %4 = tpu.concatenate %2, %3 in 0 : vector<1x54xbf16>, vector<35x54xbf16> -> vector<36x54xbf16>
    %5 = vector.extract_strided_slice %1 {offsets = [1, 0], sizes = [35, 54], strides = [1, 1]} : vector<36x54xbf16> to vector<35x54xbf16>
    %6 = tpu.concatenate %5, %2 in 0 : vector<35x54xbf16>, vector<1x54xbf16> -> vector<36x54xbf16>
    %7 = tpu.concatenate %4, %1, %6 in 1 : vector<36x54xbf16>, vector<36x54xbf16>, vector<36x54xbf16> -> vector<36x162xbf16>
    %c0_2 = arith.constant 0 : index
    %c0_3 = arith.constant 0 : index
    %8 = vector.load %arg7[%c0_2, %c0_3] : memref<162x144xbf16, #tpu.memory_space<vmem>>, vector<162x144xbf16>
    %cst_4 = arith.constant dense<0.000000e+00> : vector<36x144xf32>
    %9 = tpu.matmul %7, %8, %cst_4 {dimension_numbers = #tpu.dot_dimension_numbers<[1], [0], [0], [1], [0, 0, 1, 1], [], []>} : vector<36x162xbf16>, vector<162x144xbf16>, vector<36x144xf32> -> vector<36x144xf32>
    %c0_5 = arith.constant 0 : index
    %c0_6 = arith.constant 0 : index
    %10 = vector.load %arg2[%c0_5, %c0_6] : memref<36x144xf32, #tpu.memory_space<vmem>>, vector<36x144xf32>
    %11 = arith.addf %9, %10 : vector<36x144xf32>
    %cst_7 = arith.constant 2.000000e-01 : f32
    %12 = vector.broadcast %cst_7 : f32 to vector<36x144xf32>
    %13 = arith.mulf %12, %11 : vector<36x144xf32>
    %14 = arith.maximumf %11, %13 : vector<36x144xf32>
    %c0_8 = arith.constant 0 : index
    %c0_9 = arith.constant 0 : index
    %15 = vector.load %arg4[%c0_8, %c0_9] : memref<36x1xf32, #tpu.memory_space<vmem>>, vector<36x1xf32>
    %16 = vector.broadcast %15 : vector<36x1xf32> to vector<36x144xf32>
    %17 = arith.mulf %14, %16 : vector<36x144xf32>
    %18 = arith.truncf %17 : vector<36x144xf32> to vector<36x144xbf16>
    %cst_10 = arith.constant 0.000000e+00 : bf16
    %19 = vector.broadcast %cst_10 : bf16 to vector<1x144xbf16>
    %20 = vector.extract_strided_slice %18 {offsets = [0, 0], sizes = [35, 144], strides = [1, 1]} : vector<36x144xbf16> to vector<35x144xbf16>
    %21 = tpu.concatenate %19, %20 in 0 : vector<1x144xbf16>, vector<35x144xbf16> -> vector<36x144xbf16>
    %22 = vector.extract_strided_slice %18 {offsets = [1, 0], sizes = [35, 144], strides = [1, 1]} : vector<36x144xbf16> to vector<35x144xbf16>
    %23 = tpu.concatenate %22, %19 in 0 : vector<35x144xbf16>, vector<1x144xbf16> -> vector<36x144xbf16>
    %24 = tpu.concatenate %21, %18, %23 in 1 : vector<36x144xbf16>, vector<36x144xbf16>, vector<36x144xbf16> -> vector<36x432xbf16>
    %c0_11 = arith.constant 0 : index
    %c0_12 = arith.constant 0 : index
    %25 = vector.load %arg8[%c0_11, %c0_12] : memref<432x144xbf16, #tpu.memory_space<vmem>>, vector<432x144xbf16>
    %cst_13 = arith.constant dense<0.000000e+00> : vector<36x144xf32>
    %26 = tpu.matmul %24, %25, %cst_13 {dimension_numbers = #tpu.dot_dimension_numbers<[1], [0], [0], [1], [0, 0, 1, 1], [], []>} : vector<36x432xbf16>, vector<432x144xbf16>, vector<36x144xf32> -> vector<36x144xf32>
    %c0_14 = arith.constant 0 : index
    %c0_15 = arith.constant 0 : index
    %27 = vector.load %arg3[%c0_14, %c0_15] : memref<36x144xf32, #tpu.memory_space<vmem>>, vector<36x144xf32>
    %28 = arith.addf %26, %27 : vector<36x144xf32>
    %cst_16 = arith.constant 2.000000e-01 : f32
    %29 = vector.broadcast %cst_16 : f32 to vector<36x144xf32>
    %30 = arith.mulf %29, %28 : vector<36x144xf32>
    %31 = arith.maximumf %28, %30 : vector<36x144xf32>
    %c0_17 = arith.constant 0 : index
    %c0_18 = arith.constant 0 : index
    %32 = vector.load %arg4[%c0_17, %c0_18] : memref<36x1xf32, #tpu.memory_space<vmem>>, vector<36x1xf32>
    %33 = vector.broadcast %32 : vector<36x1xf32> to vector<36x144xf32>
    %34 = arith.mulf %31, %33 : vector<36x144xf32>
    %35 = arith.truncf %34 : vector<36x144xf32> to vector<36x144xbf16>
    %c0_19 = arith.constant 0 : index
    %c0_20 = arith.constant 0 : index
    %c0_21 = arith.constant 0 : index
    %36 = vector.load %arg5[%c0_19, %c0_20, %c0_21] : memref<2x20x36xbf16, #tpu.memory_space<vmem>>, vector<1x20x36xbf16>
    %37 = vector.shape_cast %36 : vector<1x20x36xbf16> to vector<20x36xbf16>
    %cst_22 = arith.constant dense<0.000000e+00> : vector<20x144xf32>
    %38 = tpu.matmul %37, %35, %cst_22 {dimension_numbers = #tpu.dot_dimension_numbers<[1], [0], [0], [1], [0, 0, 1, 1], [], []>} : vector<20x36xbf16>, vector<36x144xbf16>, vector<20x144xf32> -> vector<20x144xf32>
    %c1 = arith.constant 1 : index
    %c0_23 = arith.constant 0 : index
    %c0_24 = arith.constant 0 : index
    %39 = vector.load %arg5[%c1, %c0_23, %c0_24] : memref<2x20x36xbf16, #tpu.memory_space<vmem>>, vector<1x20x36xbf16>
    %40 = vector.shape_cast %39 : vector<1x20x36xbf16> to vector<20x36xbf16>
    %cst_25 = arith.constant dense<0.000000e+00> : vector<20x144xf32>
    %41 = tpu.matmul %40, %35, %cst_25 {dimension_numbers = #tpu.dot_dimension_numbers<[1], [0], [0], [1], [0, 0, 1, 1], [], []>} : vector<20x36xbf16>, vector<36x144xbf16>, vector<20x144xf32> -> vector<20x144xf32>
    %42 = arith.maximumf %38, %41 : vector<20x144xf32>
    %43 = arith.truncf %42 : vector<20x144xf32> to vector<20x144xbf16>
    %c0_26 = arith.constant 0 : index
    %c0_27 = arith.constant 0 : index
    %c0_28 = arith.constant 0 : index
    %44 = vector.load %arg6[%c0_26, %c0_27, %c0_28] : memref<2x144x80xbf16, #tpu.memory_space<vmem>>, vector<1x144x80xbf16>
    %45 = vector.shape_cast %44 : vector<1x144x80xbf16> to vector<144x80xbf16>
    %cst_29 = arith.constant dense<0.000000e+00> : vector<20x80xf32>
    %46 = tpu.matmul %43, %45, %cst_29 {dimension_numbers = #tpu.dot_dimension_numbers<[1], [0], [0], [1], [0, 0, 1, 1], [], []>} : vector<20x144xbf16>, vector<144x80xbf16>, vector<20x80xf32> -> vector<20x80xf32>
    %c1_30 = arith.constant 1 : index
    %c0_31 = arith.constant 0 : index
    %c0_32 = arith.constant 0 : index
    %47 = vector.load %arg6[%c1_30, %c0_31, %c0_32] : memref<2x144x80xbf16, #tpu.memory_space<vmem>>, vector<1x144x80xbf16>
    %48 = vector.shape_cast %47 : vector<1x144x80xbf16> to vector<144x80xbf16>
    %cst_33 = arith.constant dense<0.000000e+00> : vector<20x80xf32>
    %49 = tpu.matmul %43, %48, %cst_33 {dimension_numbers = #tpu.dot_dimension_numbers<[1], [0], [0], [1], [0, 0, 1, 1], [], []>} : vector<20x144xbf16>, vector<144x80xbf16>, vector<20x80xf32> -> vector<20x80xf32>
    %50 = arith.maximumf %46, %49 : vector<20x80xf32>
    %51 = arith.truncf %50 : vector<20x80xf32> to vector<20x80xbf16>
    %cst_34 = arith.constant 0.000000e+00 : bf16
    %52 = vector.broadcast %cst_34 : bf16 to vector<1x80xbf16>
    %53 = vector.extract_strided_slice %51 {offsets = [0, 0], sizes = [19, 80], strides = [1, 1]} : vector<20x80xbf16> to vector<19x80xbf16>
    %54 = tpu.concatenate %52, %53 in 0 : vector<1x80xbf16>, vector<19x80xbf16> -> vector<20x80xbf16>
    %55 = vector.extract_strided_slice %51 {offsets = [1, 0], sizes = [19, 80], strides = [1, 1]} : vector<20x80xbf16> to vector<19x80xbf16>
    %56 = tpu.concatenate %55, %52 in 0 : vector<19x80xbf16>, vector<1x80xbf16> -> vector<20x80xbf16>
    %57 = tpu.concatenate %54, %51, %56 in 1 : vector<20x80xbf16>, vector<20x80xbf16>, vector<20x80xbf16> -> vector<20x240xbf16>
    %c0_35 = arith.constant 0 : index
    %c0_36 = arith.constant 0 : index
    %58 = vector.load %arg14[%c0_35, %c0_36] : memref<240x160xbf16, #tpu.memory_space<vmem>>, vector<240x160xbf16>
    %cst_37 = arith.constant dense<0.000000e+00> : vector<20x160xf32>
    %59 = tpu.matmul %57, %58, %cst_37 {dimension_numbers = #tpu.dot_dimension_numbers<[1], [0], [0], [1], [0, 0, 1, 1], [], []>} : vector<20x240xbf16>, vector<240x160xbf16>, vector<20x160xf32> -> vector<20x160xf32>
    %c0_38 = arith.constant 0 : index
    %c0_39 = arith.constant 0 : index
    %60 = vector.load %arg9[%c0_38, %c0_39] : memref<20x160xf32, #tpu.memory_space<vmem>>, vector<20x160xf32>
    %61 = arith.addf %59, %60 : vector<20x160xf32>
    %cst_40 = arith.constant 2.000000e-01 : f32
    %62 = vector.broadcast %cst_40 : f32 to vector<20x160xf32>
    %63 = arith.mulf %62, %61 : vector<20x160xf32>
    %64 = arith.maximumf %61, %63 : vector<20x160xf32>
    %c0_41 = arith.constant 0 : index
    %c0_42 = arith.constant 0 : index
    %65 = vector.load %arg11[%c0_41, %c0_42] : memref<20x1xf32, #tpu.memory_space<vmem>>, vector<20x1xf32>
    %66 = vector.broadcast %65 : vector<20x1xf32> to vector<20x160xf32>
    %67 = arith.mulf %64, %66 : vector<20x160xf32>
    %68 = arith.truncf %67 : vector<20x160xf32> to vector<20x160xbf16>
    %cst_43 = arith.constant 0.000000e+00 : bf16
    %69 = vector.broadcast %cst_43 : bf16 to vector<1x160xbf16>
    %70 = vector.extract_strided_slice %68 {offsets = [0, 0], sizes = [19, 160], strides = [1, 1]} : vector<20x160xbf16> to vector<19x160xbf16>
    %71 = tpu.concatenate %69, %70 in 0 : vector<1x160xbf16>, vector<19x160xbf16> -> vector<20x160xbf16>
    %72 = vector.extract_strided_slice %68 {offsets = [1, 0], sizes = [19, 160], strides = [1, 1]} : vector<20x160xbf16> to vector<19x160xbf16>
    %73 = tpu.concatenate %72, %69 in 0 : vector<19x160xbf16>, vector<1x160xbf16> -> vector<20x160xbf16>
    %74 = tpu.concatenate %71, %68, %73 in 1 : vector<20x160xbf16>, vector<20x160xbf16>, vector<20x160xbf16> -> vector<20x480xbf16>
    %c0_44 = arith.constant 0 : index
    %c0_45 = arith.constant 0 : index
    %75 = vector.load %arg15[%c0_44, %c0_45] : memref<480x160xbf16, #tpu.memory_space<vmem>>, vector<480x160xbf16>
    %cst_46 = arith.constant dense<0.000000e+00> : vector<20x160xf32>
    %76 = tpu.matmul %74, %75, %cst_46 {dimension_numbers = #tpu.dot_dimension_numbers<[1], [0], [0], [1], [0, 0, 1, 1], [], []>} : vector<20x480xbf16>, vector<480x160xbf16>, vector<20x160xf32> -> vector<20x160xf32>
    %c0_47 = arith.constant 0 : index
    %c0_48 = arith.constant 0 : index
    %77 = vector.load %arg10[%c0_47, %c0_48] : memref<20x160xf32, #tpu.memory_space<vmem>>, vector<20x160xf32>
    %78 = arith.addf %76, %77 : vector<20x160xf32>
    %cst_49 = arith.constant 2.000000e-01 : f32
    %79 = vector.broadcast %cst_49 : f32 to vector<20x160xf32>
    %80 = arith.mulf %79, %78 : vector<20x160xf32>
    %81 = arith.maximumf %78, %80 : vector<20x160xf32>
    %c0_50 = arith.constant 0 : index
    %c0_51 = arith.constant 0 : index
    %82 = vector.load %arg11[%c0_50, %c0_51] : memref<20x1xf32, #tpu.memory_space<vmem>>, vector<20x1xf32>
    %83 = vector.broadcast %82 : vector<20x1xf32> to vector<20x160xf32>
    %84 = arith.mulf %81, %83 : vector<20x160xf32>
    %85 = arith.truncf %84 : vector<20x160xf32> to vector<20x160xbf16>
    %c0_52 = arith.constant 0 : index
    %c0_53 = arith.constant 0 : index
    %c0_54 = arith.constant 0 : index
    %86 = vector.load %arg12[%c0_52, %c0_53, %c0_54] : memref<2x12x20xbf16, #tpu.memory_space<vmem>>, vector<1x12x20xbf16>
    %87 = vector.shape_cast %86 : vector<1x12x20xbf16> to vector<12x20xbf16>
    %cst_55 = arith.constant dense<0.000000e+00> : vector<12x160xf32>
    %88 = tpu.matmul %87, %85, %cst_55 {dimension_numbers = #tpu.dot_dimension_numbers<[1], [0], [0], [1], [0, 0, 1, 1], [], []>} : vector<12x20xbf16>, vector<20x160xbf16>, vector<12x160xf32> -> vector<12x160xf32>
    %c1_56 = arith.constant 1 : index
    %c0_57 = arith.constant 0 : index
    %c0_58 = arith.constant 0 : index
    %89 = vector.load %arg12[%c1_56, %c0_57, %c0_58] : memref<2x12x20xbf16, #tpu.memory_space<vmem>>, vector<1x12x20xbf16>
    %90 = vector.shape_cast %89 : vector<1x12x20xbf16> to vector<12x20xbf16>
    %cst_59 = arith.constant dense<0.000000e+00> : vector<12x160xf32>
    %91 = tpu.matmul %90, %85, %cst_59 {dimension_numbers = #tpu.dot_dimension_numbers<[1], [0], [0], [1], [0, 0, 1, 1], [], []>} : vector<12x20xbf16>, vector<20x160xbf16>, vector<12x160xf32> -> vector<12x160xf32>
    %92 = arith.maximumf %88, %91 : vector<12x160xf32>
    %93 = arith.truncf %92 : vector<12x160xf32> to vector<12x160xbf16>
    %c0_60 = arith.constant 0 : index
    %c0_61 = arith.constant 0 : index
    %c0_62 = arith.constant 0 : index
    %94 = vector.load %arg13[%c0_60, %c0_61, %c0_62] : memref<2x160x96xbf16, #tpu.memory_space<vmem>>, vector<1x160x96xbf16>
    %95 = vector.shape_cast %94 : vector<1x160x96xbf16> to vector<160x96xbf16>
    %cst_63 = arith.constant dense<0.000000e+00> : vector<12x96xf32>
    %96 = tpu.matmul %93, %95, %cst_63 {dimension_numbers = #tpu.dot_dimension_numbers<[1], [0], [0], [1], [0, 0, 1, 1], [], []>} : vector<12x160xbf16>, vector<160x96xbf16>, vector<12x96xf32> -> vector<12x96xf32>
    %c1_64 = arith.constant 1 : index
    %c0_65 = arith.constant 0 : index
    %c0_66 = arith.constant 0 : index
    %97 = vector.load %arg13[%c1_64, %c0_65, %c0_66] : memref<2x160x96xbf16, #tpu.memory_space<vmem>>, vector<1x160x96xbf16>
    %98 = vector.shape_cast %97 : vector<1x160x96xbf16> to vector<160x96xbf16>
    %cst_67 = arith.constant dense<0.000000e+00> : vector<12x96xf32>
    %99 = tpu.matmul %93, %98, %cst_67 {dimension_numbers = #tpu.dot_dimension_numbers<[1], [0], [0], [1], [0, 0, 1, 1], [], []>} : vector<12x160xbf16>, vector<160x96xbf16>, vector<12x96xf32> -> vector<12x96xf32>
    %100 = arith.maximumf %96, %99 : vector<12x96xf32>
    %101 = arith.truncf %100 : vector<12x96xf32> to vector<12x96xbf16>
    %cst_68 = arith.constant 0.000000e+00 : bf16
    %102 = vector.broadcast %cst_68 : bf16 to vector<1x96xbf16>
    %103 = vector.extract_strided_slice %101 {offsets = [0, 0], sizes = [11, 96], strides = [1, 1]} : vector<12x96xbf16> to vector<11x96xbf16>
    %104 = tpu.concatenate %102, %103 in 0 : vector<1x96xbf16>, vector<11x96xbf16> -> vector<12x96xbf16>
    %105 = vector.extract_strided_slice %101 {offsets = [1, 0], sizes = [11, 96], strides = [1, 1]} : vector<12x96xbf16> to vector<11x96xbf16>
    %106 = tpu.concatenate %105, %102 in 0 : vector<11x96xbf16>, vector<1x96xbf16> -> vector<12x96xbf16>
    %107 = tpu.concatenate %104, %101, %106 in 1 : vector<12x96xbf16>, vector<12x96xbf16>, vector<12x96xbf16> -> vector<12x288xbf16>
    %c0_69 = arith.constant 0 : index
    %c0_70 = arith.constant 0 : index
    %108 = vector.load %arg21[%c0_69, %c0_70] : memref<288x48xbf16, #tpu.memory_space<vmem>>, vector<288x48xbf16>
    %cst_71 = arith.constant dense<0.000000e+00> : vector<12x48xf32>
    %109 = tpu.matmul %107, %108, %cst_71 {dimension_numbers = #tpu.dot_dimension_numbers<[1], [0], [0], [1], [0, 0, 1, 1], [], []>} : vector<12x288xbf16>, vector<288x48xbf16>, vector<12x48xf32> -> vector<12x48xf32>
    %c0_72 = arith.constant 0 : index
    %c0_73 = arith.constant 0 : index
    %110 = vector.load %arg18[%c0_72, %c0_73] : memref<12x48xf32, #tpu.memory_space<vmem>>, vector<12x48xf32>
    %111 = arith.addf %109, %110 : vector<12x48xf32>
    %cst_74 = arith.constant 0.000000e+00 : f32
    %112 = vector.broadcast %cst_74 : f32 to vector<12x48xf32>
    %113 = arith.maximumf %111, %112 : vector<12x48xf32>
    %c0_75 = arith.constant 0 : index
    %c0_76 = arith.constant 0 : index
    %114 = vector.load %arg20[%c0_75, %c0_76] : memref<12x1xf32, #tpu.memory_space<vmem>>, vector<12x1xf32>
    %115 = vector.broadcast %114 : vector<12x1xf32> to vector<12x48xf32>
    %116 = arith.mulf %113, %115 : vector<12x48xf32>
    %117 = arith.truncf %116 : vector<12x48xf32> to vector<12x48xbf16>
    %cst_77 = arith.constant 0.000000e+00 : bf16
    %118 = vector.broadcast %cst_77 : bf16 to vector<1x48xbf16>
    %119 = vector.extract_strided_slice %117 {offsets = [0, 0], sizes = [11, 48], strides = [1, 1]} : vector<12x48xbf16> to vector<11x48xbf16>
    %120 = tpu.concatenate %118, %119 in 0 : vector<1x48xbf16>, vector<11x48xbf16> -> vector<12x48xbf16>
    %121 = vector.extract_strided_slice %117 {offsets = [1, 0], sizes = [11, 48], strides = [1, 1]} : vector<12x48xbf16> to vector<11x48xbf16>
    %122 = tpu.concatenate %121, %118 in 0 : vector<11x48xbf16>, vector<1x48xbf16> -> vector<12x48xbf16>
    %123 = tpu.concatenate %120, %117, %122 in 1 : vector<12x48xbf16>, vector<12x48xbf16>, vector<12x48xbf16> -> vector<12x144xbf16>
    %c0_78 = arith.constant 0 : index
    %c0_79 = arith.constant 0 : index
    %124 = vector.load %arg22[%c0_78, %c0_79] : memref<144x96xbf16, #tpu.memory_space<vmem>>, vector<144x96xbf16>
    %cst_80 = arith.constant dense<0.000000e+00> : vector<12x96xf32>
    %125 = tpu.matmul %123, %124, %cst_80 {dimension_numbers = #tpu.dot_dimension_numbers<[1], [0], [0], [1], [0, 0, 1, 1], [], []>} : vector<12x144xbf16>, vector<144x96xbf16>, vector<12x96xf32> -> vector<12x96xf32>
    %c0_81 = arith.constant 0 : index
    %c0_82 = arith.constant 0 : index
    %126 = vector.load %arg19[%c0_81, %c0_82] : memref<12x96xf32, #tpu.memory_space<vmem>>, vector<12x96xf32>
    %127 = arith.addf %125, %126 : vector<12x96xf32>
    %cst_83 = arith.constant 0.000000e+00 : f32
    %128 = vector.broadcast %cst_83 : f32 to vector<12x96xf32>
    %129 = arith.maximumf %127, %128 : vector<12x96xf32>
    %c0_84 = arith.constant 0 : index
    %c0_85 = arith.constant 0 : index
    %130 = vector.load %arg20[%c0_84, %c0_85] : memref<12x1xf32, #tpu.memory_space<vmem>>, vector<12x1xf32>
    %131 = vector.broadcast %130 : vector<12x1xf32> to vector<12x96xf32>
    %132 = arith.mulf %129, %131 : vector<12x96xf32>
    %133 = arith.truncf %132 : vector<12x96xf32> to vector<12x96xbf16>
    %c0_86 = arith.constant 0 : index
    %c0_87 = arith.constant 0 : index
    %134 = vector.load %arg27[%c0_86, %c0_87] : memref<20x12xbf16, #tpu.memory_space<vmem>>, vector<20x12xbf16>
    %cst_88 = arith.constant dense<0.000000e+00> : vector<20x96xf32>
    %135 = tpu.matmul %134, %133, %cst_88 {dimension_numbers = #tpu.dot_dimension_numbers<[1], [0], [0], [1], [0, 0, 1, 1], [], []>} : vector<20x12xbf16>, vector<12x96xbf16>, vector<20x96xf32> -> vector<20x96xf32>
    %136 = arith.truncf %135 : vector<20x96xf32> to vector<20x96xbf16>
    %c0_89 = arith.constant 0 : index
    %c0_90 = arith.constant 0 : index
    %137 = vector.load %arg26[%c0_89, %c0_90] : memref<96x160xbf16, #tpu.memory_space<vmem>>, vector<96x160xbf16>
    %cst_91 = arith.constant dense<0.000000e+00> : vector<20x160xf32>
    %138 = tpu.matmul %136, %137, %cst_91 {dimension_numbers = #tpu.dot_dimension_numbers<[1], [0], [0], [1], [0, 0, 1, 1], [], []>} : vector<20x96xbf16>, vector<96x160xbf16>, vector<20x160xf32> -> vector<20x160xf32>
    %139 = arith.truncf %138 : vector<20x160xf32> to vector<20x160xbf16>
    %cst_92 = arith.constant 0.000000e+00 : bf16
    %140 = vector.broadcast %cst_92 : bf16 to vector<1x160xbf16>
    %141 = vector.extract_strided_slice %139 {offsets = [0, 0], sizes = [19, 160], strides = [1, 1]} : vector<20x160xbf16> to vector<19x160xbf16>
    %142 = tpu.concatenate %140, %141 in 0 : vector<1x160xbf16>, vector<19x160xbf16> -> vector<20x160xbf16>
    %143 = vector.extract_strided_slice %139 {offsets = [1, 0], sizes = [19, 160], strides = [1, 1]} : vector<20x160xbf16> to vector<19x160xbf16>
    %144 = tpu.concatenate %143, %140 in 0 : vector<19x160xbf16>, vector<1x160xbf16> -> vector<20x160xbf16>
    %145 = tpu.concatenate %142, %139, %144 in 1 : vector<20x160xbf16>, vector<20x160xbf16>, vector<20x160xbf16> -> vector<20x480xbf16>
    %cst_93 = arith.constant 0.000000e+00 : bf16
    %146 = vector.broadcast %cst_93 : bf16 to vector<1x160xbf16>
    %147 = vector.extract_strided_slice %85 {offsets = [0, 0], sizes = [19, 160], strides = [1, 1]} : vector<20x160xbf16> to vector<19x160xbf16>
    %148 = tpu.concatenate %146, %147 in 0 : vector<1x160xbf16>, vector<19x160xbf16> -> vector<20x160xbf16>
    %149 = vector.extract_strided_slice %85 {offsets = [1, 0], sizes = [19, 160], strides = [1, 1]} : vector<20x160xbf16> to vector<19x160xbf16>
    %150 = tpu.concatenate %149, %146 in 0 : vector<19x160xbf16>, vector<1x160xbf16> -> vector<20x160xbf16>
    %151 = tpu.concatenate %148, %85, %150 in 1 : vector<20x160xbf16>, vector<20x160xbf16>, vector<20x160xbf16> -> vector<20x480xbf16>
    %152 = tpu.concatenate %145, %151 in 1 : vector<20x480xbf16>, vector<20x480xbf16> -> vector<20x960xbf16>
    %c0_94 = arith.constant 0 : index
    %c0_95 = arith.constant 0 : index
    %153 = vector.load %arg28[%c0_94, %c0_95] : memref<960x160xbf16, #tpu.memory_space<vmem>>, vector<960x160xbf16>
    %cst_96 = arith.constant dense<0.000000e+00> : vector<20x160xf32>
    %154 = tpu.matmul %152, %153, %cst_96 {dimension_numbers = #tpu.dot_dimension_numbers<[1], [0], [0], [1], [0, 0, 1, 1], [], []>} : vector<20x960xbf16>, vector<960x160xbf16>, vector<20x160xf32> -> vector<20x160xf32>
    %c0_97 = arith.constant 0 : index
    %c0_98 = arith.constant 0 : index
    %155 = vector.load %arg23[%c0_97, %c0_98] : memref<20x160xf32, #tpu.memory_space<vmem>>, vector<20x160xf32>
    %156 = arith.addf %154, %155 : vector<20x160xf32>
    %cst_99 = arith.constant 0.000000e+00 : f32
    %157 = vector.broadcast %cst_99 : f32 to vector<20x160xf32>
    %158 = arith.maximumf %156, %157 : vector<20x160xf32>
    %c0_100 = arith.constant 0 : index
    %c0_101 = arith.constant 0 : index
    %159 = vector.load %arg25[%c0_100, %c0_101] : memref<20x1xf32, #tpu.memory_space<vmem>>, vector<20x1xf32>
    %160 = vector.broadcast %159 : vector<20x1xf32> to vector<20x160xf32>
    %161 = arith.mulf %158, %160 : vector<20x160xf32>
    %162 = arith.truncf %161 : vector<20x160xf32> to vector<20x160xbf16>
    %cst_102 = arith.constant 0.000000e+00 : bf16
    %163 = vector.broadcast %cst_102 : bf16 to vector<1x160xbf16>
    %164 = vector.extract_strided_slice %162 {offsets = [0, 0], sizes = [19, 160], strides = [1, 1]} : vector<20x160xbf16> to vector<19x160xbf16>
    %165 = tpu.concatenate %163, %164 in 0 : vector<1x160xbf16>, vector<19x160xbf16> -> vector<20x160xbf16>
    %166 = vector.extract_strided_slice %162 {offsets = [1, 0], sizes = [19, 160], strides = [1, 1]} : vector<20x160xbf16> to vector<19x160xbf16>
    %167 = tpu.concatenate %166, %163 in 0 : vector<19x160xbf16>, vector<1x160xbf16> -> vector<20x160xbf16>
    %168 = tpu.concatenate %165, %162, %167 in 1 : vector<20x160xbf16>, vector<20x160xbf16>, vector<20x160xbf16> -> vector<20x480xbf16>
    %c0_103 = arith.constant 0 : index
    %c0_104 = arith.constant 0 : index
    %169 = vector.load %arg29[%c0_103, %c0_104] : memref<480x80xbf16, #tpu.memory_space<vmem>>, vector<480x80xbf16>
    %cst_105 = arith.constant dense<0.000000e+00> : vector<20x80xf32>
    %170 = tpu.matmul %168, %169, %cst_105 {dimension_numbers = #tpu.dot_dimension_numbers<[1], [0], [0], [1], [0, 0, 1, 1], [], []>} : vector<20x480xbf16>, vector<480x80xbf16>, vector<20x80xf32> -> vector<20x80xf32>
    %c0_106 = arith.constant 0 : index
    %c0_107 = arith.constant 0 : index
    %171 = vector.load %arg24[%c0_106, %c0_107] : memref<20x80xf32, #tpu.memory_space<vmem>>, vector<20x80xf32>
    %172 = arith.addf %170, %171 : vector<20x80xf32>
    %cst_108 = arith.constant 0.000000e+00 : f32
    %173 = vector.broadcast %cst_108 : f32 to vector<20x80xf32>
    %174 = arith.maximumf %172, %173 : vector<20x80xf32>
    %c0_109 = arith.constant 0 : index
    %c0_110 = arith.constant 0 : index
    %175 = vector.load %arg25[%c0_109, %c0_110] : memref<20x1xf32, #tpu.memory_space<vmem>>, vector<20x1xf32>
    %176 = vector.broadcast %175 : vector<20x1xf32> to vector<20x80xf32>
    %177 = arith.mulf %174, %176 : vector<20x80xf32>
    %178 = arith.truncf %177 : vector<20x80xf32> to vector<20x80xbf16>
    %c0_111 = arith.constant 0 : index
    %c0_112 = arith.constant 0 : index
    %179 = vector.load %arg34[%c0_111, %c0_112] : memref<36x20xbf16, #tpu.memory_space<vmem>>, vector<36x20xbf16>
    %cst_113 = arith.constant dense<0.000000e+00> : vector<36x80xf32>
    %180 = tpu.matmul %179, %178, %cst_113 {dimension_numbers = #tpu.dot_dimension_numbers<[1], [0], [0], [1], [0, 0, 1, 1], [], []>} : vector<36x20xbf16>, vector<20x80xbf16>, vector<36x80xf32> -> vector<36x80xf32>
    %181 = arith.truncf %180 : vector<36x80xf32> to vector<36x80xbf16>
    %c0_114 = arith.constant 0 : index
    %c0_115 = arith.constant 0 : index
    %182 = vector.load %arg33[%c0_114, %c0_115] : memref<80x144xbf16, #tpu.memory_space<vmem>>, vector<80x144xbf16>
    %cst_116 = arith.constant dense<0.000000e+00> : vector<36x144xf32>
    %183 = tpu.matmul %181, %182, %cst_116 {dimension_numbers = #tpu.dot_dimension_numbers<[1], [0], [0], [1], [0, 0, 1, 1], [], []>} : vector<36x80xbf16>, vector<80x144xbf16>, vector<36x144xf32> -> vector<36x144xf32>
    %184 = arith.truncf %183 : vector<36x144xf32> to vector<36x144xbf16>
    %cst_117 = arith.constant 0.000000e+00 : bf16
    %185 = vector.broadcast %cst_117 : bf16 to vector<1x144xbf16>
    %186 = vector.extract_strided_slice %184 {offsets = [0, 0], sizes = [35, 144], strides = [1, 1]} : vector<36x144xbf16> to vector<35x144xbf16>
    %187 = tpu.concatenate %185, %186 in 0 : vector<1x144xbf16>, vector<35x144xbf16> -> vector<36x144xbf16>
    %188 = vector.extract_strided_slice %184 {offsets = [1, 0], sizes = [35, 144], strides = [1, 1]} : vector<36x144xbf16> to vector<35x144xbf16>
    %189 = tpu.concatenate %188, %185 in 0 : vector<35x144xbf16>, vector<1x144xbf16> -> vector<36x144xbf16>
    %190 = tpu.concatenate %187, %184, %189 in 1 : vector<36x144xbf16>, vector<36x144xbf16>, vector<36x144xbf16> -> vector<36x432xbf16>
    %cst_118 = arith.constant 0.000000e+00 : bf16
    %191 = vector.broadcast %cst_118 : bf16 to vector<1x144xbf16>
    %192 = vector.extract_strided_slice %35 {offsets = [0, 0], sizes = [35, 144], strides = [1, 1]} : vector<36x144xbf16> to vector<35x144xbf16>
    %193 = tpu.concatenate %191, %192 in 0 : vector<1x144xbf16>, vector<35x144xbf16> -> vector<36x144xbf16>
    %194 = vector.extract_strided_slice %35 {offsets = [1, 0], sizes = [35, 144], strides = [1, 1]} : vector<36x144xbf16> to vector<35x144xbf16>
    %195 = tpu.concatenate %194, %191 in 0 : vector<35x144xbf16>, vector<1x144xbf16> -> vector<36x144xbf16>
    %196 = tpu.concatenate %193, %35, %195 in 1 : vector<36x144xbf16>, vector<36x144xbf16>, vector<36x144xbf16> -> vector<36x432xbf16>
    %197 = tpu.concatenate %190, %196 in 1 : vector<36x432xbf16>, vector<36x432xbf16> -> vector<36x864xbf16>
    %c0_119 = arith.constant 0 : index
    %c0_120 = arith.constant 0 : index
    %198 = vector.load %arg35[%c0_119, %c0_120] : memref<864x144xbf16, #tpu.memory_space<vmem>>, vector<864x144xbf16>
    %cst_121 = arith.constant dense<0.000000e+00> : vector<36x144xf32>
    %199 = tpu.matmul %197, %198, %cst_121 {dimension_numbers = #tpu.dot_dimension_numbers<[1], [0], [0], [1], [0, 0, 1, 1], [], []>} : vector<36x864xbf16>, vector<864x144xbf16>, vector<36x144xf32> -> vector<36x144xf32>
    %c0_122 = arith.constant 0 : index
    %c0_123 = arith.constant 0 : index
    %200 = vector.load %arg30[%c0_122, %c0_123] : memref<36x144xf32, #tpu.memory_space<vmem>>, vector<36x144xf32>
    %201 = arith.addf %199, %200 : vector<36x144xf32>
    %cst_124 = arith.constant 0.000000e+00 : f32
    %202 = vector.broadcast %cst_124 : f32 to vector<36x144xf32>
    %203 = arith.maximumf %201, %202 : vector<36x144xf32>
    %c0_125 = arith.constant 0 : index
    %c0_126 = arith.constant 0 : index
    %204 = vector.load %arg32[%c0_125, %c0_126] : memref<36x1xf32, #tpu.memory_space<vmem>>, vector<36x1xf32>
    %205 = vector.broadcast %204 : vector<36x1xf32> to vector<36x144xf32>
    %206 = arith.mulf %203, %205 : vector<36x144xf32>
    %207 = arith.truncf %206 : vector<36x144xf32> to vector<36x144xbf16>
    %cst_127 = arith.constant 0.000000e+00 : bf16
    %208 = vector.broadcast %cst_127 : bf16 to vector<1x144xbf16>
    %209 = vector.extract_strided_slice %207 {offsets = [0, 0], sizes = [35, 144], strides = [1, 1]} : vector<36x144xbf16> to vector<35x144xbf16>
    %210 = tpu.concatenate %208, %209 in 0 : vector<1x144xbf16>, vector<35x144xbf16> -> vector<36x144xbf16>
    %211 = vector.extract_strided_slice %207 {offsets = [1, 0], sizes = [35, 144], strides = [1, 1]} : vector<36x144xbf16> to vector<35x144xbf16>
    %212 = tpu.concatenate %211, %208 in 0 : vector<35x144xbf16>, vector<1x144xbf16> -> vector<36x144xbf16>
    %213 = tpu.concatenate %210, %207, %212 in 1 : vector<36x144xbf16>, vector<36x144xbf16>, vector<36x144xbf16> -> vector<36x432xbf16>
    %c0_128 = arith.constant 0 : index
    %c0_129 = arith.constant 0 : index
    %214 = vector.load %arg36[%c0_128, %c0_129] : memref<432x144xbf16, #tpu.memory_space<vmem>>, vector<432x144xbf16>
    %cst_130 = arith.constant dense<0.000000e+00> : vector<36x144xf32>
    %215 = tpu.matmul %213, %214, %cst_130 {dimension_numbers = #tpu.dot_dimension_numbers<[1], [0], [0], [1], [0, 0, 1, 1], [], []>} : vector<36x432xbf16>, vector<432x144xbf16>, vector<36x144xf32> -> vector<36x144xf32>
    %c0_131 = arith.constant 0 : index
    %c0_132 = arith.constant 0 : index
    %216 = vector.load %arg31[%c0_131, %c0_132] : memref<36x144xf32, #tpu.memory_space<vmem>>, vector<36x144xf32>
    %217 = arith.addf %215, %216 : vector<36x144xf32>
    %cst_133 = arith.constant 0.000000e+00 : f32
    %218 = vector.broadcast %cst_133 : f32 to vector<36x144xf32>
    %219 = arith.maximumf %217, %218 : vector<36x144xf32>
    %c0_134 = arith.constant 0 : index
    %c0_135 = arith.constant 0 : index
    %220 = vector.load %arg32[%c0_134, %c0_135] : memref<36x1xf32, #tpu.memory_space<vmem>>, vector<36x1xf32>
    %221 = vector.broadcast %220 : vector<36x1xf32> to vector<36x144xf32>
    %222 = arith.mulf %219, %221 : vector<36x144xf32>
    %223 = arith.truncf %222 : vector<36x144xf32> to vector<36x144xbf16>
    %c0_136 = arith.constant 0 : index
    %c0_137 = arith.constant 0 : index
    %224 = vector.load %arg17[%c0_136, %c0_137] : memref<144x128xbf16, #tpu.memory_space<vmem>>, vector<144x128xbf16>
    %cst_138 = arith.constant dense<0.000000e+00> : vector<36x128xf32>
    %225 = tpu.matmul %223, %224, %cst_138 {dimension_numbers = #tpu.dot_dimension_numbers<[1], [0], [0], [1], [0, 0, 1, 1], [], []>} : vector<36x144xbf16>, vector<144x128xbf16>, vector<36x128xf32> -> vector<36x128xf32>
    %c0_139 = arith.constant 0 : index
    %c0_140 = arith.constant 0 : index
    %226 = vector.load %arg16[%c0_139, %c0_140] : memref<36x128xf32, #tpu.memory_space<vmem>>, vector<36x128xf32>
    %227 = arith.addf %225, %226 : vector<36x128xf32>
    %228 = math.tanh %227 : vector<36x128xf32>
    %c0_141 = arith.constant 0 : index
    %c0_142 = arith.constant 0 : index
    %c0_143 = arith.constant 0 : index
    %229 = vector.load %arg37[%c0_141, %c0_142, %c0_143] : memref<1x36x128xf32, #tpu.memory_space<vmem>>, vector<1x36x128xf32>
    %230 = vector.shape_cast %229 : vector<1x36x128xf32> to vector<36x128xf32>
    %231 = vector.shape_cast %228 : vector<36x128xf32> to vector<1x36x128xf32>
    tpu.vector_store %arg37[%c0_141, %c0_142, %c0_143], %231 {strides = array<i32>} : memref<1x36x128xf32, #tpu.memory_space<vmem>>, vector<1x36x128xf32>,
    return
  }
  func.func @transform_0(%arg0: i32) -> (i32, i32, i32) {
    %c0_i32 = arith.constant 0 : i32
    %c0_i32_0 = arith.constant 0 : i32
    %c0_i32_1 = arith.constant 0 : i32
    return %arg0, %c0_i32, %c0_i32_0 : i32, i32, i32
  }
  func.func @transform_1(%arg0: i32) -> (i32, i32) {
    %c0_i32 = arith.constant 0 : i32
    %c0_i32_0 = arith.constant 0 : i32
    %c0_i32_1 = arith.constant 0 : i32
    return %c0_i32, %c0_i32_0 : i32, i32
  }
  func.func @transform_2(%arg0: i32) -> (i32, i32) {
    %c0_i32 = arith.constant 0 : i32
    %c0_i32_0 = arith.constant 0 : i32
    %c0_i32_1 = arith.constant 0 : i32
    return %c0_i32, %c0_i32_0 : i32, i32
  }
  func.func @transform_3(%arg0: i32) -> (i32, i32) {
    %c0_i32 = arith.constant 0 : i32
    %c0_i32_0 = arith.constant 0 : i32
    %c0_i32_1 = arith.constant 0 : i32
    return %c0_i32, %c0_i32_0 : i32, i32
  }
  func.func @transform_4(%arg0: i32) -> (i32, i32, i32) {
    %c0_i32 = arith.constant 0 : i32
    %c0_i32_0 = arith.constant 0 : i32
    %c0_i32_1 = arith.constant 0 : i32
    %c0_i32_2 = arith.constant 0 : i32
    return %c0_i32, %c0_i32_0, %c0_i32_1 : i32, i32, i32
  }
  func.func @transform_5(%arg0: i32) -> (i32, i32, i32) {
    %c0_i32 = arith.constant 0 : i32
    %c0_i32_0 = arith.constant 0 : i32
    %c0_i32_1 = arith.constant 0 : i32
    %c0_i32_2 = arith.constant 0 : i32
    return %c0_i32, %c0_i32_0, %c0_i32_1 : i32, i32, i32
  }
  func.func @transform_6(%arg0: i32) -> (i32, i32) {
    %c0_i32 = arith.constant 0 : i32
    %c0_i32_0 = arith.constant 0 : i32
    %c0_i32_1 = arith.constant 0 : i32
    return %c0_i32, %c0_i32_0 : i32, i32
  }
  func.func @transform_7(%arg0: i32) -> (i32, i32) {
    %c0_i32 = arith.constant 0 : i32
    %c0_i32_0 = arith.constant 0 : i32
    %c0_i32_1 = arith.constant 0 : i32
    return %c0_i32, %c0_i32_0 : i32, i32
  }
  func.func @transform_8(%arg0: i32) -> (i32, i32) {
    %c0_i32 = arith.constant 0 : i32
    %c0_i32_0 = arith.constant 0 : i32
    %c0_i32_1 = arith.constant 0 : i32
    return %c0_i32, %c0_i32_0 : i32, i32
  }
  func.func @transform_9(%arg0: i32) -> (i32, i32) {
    %c0_i32 = arith.constant 0 : i32
    %c0_i32_0 = arith.constant 0 : i32
    %c0_i32_1 = arith.constant 0 : i32
    return %c0_i32, %c0_i32_0 : i32, i32
  }
  func.func @transform_10(%arg0: i32) -> (i32, i32) {
    %c0_i32 = arith.constant 0 : i32
    %c0_i32_0 = arith.constant 0 : i32
    %c0_i32_1 = arith.constant 0 : i32
    return %c0_i32, %c0_i32_0 : i32, i32
  }
  func.func @transform_11(%arg0: i32) -> (i32, i32, i32) {
    %c0_i32 = arith.constant 0 : i32
    %c0_i32_0 = arith.constant 0 : i32
    %c0_i32_1 = arith.constant 0 : i32
    %c0_i32_2 = arith.constant 0 : i32
    return %c0_i32, %c0_i32_0, %c0_i32_1 : i32, i32, i32
  }
  func.func @transform_12(%arg0: i32) -> (i32, i32, i32) {
    %c0_i32 = arith.constant 0 : i32
    %c0_i32_0 = arith.constant 0 : i32
    %c0_i32_1 = arith.constant 0 : i32
    %c0_i32_2 = arith.constant 0 : i32
    return %c0_i32, %c0_i32_0, %c0_i32_1 : i32, i32, i32
  }
  func.func @transform_13(%arg0: i32) -> (i32, i32) {
    %c0_i32 = arith.constant 0 : i32
    %c0_i32_0 = arith.constant 0 : i32
    %c0_i32_1 = arith.constant 0 : i32
    return %c0_i32, %c0_i32_0 : i32, i32
  }
  func.func @transform_14(%arg0: i32) -> (i32, i32) {
    %c0_i32 = arith.constant 0 : i32
    %c0_i32_0 = arith.constant 0 : i32
    %c0_i32_1 = arith.constant 0 : i32
    return %c0_i32, %c0_i32_0 : i32, i32
  }
  func.func @transform_15(%arg0: i32) -> (i32, i32) {
    %c0_i32 = arith.constant 0 : i32
    %c0_i32_0 = arith.constant 0 : i32
    %c0_i32_1 = arith.constant 0 : i32
    return %c0_i32, %c0_i32_0 : i32, i32
  }
  func.func @transform_16(%arg0: i32) -> (i32, i32) {
    %c0_i32 = arith.constant 0 : i32
    %c0_i32_0 = arith.constant 0 : i32
    %c0_i32_1 = arith.constant 0 : i32
    return %c0_i32, %c0_i32_0 : i32, i32
  }
  func.func @transform_17(%arg0: i32) -> (i32, i32) {
    %c0_i32 = arith.constant 0 : i32
    %c0_i32_0 = arith.constant 0 : i32
    %c0_i32_1 = arith.constant 0 : i32
    return %c0_i32, %c0_i32_0 : i32, i32
  }
  func.func @transform_18(%arg0: i32) -> (i32, i32) {
    %c0_i32 = arith.constant 0 : i32
    %c0_i32_0 = arith.constant 0 : i32
    %c0_i32_1 = arith.constant 0 : i32
    return %c0_i32, %c0_i32_0 : i32, i32
  }
  func.func @transform_19(%arg0: i32) -> (i32, i32) {
    %c0_i32 = arith.constant 0 : i32
    %c0_i32_0 = arith.constant 0 : i32
    %c0_i32_1 = arith.constant 0 : i32
    return %c0_i32, %c0_i32_0 : i32, i32
  }
  func.func @transform_20(%arg0: i32) -> (i32, i32) {
    %c0_i32 = arith.constant 0 : i32
    %c0_i32_0 = arith.constant 0 : i32
    %c0_i32_1 = arith.constant 0 : i32
    return %c0_i32, %c0_i32_0 : i32, i32
  }
  func.func @transform_21(%arg0: i32) -> (i32, i32) {
    %c0_i32 = arith.constant 0 : i32
    %c0_i32_0 = arith.constant 0 : i32
    %c0_i32_1 = arith.constant 0 : i32
    return %c0_i32, %c0_i32_0 : i32, i32
  }
  func.func @transform_22(%arg0: i32) -> (i32, i32) {
    %c0_i32 = arith.constant 0 : i32
    %c0_i32_0 = arith.constant 0 : i32
    %c0_i32_1 = arith.constant 0 : i32
    return %c0_i32, %c0_i32_0 : i32, i32
  }
  func.func @transform_23(%arg0: i32) -> (i32, i32) {
    %c0_i32 = arith.constant 0 : i32
    %c0_i32_0 = arith.constant 0 : i32
    %c0_i32_1 = arith.constant 0 : i32
    return %c0_i32, %c0_i32_0 : i32, i32
  }
  func.func @transform_24(%arg0: i32) -> (i32, i32) {
    %c0_i32 = arith.constant 0 : i32
    %c0_i32_0 = arith.constant 0 : i32
    %c0_i32_1 = arith.constant 0 : i32
    return %c0_i32, %c0_i32_0 : i32, i32
  }
  func.func @transform_25(%arg0: i32) -> (i32, i32) {
    %c0_i32 = arith.constant 0 : i32
    %c0_i32_0 = arith.constant 0 : i32
    %c0_i32_1 = arith.constant 0 : i32
    return %c0_i32, %c0_i32_0 : i32, i32
  }
  func.func @transform_26(%arg0: i32) -> (i32, i32) {
    %c0_i32 = arith.constant 0 : i32
    %c0_i32_0 = arith.constant 0 : i32
    %c0_i32_1 = arith.constant 0 : i32
    return %c0_i32, %c0_i32_0 : i32, i32
  }
  func.func @transform_27(%arg0: i32) -> (i32, i32) {
    %c0_i32 = arith.constant 0 : i32
    %c0_i32_0 = arith.constant 0 : i32
    %c0_i32_1 = arith.constant 0 : i32
    return %c0_i32, %c0_i32_0 : i32, i32
  }
  func.func @transform_28(%arg0: i32) -> (i32, i32) {
    %c0_i32 = arith.constant 0 : i32
    %c0_i32_0 = arith.constant 0 : i32
    %c0_i32_1 = arith.constant 0 : i32
    return %c0_i32, %c0_i32_0 : i32, i32
  }
  func.func @transform_29(%arg0: i32) -> (i32, i32) {
    %c0_i32 = arith.constant 0 : i32
    %c0_i32_0 = arith.constant 0 : i32
    %c0_i32_1 = arith.constant 0 : i32
    return %c0_i32, %c0_i32_0 : i32, i32
  }
  func.func @transform_30(%arg0: i32) -> (i32, i32) {
    %c0_i32 = arith.constant 0 : i32
    %c0_i32_0 = arith.constant 0 : i32
    %c0_i32_1 = arith.constant 0 : i32
    return %c0_i32, %c0_i32_0 : i32, i32
  }
  func.func @transform_31(%arg0: i32) -> (i32, i32) {
    %c0_i32 = arith.constant 0 : i32
    %c0_i32_0 = arith.constant 0 : i32
    %c0_i32_1 = arith.constant 0 : i32
    return %c0_i32, %c0_i32_0 : i32, i32
  }
  func.func @transform_32(%arg0: i32) -> (i32, i32) {
    %c0_i32 = arith.constant 0 : i32
    %c0_i32_0 = arith.constant 0 : i32
    %c0_i32_1 = arith.constant 0 : i32
    return %c0_i32, %c0_i32_0 : i32, i32
  }
  func.func @transform_33(%arg0: i32) -> (i32, i32) {
    %c0_i32 = arith.constant 0 : i32
    %c0_i32_0 = arith.constant 0 : i32
    %c0_i32_1 = arith.constant 0 : i32
    return %c0_i32, %c0_i32_0 : i32, i32
  }
  func.func @transform_34(%arg0: i32) -> (i32, i32) {
    %c0_i32 = arith.constant 0 : i32
    %c0_i32_0 = arith.constant 0 : i32
    %c0_i32_1 = arith.constant 0 : i32
    return %c0_i32, %c0_i32_0 : i32, i32
  }
  func.func @transform_35(%arg0: i32) -> (i32, i32) {
    %c0_i32 = arith.constant 0 : i32
    %c0_i32_0 = arith.constant 0 : i32
    %c0_i32_1 = arith.constant 0 : i32
    return %c0_i32, %c0_i32_0 : i32, i32
  }
  func.func @transform_36(%arg0: i32) -> (i32, i32, i32) {
    %c0_i32 = arith.constant 0 : i32
    %c0_i32_0 = arith.constant 0 : i32
    %c0_i32_1 = arith.constant 0 : i32
    return %arg0, %c0_i32, %c0_i32_0 : i32, i32, i32
  }
}

</mosaic_0001>

<bundles_post_ra>
// kernel: unet_forward.1
= control target key start
LH: loop header
LB: loop body
LE: loop exit
PB: predicated region body
PF: predicated region fallthrough
CT: control target
= control target key end

     0   :  { %s9230_s6 = smov 6   ;;  %vm197_vm0 = vsmask.f32 7424  ;;  %vm208_vm1 = vsmask.f32 1280  ;;  %vm207_vm2 = vcmask 1041408   ;;  %s10989_s0 = inlined_call_operand.smem [shape: u32[37], index: -1, kind: input, shape index: {}] }
   0x1   :  { %s1_s5 = sld [smem:[%s10989_s0]]   ;;  %s9231_s10 = smov 54   ;;  %vm9295_vm3 = vmand %vm207_vm2, %vm208_vm1  ;;  %vm169_vm4 = vsmask.f32 256  ;;  %v9234_v34 = vmov 0   ;;  %vm194_vm5 = vcmask 1040384   ;;  %vm224_vm7 = vcmask 441344  }
   0x2   :  { %s9286_s9 = sld [smem:[%s10989_s0 + %s9230_s6]]   ;;  %s9232_s11 = smov 108   ;;  %8396 = vset.pattern.permute.xlu0 %v9234_v34  ;;  %8397 = vset.pattern.permute.xlu1 %v9234_v34  ;;  %vm9336_vm6 = vmand %vm194_vm5, %vm169_vm4  ;;  %vm380_vm8 = vcmask 277504   ;;  %vm234_vm9 = vcmask 883712   ;;  %vm611_vm10 = vcmask 130048   ;;  %vm629_vm11 = vcmask 261120  }
   0x3   :  { %s9233_s12 = smov 3   ;;  %s9235_s16 = smov 16   ;;  %vm993_vm12 = vcmask 392192   ;;  %vm1172_vm13 = vcmask 293888   ;;  %vm1603_vm14 = vcmask 654336   ;;  %vm1802_vm15 = vcmask 916480  }
   0x4   :  { %s7408_s15 = sld [smem:[%s10989_s0 + %s9233_s12]]   ;;  %s9236_s20 = smov 7   ;;  %vm1971_vm1 = vcmask 523264  }
   0x5   :  { %s9353_s19 = sld [smem:[%s10989_s0 + %s9235_s16]]   ;;  %s9237_s24 = smov 1  }
   0x6   :  { %s9358_s23 = sld [smem:[%s10989_s0 + %s9236_s20]]   ;;  %s9238_s28 = smov 32  }
   0x7   :  { %v8398_v0 = vld [vmem:[%s1_s5] sm:$0xff]   ;;  %v8399_v1 = vld [vmem:[%s1_s5 + $0x8] sm:$0xff]   ;;  %v8400_v5 = vld [vmem:[%s1_s5 + $0x10] ss:$0 sps:$4 sm:$0x33]   ;;  %s9395_s27 = sld [smem:[%s10989_s0 + %s9237_s24]]   ;;  %s9239_s29 = smov 4  }
   0x8   :  { %211 = vrot.lane.b32.xlu0 %v8398_v0, %s9231_s10  ;;  %v174_v2 = vshll.u32 %v8398_v0, 16  ;;  %v171_v3 = vshrl.u32 %v8398_v0, 16  ;;  %v181_v4 = vshll.u32 %v8399_v1, 16  ;;  %213 = vrot.lane.b32.xlu1 %v8399_v1, %s9231_s10  ;;  %v178_v6 = vshrl.u32 %v8399_v1, 16  ;;  %v8401_v8 = vld [vmem:[%s9286_s9 + $0x4] ss:$8 sps:$4 sm:$0xff]   ;;  %s9506_s2 = sld [smem:[%s10989_s0 + %s9239_s29]]  }
   0x9   :  { %v8403_v9 = vld [vmem:[%s9286_s9] ss:$8 sps:$4 sm:$0xff]   ;;  %v189_v11 = vshll.u32 %v8400_v5, 16  ;;  %v186_v13 = vshrl.u32 %v8400_v5, 16  ;;  %v8404_v14 = vld [vmem:[%s9286_s9 + $0x14] ss:$8 sps:$4 sm:$0xff]   ;;  %394 = vmatprep.subr.bf16.mxu0 %v8401_v8 }
   0xa   :  { %v198_v7 = vrot.slane %v174_v2, 1  ;;  %v200_v10 = vrot.slane %v181_v4, 1  ;;  %v180_v12 = vrot.slane %v178_v6, 7  ;;  %v173_v16 = vrot.slane %v171_v3, 7  ;;  %395 = vmatpush1.bf16.msra.mxu0 %v8403_v9  ;;  %v8406_v21 = vld [vmem:[%s9286_s9 + $0x10] ss:$8 sps:$4 sm:$0xff]  }
   0xb   :  { %v203_v18 = vrot.slane %v189_v11, 1  ;;  %v188_v19 = vrot.slane %v186_v13, 7  ;;  %396 = vmatprep.subr.bf16.mxu0 %v8404_v14  ;;  %v8407_v24 = vld [vmem:[%s9286_s9 + $0x24] ss:$8 sps:$4 sm:$0xff]   ;;  %v8409_v31 = vld [vmem:[%s9286_s9 + $0x20] ss:$8 sps:$4 sm:$0xff]  }
   0xc   :  { %v199_v15 = vor.u32 %v198_v7, %v171_v3  ;;  %v202_v17 = vor.u32 %v200_v10, %v178_v6  ;;  %v183_v22 = vor.u32 %v181_v4, %v180_v12  ;;  %v9302_v25 = vor.u32 %v174_v2, %v173_v16  ;;  %v8410_v33 = vld [vmem:[%s9286_s9 + $0x34] ss:$8 sps:$4 sm:$0xff]   ;;  %v8412_v35 = vld [vmem:[%s9286_s9 + $0x30] ss:$8 sps:$4 sm:$0xff]   ;;  %v8413_v36 = vld [vmem:[%s9286_s9 + $0x44] ss:$8 sps:$4 sm:$0xff]  }
   0xd   :  { %v205_v27 = vor.u32 %v203_v18, %v186_v13  ;;  %v191_v29 = vor.u32 %v189_v11, %v188_v19  ;;  %v8415_v37 = vld [vmem:[%s9286_s9 + $0x40] ss:$8 sps:$4 sm:$0xff]   ;;  %v8416_v38 = vld [vmem:[%s9286_s9 + $0x54] ss:$8 sps:$4 sm:$0xff]   ;;  %v8418_v43 = vld [vmem:[%s9286_s9 + $0x50] ss:$8 sps:$4 sm:$0xff]  }
   0xe   :  { %v201_v23 = vsel %vm197_vm0, %v199_v15, %v200_v10  ;;  %v204_v26 = vsel %vm197_vm0, %v202_v17, %v203_v18  ;;  %v9306_v28 = vsel %vm169_vm4, %v173_v16, %v183_v22  ;;  %397 = vmatpush1.bf16.msra.mxu0 %v8406_v21  ;;  %v476_v39 = vld [vmem:[%s7408_s15 + $0x8] sm:$0xff]  ;;  %v475_v40 = vld [vmem:[%s7408_s15] sm:$0xff]  ;;  %v477_v41 = vld [vmem:[%s7408_s15 + $0x10] sm:$0xff]  ;;  %v196_v60 = vsel %vm9336_vm6, 0, %v9302_v25  ;;  %s9240_s3 = smov 5   ;;  %s9241_s7 = smov 2  }
   0xf   :  { %218 = vrot.lane.b32.xlu0 %v201_v23, %s9232_s11  ;;  %220 = vrot.lane.b32.xlu1 %v204_v26, %s9232_s11  ;;  %v210_v30 = vsel %vm9295_vm3, %v205_v27, 0  ;;  %v9312_v32 = vsel %vm169_vm4, %v180_v12, %v191_v29  ;;  %v478_v42 = vld [vmem:[%s7408_s15 + $0x18] sm:$0xff]  ;;  %v8419_v44 = vld [vmem:[%s9286_s9 + $0x64] ss:$8 sps:$4 sm:$0xff]   ;;  %s9511_s6 = sld [smem:[%s10989_s0 + %s9240_s3]]   ;;  %s9244_s21 = smov 80  }
  0x10   :  { %398 = vmatprep.subr.bf16.mxu0 %v8407_v24  ;;  %v479_v45 = vld [vmem:[%s7408_s15 + $0x20] sm:$0xf]  ;;  %v8422_v47 = vld [vmem:[%s9286_s9 + $0x74] ss:$8 sps:$4 sm:$0xff]   ;;  %v8424_v48 = vld [vmem:[%s9286_s9 + $0x70] ss:$8 sps:$4 sm:$0xff]  }
  0x11   :  { %v8421_v46 = vld [vmem:[%s9286_s9 + $0x60] ss:$8 sps:$4 sm:$0xff]   ;;  %v8425_v49 = vld [vmem:[%s9286_s9 + $0x84] ss:$8 sps:$4 sm:$0xff]   ;;  %v8428_v51 = vld [vmem:[%s9286_s9 + $0x94] ss:$8 sps:$4 sm:$0xff]  }
  0x12   :  { %399 = vmatpush1.bf16.msra.mxu0 %v8409_v31  ;;  %v8427_v50 = vld [vmem:[%s9286_s9 + $0x80] ss:$8 sps:$4 sm:$0xff]   ;;  %v8430_v53 = vld [vmem:[%s9286_s9 + $0x90] ss:$8 sps:$4 sm:$0xff]   ;;  %v8433_v7 = vld [vmem:[%s9358_s23 + $0x4] ss:$8 sps:$4 sm:$0xff]  }
  0x13   :  { %215 = vrot.lane.b32.xlu0 %v8400_v5, %s9231_s10  ;;  %222 = vrot.lane.b32.xlu1 %v210_v30, %s9232_s11  ;;  %v264_v52 = vld [vmem:[%s9286_s9 + $0xa0] sm:$0x11]  ;;  %v8436_v9 = vld [vmem:[%s9358_s23 + $0x14] ss:$8 sps:$4 sm:$0xff]   ;;  %s9522_s10 = sld [smem:[%s10989_s0 + %s9241_s7]]   ;;  %s9242_s11 = smov 13  }
  0x14   :  { %400 = vmatprep.subr.bf16.mxu0 %v8410_v33  ;;  %v7466_v54 = vcombine.high %v264_v52, %v264_v52  ;;  %v7465_v55 = vcombine.low %v264_v52, %v264_v52  ;;  %v8435_v8 = vld [vmem:[%s9358_s23] ss:$8 sps:$4 sm:$0xff]   ;;  %1003 = vmatprep.subr.bf16.mxu1 %v8433_v7  ;;  %v8438_v10 = vld [vmem:[%s9358_s23 + $0x10] ss:$8 sps:$4 sm:$0xff]   ;;  %v8439_v11 = vld [vmem:[%s9358_s23 + $0x24] ss:$8 sps:$4 sm:$0xff]   ;;  %s9643_s14 = sld [smem:[%s10989_s0 + %s9242_s11]]  }
  0x15   :  { %1004 = vmatpush1.bf16.msra.mxu1 %v8435_v8  ;;  %v8441_v12 = vld [vmem:[%s9358_s23 + $0x20] ss:$8 sps:$4 sm:$0xff]   ;;  %v8442_v13 = vld [vmem:[%s9358_s23 + $0x34] ss:$8 sps:$4 sm:$0xff]   ;;  %v8444_v14 = vld [vmem:[%s9358_s23 + $0x30] ss:$8 sps:$4 sm:$0xff]  }
  0x16   :  { %401 = vmatpush1.bf16.msra.mxu0 %v8412_v35  ;;  %v389_v56 = vsel %vm194_vm5, %v7465_v55, 0  ;;  %1005 = vmatprep.subr.bf16.mxu1 %v8436_v9  ;;  %v8445_v15 = vld [vmem:[%s9358_s23 + $0x44] ss:$8 sps:$4 sm:$0xff]   ;;  %v8447_v16 = vld [vmem:[%s9358_s23 + $0x40] ss:$8 sps:$4 sm:$0xff]   ;;  %v272_v8 = vld [vmem:[%s9395_s27 + $0x38] sm:$0xff] }
  0x17   :  { %402 = vmatprep.subr.bf16.mxu0 %v8413_v36  ;;  %487 = vperm.xlu1 %8397, %v476_v39   ;;  %v8448_v17 = vld [vmem:[%s9358_s23 + $0x54] ss:$8 sps:$4 sm:$0xff]   ;;  %v8450_v18 = vld [vmem:[%s9358_s23 + $0x50] ss:$8 sps:$4 sm:$0xff]   ;;  %v8451_v19 = vld [vmem:[%s9358_s23 + $0x64] ss:$8 sps:$4 sm:$0xff]  }
  0x18   :  { %482 = vperm.xlu0 %8396, %v475_v40   ;;  %v8453_v21 = vld [vmem:[%s9358_s23 + $0x60] ss:$8 sps:$4 sm:$0xff]   ;;  %v8454_v22 = vld [vmem:[%s9358_s23 + $0x74] ss:$8 sps:$4 sm:$0xff]   ;;  %v8456_v23 = vld [vmem:[%s9358_s23 + $0x70] ss:$8 sps:$4 sm:$0xff]  }
  0x19   :  { %1006 = vmatpush1.bf16.msra.mxu1 %v8438_v10  ;;  %v8457_v24 = vld [vmem:[%s9358_s23 + $0x84] ss:$8 sps:$4 sm:$0xff]   ;;  %v8459_v25 = vld [vmem:[%s9358_s23 + $0x80] ss:$8 sps:$4 sm:$0xff]   ;;  %v8460_v26 = vld [vmem:[%s9358_s23 + $0x94] ss:$8 sps:$4 sm:$0xff]  }
  0x1a   :  { %403 = vmatpush1.bf16.msra.mxu0 %v8415_v37  ;;  %1007 = vmatprep.subr.bf16.mxu1 %v8439_v11  ;;  %v8462_v27 = vld [vmem:[%s9358_s23 + $0x90] ss:$8 sps:$4 sm:$0xff]   ;;  %v8465_v29 = vld [vmem:[%s9358_s23 + $0xa0] ss:$8 sps:$4 sm:$0xff]   ;;  %v8466_v30 = vld [vmem:[%s9358_s23 + $0xb4] ss:$8 sps:$4 sm:$0xff]  }
  0x1b   :  { %404 = vmatprep.subr.bf16.mxu0 %v8416_v38  ;;  %492 = vperm.xlu1 %8397, %v477_v41   ;;  %v8468_v31 = vld [vmem:[%s9358_s23 + $0xb0] ss:$8 sps:$4 sm:$0xff]   ;;  %v8471_v33 = vld [vmem:[%s9358_s23 + $0xc0] ss:$8 sps:$4 sm:$0xff]   ;;  %v8472_v35 = vld [vmem:[%s9358_s23 + $0xd4] ss:$8 sps:$4 sm:$0xff]  }
  0x1c   :  { %497 = vperm.xlu0 %8396, %v478_v42   ;;  %v8474_v36 = vld [vmem:[%s9358_s23 + $0xd0] ss:$8 sps:$4 sm:$0xff]   ;;  %v8475_v37 = vld [vmem:[%s9358_s23 + $0xe4] ss:$8 sps:$4 sm:$0xff]   ;;  %v8477_v38 = vld [vmem:[%s9358_s23 + $0xe0] ss:$8 sps:$4 sm:$0xff]  }
  0x1d   :  { %1008 = vmatpush1.bf16.msra.mxu1 %v8441_v12  ;;  %v8478_v39 = vld [vmem:[%s9358_s23 + $0xf4] ss:$8 sps:$4 sm:$0xff]   ;;  %v8480_v40 = vld [vmem:[%s9358_s23 + $0xf0] ss:$8 sps:$4 sm:$0xff]   ;;  %v265_v41 = vld [vmem:[%s9395_s27] sm:$0xff]  ;;  %s9243_s15 = smov 10  }
  0x1e   :  { %405 = vmatpush1.bf16.msra.mxu0 %v8418_v43  ;;  %1009 = vmatprep.subr.bf16.mxu1 %v8442_v13  ;;  %v266_v42 = vld [vmem:[%s9395_s27 + $0x8] sm:$0xff]  ;;  %s9678_s20 = sld [smem:[%s10989_s0 + %s9243_s15]]   ;;  %s9245_s22 = smov 14  }
  0x1f   :  { %406 = vmatprep.subr.bf16.mxu0 %v8419_v44  ;;  %502 = vperm.xlu1 %8397, %v479_v45   ;;  %v8483_v43 = vld [vmem:[%s9358_s23 + $0x104] ss:$8 sps:$4 sm:$0xff]   ;;  %v267_v45 = vld [vmem:[%s9395_s27 + $0x10] sm:$0xff]  ;;  %s9699_s25 = sld [smem:[%s10989_s0 + %s9245_s22]]   ;;  %s9246_s26 = smov 8  }
  0x20   :  { %s7413_s30 = sld [smem:[%s10989_s0 + %s9246_s26]]   ;;  %s9247_s1 = smov 64  }
  0x21   :  { %1010 = vmatpush1.bf16.msra.mxu1 %v8444_v14  ;;  %s9255_s24 = smov 96   ;;  %s9267_s15 = smov 23  }
  0x22   :  { %407 = vmatpush1.bf16.msra.mxu0 %v8421_v46  ;;  %1011 = vmatprep.subr.bf16.mxu1 %v8445_v15  ;;  %s9269_s26 = smov 31  }
  0x23   :  { %408 = vmatprep.subr.bf16.mxu0 %v8422_v47 }
  0x25   :  { %1012 = vmatpush1.bf16.msra.mxu1 %v8447_v16 }
  0x26   :  { %409 = vmatpush1.bf16.msra.mxu0 %v8424_v48  ;;  %1013 = vmatprep.subr.bf16.mxu1 %v8448_v17  ;;  %v268_v48 = vld [vmem:[%s9395_s27 + $0x18] sm:$0xff] }
  0x27   :  { %410 = vmatprep.subr.bf16.mxu0 %v8425_v49 }
  0x29   :  { %1014 = vmatpush1.bf16.msra.mxu1 %v8450_v18 }
  0x2a   :  { %411 = vmatpush1.bf16.msra.mxu0 %v8427_v50  ;;  %1015 = vmatprep.subr.bf16.mxu1 %v8451_v19 }
  0x2b   :  { %412 = vmatprep.subr.bf16.mxu0 %v8428_v51 }
  0x2d   :  { %1016 = vmatpush1.bf16.msra.mxu1 %v8453_v21 }
  0x2e   :  { %413 = vmatpush1.bf16.msra.mxu0 %v8430_v53  ;;  %1017 = vmatprep.subr.bf16.mxu1 %v8454_v22 }
  0x2f   :  { %7467 = vmatprep.subr.msk.bf16.mxu0 %vm194_vm5, %v7466_v54  ;;  %vm2357_vm5 = vcmask 785408  }
  0x31   :  { %1018 = vmatpush1.bf16.msra.mxu1 %v8456_v23 }
  0x32   :  { %415 = vmatpush1.bf16.msra.mxu0 %v389_v56  ;;  %1019 = vmatprep.subr.bf16.mxu1 %v8457_v24 }
  0x35   :  { %1020 = vmatpush1.bf16.msra.mxu1 %v8459_v25 }
  0x36   :  { %1021 = vmatprep.subr.bf16.mxu1 %v8460_v26 }
  0x39   :  { %1022 = vmatpush1.bf16.msra.mxu1 %v8462_v27  ;;  %v273_v27 = vld [vmem:[%s9395_s27 + $0x40] sm:$0xf] }
  0x7a   :  { %v212_v58 = vpop.permute.xlu0 %211  ;;  %v214_v59 = vpop.permute.xlu1 %213 }
  0x7b   :  { %v227_v61 = vsel %vm224_vm7, %v196_v60, %v212_v58  ;;  %v230_v1 = vsel %vm224_vm7, %v9306_v28, %v214_v59  ;;  %v8463_v28 = vld [vmem:[%s9358_s23 + $0xa4] ss:$8 sps:$4 sm:$0xff]  }
  0x7c   :  { %1023 = vmatprep.subr.bf16.mxu1 %v8463_v28 }
  0x7d   :  { %1024 = vmatpush1.bf16.msra.mxu1 %v8465_v29 }
  0x7e   :  { %1025 = vmatprep.subr.bf16.mxu1 %v8466_v30 }
  0x81   :  { %v219_v62 = vpop.permute.xlu0 %218  ;;  %v221_v0 = vpop.permute.xlu1 %220  ;;  %1026 = vmatpush1.bf16.msra.mxu1 %v8468_v31 }
  0x82   :  { %7468 = vmatprep.mubr.msk.bf16.mxu0 %vm380_vm8, %v219_v62  ;;  %v236_v63 = vsel %vm234_vm9, %v227_v61, %v219_v62  ;;  %v239_v2 = vsel %vm234_vm9, %v230_v1, %v221_v0  ;;  %v269_v61 = vld [vmem:[%s9395_s27 + $0x20] sm:$0xff] }
  0x83   :  { %427 = vmatmul.mubr.bf16.vlgmr.msra.gmra.mrb[0].mxu0 %v236_v63 }
  0x84   :  { %7469 = vmatprep.mubr.msk.bf16.mxu0 %vm380_vm8, %v221_v0  ;;  %v270_v0 = vld [vmem:[%s9395_s27 + $0x28] sm:$0xff] }
  0x85   :  { %v223_v3 = vpop.permute.xlu1 %222  ;;  %v216_v4 = vpop.permute.xlu0 %215 }
  0x86   :  { %v233_v5 = vsel %vm224_vm7, %v9312_v32, %v216_v4  ;;  %v8469_v32 = vld [vmem:[%s9358_s23 + $0xc4] ss:$8 sps:$4 sm:$0xff]   ;;  %v271_v4 = vld [vmem:[%s9395_s27 + $0x30] sm:$0xff]  ;;  %vm2495_vm7 = vcmask 162816  }
  0x87   :  { %v242_v6 = vsel %vm234_vm9, %v233_v5, %v223_v3  ;;  %1027 = vmatprep.subr.bf16.mxu1 %v8469_v32  ;;  %v274_v32 = vld [vmem:[%s9395_s27 + $0x48] sm:$0xf]  ;;  %vm2869_vm9 = vcmask 1045504  }
  0x88   :  { %1028 = vmatpush1.bf16.msra.mxu1 %v8471_v33 }
  0x89   :  { %1029 = vmatprep.subr.bf16.mxu1 %v8472_v35 }
  0x8b   :  { %437 = vmatmul.mubr.bf16.gmra.mrb[4].mxu0 %v239_v2 }
  0x8c   :  { %7470 = vmatprep.mubr.msk.bf16.mxu0 %vm380_vm8, %v223_v3  ;;  %1030 = vmatpush1.bf16.msra.mxu1 %v8474_v36  ;;  %vm9253_vm8 = vmmov 0  }
  0x8d   :  { %1031 = vmatprep.subr.bf16.mxu1 %v8475_v37 }
  0x90   :  { %1032 = vmatpush1.bf16.msra.mxu1 %v8477_v38 }
  0x91   :  { %1033 = vmatprep.subr.bf16.mxu1 %v8478_v39 }
  0x93   :  { %447 = vmatmul.mubr.bf16.gmra.mrb[8].mxu0 %v242_v6 }
  0x94   :  { %1218 = vmatprep.mubr.bf16.mxu0 %v9234_v34  ;;  %1034 = vmatpush1.bf16.msra.mxu1 %v8480_v40 }
  0x95   :  { %1064 = vmatprep.subr.bf16.mxu1 %v8483_v43 }
  0x96   :  { %v9403_v62 = vpop.permute.xlu1 %487 }
  0x97   :  { %v9406_v2 = vpop.permute.xlu0 %482 }
  0x9a   :  { %v9416_v29 = vpop.permute.xlu1 %492 }
  0x9b   :  { %v9419_v35 = vpop.permute.xlu0 %497 }
 0x156   :  { %v428_v44 = vpop.f32.mrb[0].mxu0 }
 0x157   :  { %v429_v46 = vadd.f32 %v428_v44, %v265_v41  ;;  %v430_v47 = vpop.f32.mrb[1].mxu0 }
 0x158   :  { %v431_v49 = vadd.f32 %v430_v47, %v266_v42  ;;  %v432_v50 = vpop.f32.mrb[2].mxu0 }
 0x159   :  { %v455_v51 = vmul.f32 0.2, %v429_v46  ;;  %v433_v52 = vadd.f32 %v432_v50, %v267_v45  ;;  %v434_v53 = vpop.f32.mrb[3].mxu0 }
 0x15a   :  { %v456_v54 = vmul.f32 0.2, %v431_v49  ;;  %v435_v55 = vadd.f32 %v434_v53, %v268_v48 }
 0x15b   :  { %v465_v56 = vmax.f32 %v429_v46, %v455_v51  ;;  %v457_v58 = vmul.f32 0.2, %v433_v52 }
 0x15c   :  { %v466_v59 = vmax.f32 %v431_v49, %v456_v54  ;;  %v458_v60 = vmul.f32 0.2, %v435_v55 }
 0x15d   :  { %v467_v63 = vmax.f32 %v433_v52, %v457_v58  ;;  %v505_v9 = vmul.f32 %v9406_v2, %v465_v56 }
 0x15e   :  { %v468_v1 = vmax.f32 %v435_v55, %v458_v60  ;;  %v438_v3 = vpop.f32.mrb[4].mxu0  ;;  %v506_v13 = vmul.f32 %v9406_v2, %v466_v59 }
 0x15f   :  { %v507_v5 = vmul.f32 %v9403_v62, %v467_v63  ;;  %v439_v6 = vadd.f32 %v438_v3, %v269_v61  ;;  %v440_v7 = vpop.f32.mrb[5].mxu0  ;;  %v9430_v61 = vpop.permute.xlu1 %502 }
 0x160   :  { %v508_v10 = vmul.f32 %v9403_v62, %v468_v1  ;;  %v441_v11 = vadd.f32 %v440_v7, %v270_v0  ;;  %v442_v12 = vpop.f32.mrb[6].mxu0 }
 0x161   :  { %v459_v14 = vmul.f32 0.2, %v439_v6  ;;  %v443_v15 = vadd.f32 %v442_v12, %v271_v4  ;;  %v444_v16 = vpop.f32.mrb[7].mxu0  ;;  %v515_v17 = vpack.c.bf16 %v507_v5, %v505_v9 }
 0x162   :  { %v460_v18 = vmul.f32 0.2, %v441_v11  ;;  %v445_v19 = vadd.f32 %v444_v16, %v272_v8  ;;  %v516_v21 = vpack.c.bf16 %v508_v10, %v506_v13 }
 0x163   :  { %v469_v22 = vmax.f32 %v439_v6, %v459_v14  ;;  %v461_v23 = vmul.f32 0.2, %v443_v15  ;;  %599 = vrot.lane.b32.xlu0 %v515_v17, %s9235_s16  ;;  %v522_v24 = vshrl.u32 %v515_v17, 16  ;;  %v525_v31 = vshll.u32 %v515_v17, 16 }
 0x164   :  { %v470_v25 = vmax.f32 %v441_v11, %v460_v18  ;;  %v462_v26 = vmul.f32 0.2, %v445_v19  ;;  %v529_v28 = vshrl.u32 %v516_v21, 16  ;;  %v532_v38 = vshll.u32 %v516_v21, 16 }
 0x165   :  { %v471_v30 = vmax.f32 %v443_v15, %v461_v23  ;;  %v524_v33 = vrot.slane %v522_v24, 7  ;;  %v509_v40 = vmul.f32 %v9416_v29, %v469_v22  ;;  %v573_v52 = vrot.slane %v525_v31, 1 }
 0x166   :  { %v472_v36 = vmax.f32 %v445_v19, %v462_v26  ;;  %v448_v37 = vpop.f32.mrb[8].mxu0  ;;  %v531_v39 = vrot.slane %v529_v28, 7  ;;  %v510_v45 = vmul.f32 %v9416_v29, %v470_v25  ;;  %v577_v56 = vrot.slane %v532_v38, 1 }
 0x167   :  { %v511_v41 = vmul.f32 %v9419_v35, %v471_v30  ;;  %v449_v42 = vadd.f32 %v448_v37, %v273_v27  ;;  %v450_v43 = vpop.f32.mrb[9].mxu0  ;;  %v9423_v44 = vor.u32 %v525_v31, %v524_v33  ;;  %v574_v4 = vor.u32 %v573_v52, %v522_v24  ;;  %v8489_v52 = vld [vmem:[%s9358_s23 + $0x124] ss:$8 sps:$4 sm:$0xff]  }
 0x168   :  { %v512_v46 = vmul.f32 %v9419_v35, %v472_v36  ;;  %v451_v47 = vadd.f32 %v450_v43, %v274_v32  ;;  %v452_v48 = vpop.f32.mrb[10].mxu0  ;;  %v9427_v49 = vor.u32 %v532_v38, %v531_v39  ;;  %v578_v7 = vor.u32 %v577_v56, %v529_v28  ;;  %v8490_v56 = vld [vmem:[%s9358_s23 + $0x130] ss:$8 sps:$4 sm:$0xff]  }
 0x169   :  { %v463_v50 = vmul.f32 0.2, %v449_v42  ;;  %v517_v51 = vpack.c.bf16 %v511_v41, %v509_v40  ;;  %v453_v53 = vpop.f32.mrb[11].mxu0  ;;  %v8486_v48 = vld [vmem:[%s9358_s23 + $0x114] ss:$8 sps:$4 sm:$0xff]  }
 0x16a   :  { %v518_v54 = vpack.c.bf16 %v512_v46, %v510_v45  ;;  %v464_v55 = vmul.f32 0.2, %v451_v47  ;;  %v572_v45 = vsel %vm9336_vm6, 0, %v9427_v49  ;;  %v8481_v46 = vld [vmem:[%s9358_s23 + $0x100] ss:$8 sps:$4 sm:$0xff]  }
 0x16b   :  { %v473_v58 = vmax.f32 %v449_v42, %v463_v50  ;;  %603 = vrot.lane.b32.xlu1 %v517_v51, %s9235_s16  ;;  %v539_v59 = vshll.u32 %v517_v51, 16  ;;  %v536_v60 = vshrl.u32 %v517_v51, 16  ;;  %v571_v50 = vsel %vm9336_vm6, 0, %v9423_v44  ;;  %v8484_v51 = vld [vmem:[%s9358_s23 + $0x110] ss:$8 sps:$4 sm:$0xff]  }
 0x16c   :  { %v474_v63 = vmax.f32 %v451_v47, %v464_v55  ;;  %v547_v0 = vshll.u32 %v518_v54, 16  ;;  %v544_v1 = vshrl.u32 %v518_v54, 16  ;;  %v8487_v53 = vld [vmem:[%s9358_s23 + $0x120] ss:$8 sps:$4 sm:$0xff]   ;;  %v8492_v55 = vld [vmem:[%s9358_s23 + $0x134] ss:$8 sps:$4 sm:$0xff]  }
 0x16d   :  { %v513_v3 = vmul.f32 %v9430_v61, %v473_v58  ;;  %v575_v5 = vrot.slane %v539_v59, 1  ;;  %v538_v6 = vrot.slane %v536_v60, 7  ;;  %v8495_v58 = vld [vmem:[%s9358_s23 + $0x144] ss:$8 sps:$4 sm:$0xff]  }
 0x16e   :  { %v579_v8 = vrot.slane %v547_v0, 1  ;;  %v514_v9 = vmul.f32 %v9430_v61, %v474_v63  ;;  %v546_v10 = vrot.slane %v544_v1, 7  ;;  %v8493_v63 = vld [vmem:[%s9358_s23 + $0x140] ss:$8 sps:$4 sm:$0xff]  }
 0x16f   :  { %601 = vrot.lane.b32.xlu1 %v516_v21, %s9235_s16  ;;  %v519_v11 = vpack.c.bf16 %v513_v3, %v513_v3  ;;  %v576_v12 = vsel %vm197_vm0, %v574_v4, %v575_v5  ;;  %v541_v13 = vor.u32 %v539_v59, %v538_v6  ;;  %v581_v21 = vor.u32 %v575_v5, %v536_v60  ;;  %v8496_v5 = vld [vmem:[%s9358_s23 + $0x150] ss:$8 sps:$4 sm:$0xff]  }
 0x170   :  { %v580_v14 = vsel %vm197_vm0, %v578_v7, %v579_v8  ;;  %v520_v15 = vpack.c.bf16 %v514_v9, %v514_v9  ;;  %v549_v16 = vor.u32 %v547_v0, %v546_v10  ;;  %v584_v27 = vor.u32 %v579_v8, %v544_v1  ;;  %v8498_v0 = vld [vmem:[%s9358_s23 + $0x154] ss:$8 sps:$4 sm:$0xff]   ;;  %v8499_v7 = vld [vmem:[%s9358_s23 + $0x160] ss:$8 sps:$4 sm:$0xff]   ;;  %v8502_v9 = vld [vmem:[%s9358_s23 + $0x170] ss:$8 sps:$4 sm:$0xff]  }
 0x171   :  { %607 = vrot.lane.b32.xlu0 %v519_v11, %s9235_s16  ;;  %v555_v17 = vshll.u32 %v519_v11, 16  ;;  %v552_v18 = vshrl.u32 %v519_v11, 16  ;;  %v542_v19 = vsel %vm169_vm4, %v524_v33, %v541_v13  ;;  %v8504_v8 = vld [vmem:[%s9358_s23 + $0x174] ss:$8 sps:$4 sm:$0xff]   ;;  %v8505_v11 = vld [vmem:[%s9358_s23 + $0x180] ss:$8 sps:$4 sm:$0xff]  }
 0x172   :  { %v563_v22 = vshll.u32 %v520_v15, 16  ;;  %v560_v23 = vshrl.u32 %v520_v15, 16  ;;  %v550_v24 = vsel %vm169_vm4, %v531_v39, %v549_v16  ;;  %v8508_v13 = vld [vmem:[%s9358_s23 + $0x190] ss:$8 sps:$4 sm:$0xff]   ;;  %v8511_v16 = vld [vmem:[%s9358_s23 + $0x1a0] ss:$8 sps:$4 sm:$0xff]  }
 0x173   :  { %619 = vrot.lane.b32.xlu1 %v580_v14, %s9238_s28  ;;  %v582_v25 = vrot.slane %v555_v17, 1  ;;  %v554_v26 = vrot.slane %v552_v18, 7  ;;  %v8513_v14 = vld [vmem:[%s9358_s23 + $0x1a4] ss:$8 sps:$4 sm:$0xff]  }
 0x174   :  { %v585_v28 = vrot.slane %v563_v22, 1  ;;  %v562_v30 = vrot.slane %v560_v23, 7 }
 0x175   :  { %617 = vrot.lane.b32.xlu0 %v576_v12, %s9238_s28  ;;  %v583_v31 = vsel %vm197_vm0, %v581_v21, %v582_v25  ;;  %v557_v32 = vor.u32 %v555_v17, %v554_v26  ;;  %v587_v40 = vor.u32 %v582_v25, %v552_v18  ;;  %v8510_v12 = vld [vmem:[%s9358_s23 + $0x194] ss:$8 sps:$4 sm:$0xff]  }
 0x176   :  { %v586_v33 = vsel %vm197_vm0, %v584_v27, %v585_v28  ;;  %v565_v36 = vor.u32 %v563_v22, %v562_v30  ;;  %v588_v39 = vor.u32 %v585_v28, %v560_v23 }
 0x177   :  { %621 = vrot.lane.b32.xlu1 %v583_v31, %s9238_s28  ;;  %v558_v37 = vsel %vm169_vm4, %v538_v6, %v557_v32  ;;  %v591_v42 = vsel %vm9295_vm3, %v587_v40, 0  ;;  %v8501_v6 = vld [vmem:[%s9358_s23 + $0x164] ss:$8 sps:$4 sm:$0xff]   ;;  %v715_v40 = vld [vmem:[%s9522_s10 + $0x10] sm:$0xff] }
 0x178   :  { %v566_v38 = vsel %vm169_vm4, %v546_v10, %v565_v36  ;;  %v592_v41 = vsel %vm9295_vm3, %v588_v39, 0  ;;  %v8507_v10 = vld [vmem:[%s9358_s23 + $0x184] ss:$8 sps:$4 sm:$0xff]   ;;  %v8523_v36 = vld [vmem:[%s9511_s6 + $0x58] sm:$0xff]  }
 0x179   :  { %605 = vrot.lane.b32.xlu0 %v518_v54, %s9235_s16  ;;  %v8519_v32 = vld [vmem:[%s9511_s6 + $0x48] sm:$0xff]  }
 0x17b   :  { %609 = vrot.lane.b32.xlu1 %v520_v15, %s9235_s16 }
 0x17d   :  { %623 = vrot.lane.b32.xlu0 %v586_v33, %s9238_s28  ;;  %v8521_v33 = vld [vmem:[%s9511_s6 + $0x50] sm:$0xff]  }
 0x17f   :  { %627 = vrot.lane.b32.xlu1 %v592_v41, %s9238_s28 }
 0x181   :  { %625 = vrot.lane.b32.xlu0 %v591_v42, %s9238_s28 }
 0x1d5   :  { %v9456_v43 = vpop.permute.xlu0 %599 }
 0x1d6   :  { %v636_v47 = vsel %vm611_vm10, %v572_v45, %v9456_v43 }
 0x1d7   :  { %1035 = vmatprep.mubr.bf16.mxu1 %v636_v47 }
 0x1d8   :  { %1036 = vmatmul.mubr.bf16.vlgmr.msra.gmra.mrb[0].mxu1 %v571_v50 }
 0x1d9   :  { %1065 = vmatpush1.bf16.msra.mxu1 %v8481_v46 }
 0x1da   :  { %1066 = vmatprep.subr.bf16.mxu1 %v8486_v48 }
 0x1dd   :  { %1067 = vmatpush1.bf16.msra.mxu1 %v8484_v51  ;;  %v604_v49 = vpop.permute.xlu1 %603 }
 0x1de   :  { %v640_v54 = vsel %vm611_vm10, %v550_v24, %v604_v49  ;;  %1068 = vmatprep.subr.bf16.mxu1 %v8489_v52 }
 0x1df   :  { %1045 = vmatprep.mubr.bf16.mxu1 %v640_v54 }
 0x1e0   :  { %1046 = vmatmul.mubr.bf16.gmra.mrb[4].mxu1 %v542_v19 }
 0x1e1   :  { %1069 = vmatpush1.bf16.msra.mxu1 %v8487_v53  ;;  %v602_v44 = vpop.permute.xlu1 %601 }
 0x1e2   :  { %1070 = vmatprep.subr.bf16.mxu1 %v8492_v55  ;;  %v612_v19 = vsel %vm611_vm10, %v9456_v43, %v602_v44  ;;  %v716_v43 = vld [vmem:[%s9522_s10 + $0x18] sm:$0xff]  ;;  %v717_v44 = vld [vmem:[%s9522_s10 + $0x20] sm:$0xff] }
 0x1e3   :  { %v608_v59 = vpop.permute.xlu0 %607 }
 0x1e4   :  { %v644_v60 = vsel %vm611_vm10, %v566_v38, %v608_v59  ;;  %v714_v38 = vld [vmem:[%s9522_s10 + $0x8] sm:$0xff] }
 0x1e5   :  { %1071 = vmatpush1.bf16.msra.mxu1 %v8490_v56  ;;  %1055 = vmatprep.mubr.bf16.mxu1 %v644_v60  ;;  %v620_v1 = vpop.permute.xlu1 %619 }
 0x1e6   :  { %1072 = vmatprep.subr.bf16.mxu1 %v8495_v58  ;;  %v718_v58 = vld [vmem:[%s9522_s10 + $0x28] sm:$0xff] }
 0x1e7   :  { %v618_v3 = vpop.permute.xlu0 %617 }
 0x1e8   :  { %1056 = vmatmul.mubr.bf16.gmra.mrb[8].mxu1 %v558_v37  ;;  %v630_v4 = vsel %vm629_vm11, %v618_v3, %v620_v1  ;;  %v649_v22 = vsel %vm629_vm11, %v612_v19, %v618_v3  ;;  %v713_v37 = vld [vmem:[%s9522_s10] sm:$0xff] }
 0x1e9   :  { %1073 = vmatpush1.bf16.msra.mxu1 %v8493_v63  ;;  %7525 = vmatprep.mubr.msk.bf16.mxu1 %vm993_vm12, %v630_v4  ;;  %v622_v17 = vpop.permute.xlu1 %621  ;;  %v719_v63 = vld [vmem:[%s9522_s10 + $0x30] sm:$0xff] }
 0x1ea   :  { %1074 = vmatprep.subr.bf16.mxu1 %v8498_v0 }
 0x1eb   :  { %v606_v15 = vpop.permute.xlu0 %605 }
 0x1ec   :  { %v613_v21 = vsel %vm611_vm10, %v604_v49, %v606_v15 }
 0x1ed   :  { %1075 = vmatpush1.bf16.msra.mxu1 %v8496_v5  ;;  %v610_v24 = vpop.permute.xlu1 %609  ;;  %v653_v27 = vsel %vm629_vm11, %v613_v21, %v622_v17  ;;  %v720_v5 = vld [vmem:[%s9522_s10 + $0x38] sm:$0xff] }
 0x1ee   :  { %1076 = vmatprep.subr.bf16.mxu1 %v8501_v6  ;;  %v614_v30 = vsel %vm611_vm10, %v608_v59, %v610_v24  ;;  %v722_v24 = vld [vmem:[%s9522_s10 + $0x48] sm:$0xf] }
 0x1ef   :  { %v624_v18 = vpop.permute.xlu0 %623 }
 0x1f0   :  { %v631_v23 = vsel %vm629_vm11, %v622_v17, %v624_v18 }
 0x1f1   :  { %1077 = vmatpush1.bf16.msra.mxu1 %v8499_v7  ;;  %v628_v26 = vpop.permute.xlu1 %627 }
 0x1f2   :  { %1078 = vmatprep.subr.bf16.mxu1 %v8504_v8 }
 0x1f3   :  { %v626_v25 = vpop.permute.xlu0 %625 }
 0x1f4   :  { %v632_v28 = vsel %vm629_vm11, %v626_v25, %v628_v26  ;;  %v657_v31 = vsel %vm629_vm11, %v614_v30, %v626_v25 }
 0x1f5   :  { %1079 = vmatpush1.bf16.msra.mxu1 %v8502_v9 }
 0x1f6   :  { %1080 = vmatprep.subr.bf16.mxu1 %v8507_v10 }
 0x1f9   :  { %1081 = vmatpush1.bf16.msra.mxu1 %v8505_v11 }
 0x1fa   :  { %1082 = vmatprep.subr.bf16.mxu1 %v8510_v12 }
 0x1fd   :  { %1083 = vmatpush1.bf16.msra.mxu1 %v8508_v13 }
 0x1fe   :  { %1084 = vmatprep.subr.bf16.mxu1 %v8513_v14 }
 0x201   :  { %1085 = vmatpush1.bf16.msra.mxu1 %v8511_v16 }
 0x202   :  { %1515 = vmatprep.subr.bf16.mxu1 %v9234_v34 }
 0x204   :  { %1097 = vmatmul.mubr.bf16.vlgmr.msra.gmra.mrb[0].mxu1 %v649_v22 }
 0x205   :  { %7526 = vmatprep.mubr.msk.bf16.mxu1 %vm993_vm12, %v631_v23  ;;  %1516 = vmatpush1.bf16.msra.mxu1 %v8519_v32 }
 0x206   :  { %1517 = vmatprep.subr.bf16.mxu1 %v9234_v34 }
 0x209   :  { %1518 = vmatpush1.bf16.msra.mxu1 %v8521_v33 }
 0x20a   :  { %1519 = vmatprep.subr.bf16.mxu1 %v9234_v34 }
 0x20c   :  { %1107 = vmatmul.mubr.bf16.gmra.mrb[4].mxu1 %v653_v27 }
 0x20d   :  { %7527 = vmatprep.mubr.msk.bf16.mxu1 %vm993_vm12, %v632_v28  ;;  %1520 = vmatpush1.bf16.msra.mxu1 %v8523_v36 }
 0x20e   :  { %1521 = vmatprep.subr.bf16.mxu1 %v9234_v34 }
 0x214   :  { %1117 = vmatmul.mubr.bf16.gmra.mrb[8].mxu1 %v657_v31 }
 0x2d7   :  { %v1098_v39 = vpop.f32.mrb[0].mxu1 }
 0x2d8   :  { %v8216_v41 = vadd.f32 %v1098_v39, %v713_v37  ;;  %v1100_v42 = vpop.f32.mrb[1].mxu1 }
 0x2d9   :  { %v8217_v45 = vadd.f32 %v1100_v42, %v714_v38  ;;  %v1102_v46 = vpop.f32.mrb[2].mxu1 }
 0x2da   :  { %v1125_v47 = vmul.f32 0.2, %v8216_v41  ;;  %v8218_v48 = vadd.f32 %v1102_v46, %v715_v40  ;;  %v1104_v50 = vpop.f32.mrb[3].mxu1 }
 0x2db   :  { %v1126_v51 = vmul.f32 0.2, %v8217_v45  ;;  %v8219_v52 = vadd.f32 %v1104_v50, %v716_v43 }
 0x2dc   :  { %v1135_v49 = vmax.f32 %v8216_v41, %v1125_v47  ;;  %v1127_v53 = vmul.f32 0.2, %v8218_v48 }
 0x2dd   :  { %v1136_v54 = vmax.f32 %v8217_v45, %v1126_v51  ;;  %v1128_v55 = vmul.f32 0.2, %v8219_v52 }
 0x2de   :  { %v1137_v56 = vmax.f32 %v8218_v48, %v1127_v53  ;;  %v1145_v0 = vmul.f32 %v1135_v49, %v9406_v2 }
 0x2df   :  { %v1138_v59 = vmax.f32 %v8219_v52, %v1128_v55  ;;  %v1108_v60 = vpop.f32.mrb[4].mxu1  ;;  %v1146_v6 = vmul.f32 %v1136_v54, %v9406_v2  ;;  %v721_v2 = vld [vmem:[%s9522_s10 + $0x40] sm:$0xf]  ;;  %s9250_s10 = smov 9  }
 0x2e0   :  { %v1147_v1 = vmul.f32 %v1137_v56, %v9403_v62  ;;  %v8220_v3 = vadd.f32 %v1108_v60, %v717_v44  ;;  %v1110_v4 = vpop.f32.mrb[5].mxu1  ;;  %s7414_s13 = sld [smem:[%s10989_s0 + %s9250_s10]]   ;;  %s9260_s10 = smov 25  }
 0x2e1   :  { %v1148_v7 = vmul.f32 %v1138_v59, %v9403_v62  ;;  %v8221_v8 = vadd.f32 %v1110_v4, %v718_v58  ;;  %v1112_v9 = vpop.f32.mrb[6].mxu1  ;;  %v8517_v4 = vld [vmem:[%s9506_s2 + $0x14] ss:$0 sps:$4 sm:$0x33]  }
 0x2e2   :  { %v9536_v10 = vpack.c.bf16 %v1147_v1, %v1145_v0  ;;  %v1129_v11 = vmul.f32 0.2, %v8220_v3  ;;  %v8222_v12 = vadd.f32 %v1112_v9, %v719_v63  ;;  %v1114_v13 = vpop.f32.mrb[7].mxu1  ;;  %v8515_v63 = vld [vmem:[%s9506_s2 + $0x8] ss:$0 sps:$4 sm:$0x33]  }
 0x2e3   :  { %v9538_v14 = vpack.c.bf16 %v1148_v7, %v1146_v6  ;;  %v1130_v15 = vmul.f32 0.2, %v8221_v8  ;;  %v8223_v16 = vadd.f32 %v1114_v13, %v720_v5  ;;  %v8516_v0 = vld [vmem:[%s9506_s2 + $0xc] sm:$0xff]   ;;  %v8518_v1 = vld [vmem:[%s9511_s6] sm:$0xff]   ;;  %v8524_v6 = vld [vmem:[%s9511_s6 + $0x18] sm:$0xff]  }
 0x2e4   :  { %v1139_v17 = vmax.f32 %v8220_v3, %v1129_v11  ;;  %v1131_v18 = vmul.f32 0.2, %v8222_v12  ;;  %v8520_v3 = vld [vmem:[%s9511_s6 + $0x8] sm:$0xff]   ;;  %v8522_v5 = vld [vmem:[%s9511_s6 + $0x10] sm:$0xff]   ;;  %v8525_v7 = vld [vmem:[%s9511_s6 + $0x60] sm:$0xff]  }
 0x2e5   :  { %v1140_v19 = vmax.f32 %v8221_v8, %v1130_v15  ;;  %v1132_v22 = vmul.f32 0.2, %v8223_v16  ;;  %1186 = vmatprep.subr.bf16.mxu0 %v9538_v14  ;;  %v5483_v62 = vshrl.u32 %v9538_v14, 16  ;;  %v5486_v26 = vshll.u32 %v9538_v14, 16  ;;  %1522 = vmatpush1.bf16.msra.mxu1 %v8525_v7  ;;  %v8526_v8 = vld [vmem:[%s9511_s6 + $0x20] sm:$0xff]   ;;  %v8527_v9 = vld [vmem:[%s9511_s6 + $0x68] sm:$0xff]  }
 0x2e6   :  { %v1141_v23 = vmax.f32 %v8222_v12, %v1131_v18  ;;  %1187 = vmatpush1.bf16.msra.mxu0 %v9536_v10  ;;  %v1149_v28 = vmul.f32 %v1139_v17, %v9416_v29  ;;  %1523 = vmatprep.subr.bf16.mxu1 %v9234_v34  ;;  %v8528_v11 = vld [vmem:[%s9511_s6 + $0x28] sm:$0xff]   ;;  %v8529_v12 = vld [vmem:[%s9511_s6 + $0x70] sm:$0xff]   ;;  %v8531_v15 = vld [vmem:[%s9511_s6 + $0x78] sm:$0xff]  }
 0x2e7   :  { %v1142_v21 = vmax.f32 %v8223_v16, %v1132_v22  ;;  %v1118_v25 = vpop.f32.mrb[8].mxu1  ;;  %v5485_v27 = vrot.slane %v5483_v62, 7  ;;  %v1150_v33 = vmul.f32 %v1140_v19, %v9416_v29  ;;  %v8530_v13 = vld [vmem:[%s9511_s6 + $0x30] sm:$0xff]   ;;  %v8532_v16 = vld [vmem:[%s9511_s6 + $0x38] sm:$0xff]   ;;  %v8533_v17 = vld [vmem:[%s9511_s6 + $0x80] sm:$0xff]  }
 0x2e8   :  { %v1151_v30 = vmul.f32 %v1141_v23, %v9419_v35  ;;  %v8224_v31 = vadd.f32 %v1118_v25, %v721_v2  ;;  %v1120_v32 = vpop.f32.mrb[9].mxu1  ;;  %v8534_v18 = vld [vmem:[%s9511_s6 + $0x40] sm:$0xff]   ;;  %v8535_v19 = vld [vmem:[%s9511_s6 + $0x88] sm:$0xff]   ;;  %s9249_s6 = smov 12  }
 0x2e9   :  { %v1152_v36 = vmul.f32 %v1142_v21, %v9419_v35  ;;  %v8225_v37 = vadd.f32 %v1120_v32, %v722_v24  ;;  %v1122_v38 = vpop.f32.mrb[10].mxu1  ;;  %v9554_v39 = vor.u32 %v5486_v26, %v5485_v27  ;;  %1524 = vmatpush1.bf16.msra.mxu1 %v8527_v9  ;;  %v8548_v7 = vld [vmem:[%s9643_s14 + $0x40] ss:$8 sps:$4 sm:$0xff]   ;;  %v8551_v9 = vld [vmem:[%s9643_s14 + $0x50] ss:$8 sps:$4 sm:$0xff]   ;;  %s9822_s9 = sld [smem:[%s10989_s0 + %s9249_s6]]   ;;  %s9259_s6 = smov 26  }
 0x2ea   :  { %v9556_v40 = vpack.c.bf16 %v1151_v30, %v1149_v28  ;;  %v1133_v41 = vmul.f32 0.2, %v8224_v31  ;;  %v1123_v42 = vpop.f32.mrb[11].mxu1  ;;  %1525 = vmatprep.subr.bf16.mxu1 %v9234_v34 }
 0x2eb   :  { %v9558_v43 = vpack.c.bf16 %v1152_v36, %v1150_v33  ;;  %v1134_v45 = vmul.f32 0.2, %v8225_v37 }
 0x2ec   :  { %v1143_v46 = vmax.f32 %v8224_v31, %v1133_v41 }
 0x2ed   :  { %v1144_v47 = vmax.f32 %v8225_v37, %v1134_v45  ;;  %1188 = vmatprep.subr.bf16.mxu0 %v9558_v43  ;;  %v5498_v29 = vshrl.u32 %v9558_v43, 16  ;;  %v5501_v50 = vshll.u32 %v9558_v43, 16  ;;  %1526 = vmatpush1.bf16.msra.mxu1 %v8529_v12  ;;  %v8554_v12 = vld [vmem:[%s9643_s14 + $0x60] ss:$8 sps:$4 sm:$0xff]  }
 0x2ee   :  { %v1153_v35 = vmul.f32 %v1143_v46, %v9430_v61  ;;  %1189 = vmatpush1.bf16.msra.mxu0 %v9556_v40  ;;  %1527 = vmatprep.subr.bf16.mxu1 %v9234_v34 }
 0x2ef   :  { %v1154_v48 = vmul.f32 %v1144_v47, %v9430_v61  ;;  %v5500_v51 = vrot.slane %v5498_v29, 7  ;;  %v8514_v61 = vld [vmem:[%s9506_s2] sm:$0xff]   ;;  %s9248_s2 = smov 11  }
 0x2f0   :  { %v9568_v52 = vpack.c.bf16 %v1153_v35, %v1153_v35  ;;  %s9817_s5 = sld [smem:[%s10989_s0 + %s9248_s2]]  }
 0x2f1   :  { %v9570_v49 = vpack.c.bf16 %v1154_v48, %v1154_v48  ;;  %v5503_v53 = vor.u32 %v5501_v50, %v5500_v51  ;;  %1528 = vmatpush1.bf16.msra.mxu1 %v8531_v15  ;;  %v8557_v15 = vld [vmem:[%s9643_s14 + $0x70] ss:$8 sps:$4 sm:$0xff]  }
 0x2f2   :  { %v1181_v54 = vsel %vm207_vm2, %v9568_v52, 0  ;;  %1529 = vmatprep.subr.bf16.mxu1 %v9234_v34 }
 0x2f3   :  { %7530 = vmatprep.subr.msk.bf16.mxu0 %vm207_vm2, %v9570_v49  ;;  %v5512_v55 = vshrl.u32 %v9570_v49, 16  ;;  %v9581_v44 = vsel %vm169_vm4, %v5485_v27, %v5503_v53  ;;  %v5515_v56 = vshll.u32 %v9570_v49, 16 }
 0x2f4   :  { %1191 = vmatpush1.bf16.msra.mxu0 %v1181_v54 }
 0x2f5   :  { %1255 = vmatprep.subr.bf16.mxu0 %v9538_v14  ;;  %v5514_v58 = vrot.slane %v5512_v55, 7  ;;  %1530 = vmatpush1.bf16.msra.mxu1 %v8533_v17  ;;  %v8560_v17 = vld [vmem:[%s9643_s14 + $0x80] ss:$8 sps:$4 sm:$0xff]  }
 0x2f6   :  { %1531 = vmatprep.subr.bf16.mxu1 %v9234_v34 }
 0x2f7   :  { %7531 = vmatmul.mubr.msk.bf16.vlgmr.msra.gmra.mrb[12].mxu0 %vm1172_vm13, %v8514_v61  ;;  %v5517_v59 = vor.u32 %v5515_v56, %v5514_v58  ;;  %v8536_v58 = vld [vmem:[%s9643_s14] ss:$8 sps:$4 sm:$0xff]  }
 0x2f8   :  { %1256 = vmatpush1.bf16.msra.mxu0 %v9536_v10  ;;  %1228 = vmatprep.mubr.bf16.mxu0 %v9234_v34 }
 0x2f9   :  { %1257 = vmatprep.subr.bf16.mxu0 %v9558_v43  ;;  %v9594_v60 = vsel %vm169_vm4, %v5500_v51, %v5517_v59  ;;  %1532 = vmatpush1.bf16.msra.mxu1 %v8535_v19  ;;  %v8538_v59 = vld [vmem:[%s9643_s14 + $0x4] ss:$8 sps:$4 sm:$0xff]   ;;  %v8563_v19 = vld [vmem:[%s9643_s14 + $0x90] ss:$8 sps:$4 sm:$0xff]  }
 0x2fc   :  { %1258 = vmatpush1.bf16.msra.mxu0 %v9556_v40 }
 0x2fd   :  { %7538 = vmatprep.subr.msk.bf16.mxu0 %vm207_vm2, %v9570_v49 }
 0x2ff   :  { %7532 = vmatmul.mubr.msk.bf16.gmra.mrb[16].mxu0 %vm1172_vm13, %v8515_v63  ;;  %v8541_v63 = vld [vmem:[%s9643_s14 + $0x14] ss:$8 sps:$4 sm:$0xff]  }
 0x300   :  { %1260 = vmatpush1.bf16.msra.mxu0 %v1181_v54  ;;  %1287 = vmatprep.mubr.bf16.mxu0 %v9234_v34 }
 0x301   :  { %1394 = vmatprep.subr.bf16.mxu0 %v9234_v34 }
 0x307   :  { %7539 = vmatmul.mubr.msk.bf16.vlgmr.msra.gmra.mrb[20].mxu0 %vm1172_vm13, %v8516_v0  ;;  %v8539_v0 = vld [vmem:[%s9643_s14 + $0x10] ss:$8 sps:$4 sm:$0xff]  }
 0x308   :  { %1297 = vmatprep.mubr.bf16.mxu0 %v9234_v34  ;;  %1395 = vmatpush1.bf16.msra.mxu0 %v8518_v1  ;;  %v8544_v1 = vld [vmem:[%s9643_s14 + $0x24] ss:$8 sps:$4 sm:$0xff]  }
 0x309   :  { %1396 = vmatprep.subr.bf16.mxu0 %v9234_v34 }
 0x30c   :  { %1397 = vmatpush1.bf16.msra.mxu0 %v8520_v3  ;;  %v8542_v3 = vld [vmem:[%s9643_s14 + $0x20] ss:$8 sps:$4 sm:$0xff]  }
 0x30d   :  { %1398 = vmatprep.subr.bf16.mxu0 %v9234_v34 }
 0x30f   :  { %7540 = vmatmul.mubr.msk.bf16.gmra.mrb[24].mxu0 %vm1172_vm13, %v8517_v4  ;;  %v8547_v4 = vld [vmem:[%s9643_s14 + $0x34] ss:$8 sps:$4 sm:$0xff]   ;;  %vm2870_vm13 = vsmask.f32 5376 }
 0x310   :  { %1399 = vmatpush1.bf16.msra.mxu0 %v8522_v5  ;;  %v8545_v5 = vld [vmem:[%s9643_s14 + $0x30] ss:$8 sps:$4 sm:$0xff]  }
 0x311   :  { %1400 = vmatprep.subr.bf16.mxu0 %v9234_v34 }
 0x314   :  { %1401 = vmatpush1.bf16.msra.mxu0 %v8524_v6  ;;  %v8550_v6 = vld [vmem:[%s9643_s14 + $0x44] ss:$8 sps:$4 sm:$0xff]  }
 0x315   :  { %1402 = vmatprep.subr.bf16.mxu0 %v9234_v34 }
 0x318   :  { %1403 = vmatpush1.bf16.msra.mxu0 %v8526_v8  ;;  %v8553_v8 = vld [vmem:[%s9643_s14 + $0x54] ss:$8 sps:$4 sm:$0xff]  }
 0x319   :  { %1404 = vmatprep.subr.bf16.mxu0 %v9234_v34 }
 0x31c   :  { %1405 = vmatpush1.bf16.msra.mxu0 %v8528_v11  ;;  %v8556_v11 = vld [vmem:[%s9643_s14 + $0x64] ss:$8 sps:$4 sm:$0xff]  }
 0x31d   :  { %1406 = vmatprep.subr.bf16.mxu0 %v9234_v34 }
 0x320   :  { %1407 = vmatpush1.bf16.msra.mxu0 %v8530_v13  ;;  %v8559_v13 = vld [vmem:[%s9643_s14 + $0x74] ss:$8 sps:$4 sm:$0xff]  }
 0x321   :  { %1408 = vmatprep.subr.bf16.mxu0 %v9234_v34 }
 0x324   :  { %1409 = vmatpush1.bf16.msra.mxu0 %v8532_v16  ;;  %v8562_v16 = vld [vmem:[%s9643_s14 + $0x84] ss:$8 sps:$4 sm:$0xff]  }
 0x325   :  { %1410 = vmatprep.subr.bf16.mxu0 %v9234_v34 }
 0x328   :  { %1411 = vmatpush1.bf16.msra.mxu0 %v8534_v18  ;;  %v8565_v18 = vld [vmem:[%s9643_s14 + $0x94] ss:$8 sps:$4 sm:$0xff]  }
 0x329   :  { %1807 = vmatprep.subr.bf16.mxu0 %v8538_v59 }
 0x3ca   :  { %v1220_v22 = vpop.f32.mrb[12].mxu0 }
 0x3cb   :  { %v1222_v2 = vpop.f32.mrb[13].mxu0 }
 0x3cc   :  { %v1224_v23 = vpop.f32.mrb[14].mxu0 }
 0x3cd   :  { %v1226_v24 = vpop.f32.mrb[15].mxu0 }
 0x3d2   :  { %v1230_v21 = vpop.f32.mrb[16].mxu0 }
 0x3d3   :  { %v1232_v25 = vpop.f32.mrb[17].mxu0 }
 0x3d4   :  { %v1234_v27 = vpop.f32.mrb[18].mxu0 }
 0x3d5   :  { %v1235_v28 = vpop.f32.mrb[19].mxu0  ;;  %v8577_v27 = vld [vmem:[%s9643_s14 + $0xd4] ss:$8 sps:$4 sm:$0xff]  }
 0x3d6   :  { %v8575_v28 = vld [vmem:[%s9643_s14 + $0xd0] ss:$8 sps:$4 sm:$0xff]  }
 0x3da   :  { %v1289_v30 = vpop.f32.mrb[20].mxu0 }
 0x3db   :  { %v1306_v31 = vmax.f32 %v1220_v22, %v1289_v30  ;;  %v1291_v32 = vpop.f32.mrb[21].mxu0  ;;  %v8568_v22 = vld [vmem:[%s9643_s14 + $0xa4] ss:$8 sps:$4 sm:$0xff]  }
 0x3dc   :  { %v1307_v33 = vmax.f32 %v1222_v2, %v1291_v32  ;;  %v1293_v36 = vpop.f32.mrb[22].mxu0  ;;  %v8566_v2 = vld [vmem:[%s9643_s14 + $0xa0] ss:$8 sps:$4 sm:$0xff]   ;;  %v8580_v30 = vld [vmem:[%s9643_s14 + $0xe4] ss:$8 sps:$4 sm:$0xff]  }
 0x3dd   :  { %v1308_v37 = vmax.f32 %v1224_v23, %v1293_v36  ;;  %v1295_v38 = vpop.f32.mrb[23].mxu0  ;;  %v8571_v23 = vld [vmem:[%s9643_s14 + $0xb4] ss:$8 sps:$4 sm:$0xff]  }
 0x3de   :  { %v1309_v41 = vmax.f32 %v1226_v24, %v1295_v38  ;;  %v8569_v24 = vld [vmem:[%s9643_s14 + $0xb0] ss:$8 sps:$4 sm:$0xff]  }
 0x3df   :  { %v1312_v42 = vpack.c.bf16 %v1308_v37, %v1306_v31 }
 0x3e0   :  { %v1313_v45 = vpack.c.bf16 %v1309_v41, %v1307_v33  ;;  %v8578_v33 = vld [vmem:[%s9643_s14 + $0xe0] ss:$8 sps:$4 sm:$0xff]  }
 0x3e2   :  { %v1299_v46 = vpop.f32.mrb[24].mxu0  ;;  %7550 = vmatprep.mubr.msk.bf16.mxu0 %vm611_vm10, %v1313_v45  ;;  %7579 = vmatprep.mubr.msk.bf16.mxu1 %vm611_vm10, %v1313_v45 }
 0x3e3   :  { %v1310_v47 = vmax.f32 %v1230_v21, %v1299_v46  ;;  %v1301_v35 = vpop.f32.mrb[25].mxu0  ;;  %1427 = vmatmul.mubr.bf16.vlgmr.msra.gmra.mrb[28].mxu0 %v1312_v42  ;;  %1548 = vmatmul.mubr.bf16.vlgmr.msra.gmra.mrb[12].mxu1 %v1312_v42  ;;  %v8574_v21 = vld [vmem:[%s9643_s14 + $0xc4] ss:$8 sps:$4 sm:$0xff]  }
 0x3e4   :  { %v1311_v48 = vmax.f32 %v1232_v25, %v1301_v35  ;;  %v1303_v51 = vpop.f32.mrb[26].mxu0  ;;  %1808 = vmatpush1.bf16.msra.mxu0 %v8536_v58  ;;  %v8572_v25 = vld [vmem:[%s9643_s14 + $0xc0] ss:$8 sps:$4 sm:$0xff]   ;;  %s9251_s14 = smov 20  }
 0x3e5   :  { %v1304_v53 = vpop.f32.mrb[27].mxu0  ;;  %v1314_v61 = vpack.c.bf16 %v1310_v47, %v1310_v47  ;;  %1809 = vmatprep.subr.bf16.mxu0 %v8541_v63  ;;  %s9918_s18 = sld [smem:[%s10989_s0 + %s9251_s14]]   ;;  %s9261_s14 = smov 18  }
 0x3e6   :  { %v1315_v54 = vpack.c.bf16 %v1311_v48, %v1311_v48 }
 0x3e8   :  { %7551 = vmatprep.mubr.msk.bf16.mxu0 %vm611_vm10, %v1315_v54  ;;  %7580 = vmatprep.mubr.msk.bf16.mxu1 %vm611_vm10, %v1315_v54 }
 0x3e9   :  { %1810 = vmatpush1.bf16.msra.mxu0 %v8539_v0 }
 0x3ea   :  { %1811 = vmatprep.subr.bf16.mxu0 %v8544_v1 }
 0x3eb   :  { %1435 = vmatmul.mubr.bf16.gmra.mrb[32].mxu0 %v1314_v61  ;;  %1556 = vmatmul.mubr.bf16.gmra.mrb[16].mxu1 %v1314_v61 }
 0x3ed   :  { %1812 = vmatpush1.bf16.msra.mxu0 %v8542_v3 }
 0x3ee   :  { %1813 = vmatprep.subr.bf16.mxu0 %v8547_v4 }
 0x3f1   :  { %1814 = vmatpush1.bf16.msra.mxu0 %v8545_v5 }
 0x3f2   :  { %1815 = vmatprep.subr.bf16.mxu0 %v8550_v6 }
 0x3f5   :  { %1816 = vmatpush1.bf16.msra.mxu0 %v8548_v7 }
 0x3f6   :  { %1817 = vmatprep.subr.bf16.mxu0 %v8553_v8 }
 0x3f9   :  { %1818 = vmatpush1.bf16.msra.mxu0 %v8551_v9 }
 0x3fa   :  { %1819 = vmatprep.subr.bf16.mxu0 %v8556_v11  ;;  %v1870_v11 = vld [vmem:[%s9678_s20] sm:$0xff] }
 0x3fd   :  { %1820 = vmatpush1.bf16.msra.mxu0 %v8554_v12 }
 0x3fe   :  { %1821 = vmatprep.subr.bf16.mxu0 %v8559_v13 }
 0x401   :  { %1822 = vmatpush1.bf16.msra.mxu0 %v8557_v15 }
 0x402   :  { %1823 = vmatprep.subr.bf16.mxu0 %v8562_v16 }
 0x405   :  { %1824 = vmatpush1.bf16.msra.mxu0 %v8560_v17 }
 0x406   :  { %1825 = vmatprep.subr.bf16.mxu0 %v8565_v18 }
 0x409   :  { %1826 = vmatpush1.bf16.msra.mxu0 %v8563_v19  ;;  %v1872_v19 = vld [vmem:[%s9678_s20 + $0x10] sm:$0xf] }
 0x40a   :  { %1827 = vmatprep.subr.bf16.mxu0 %v8568_v22 }
 0x40d   :  { %1828 = vmatpush1.bf16.msra.mxu0 %v8566_v2 }
 0x40e   :  { %1829 = vmatprep.subr.bf16.mxu0 %v8571_v23  ;;  %v1871_v23 = vld [vmem:[%s9678_s20 + $0x8] sm:$0xff]  ;;  %s9254_s20 = smov 19  }
 0x40f   :  { %s7424_s23 = sld [smem:[%s10989_s0 + %s9254_s20]]   ;;  %s9262_s20 = smov 27  }
 0x411   :  { %1830 = vmatpush1.bf16.msra.mxu0 %v8569_v24 }
 0x412   :  { %1831 = vmatprep.subr.bf16.mxu0 %v8574_v21 }
 0x415   :  { %1832 = vmatpush1.bf16.msra.mxu0 %v8572_v25 }
 0x416   :  { %1833 = vmatprep.subr.bf16.mxu0 %v8577_v27 }
 0x419   :  { %1834 = vmatpush1.bf16.msra.mxu0 %v8575_v28 }
 0x41a   :  { %1835 = vmatprep.subr.bf16.mxu0 %v8580_v30 }
 0x41d   :  { %1836 = vmatpush1.bf16.msra.mxu0 %v8578_v33 }
 0x4b6   :  { %v1428_v31 = vpop.f32.mrb[28].mxu0  ;;  %v1549_v32 = vpop.f32.mrb[12].mxu1 }
 0x4b7   :  { %v1563_v36 = vmax.f32 %v1428_v31, %v1549_v32  ;;  %v1430_v37 = vpop.f32.mrb[29].mxu0  ;;  %v1551_v38 = vpop.f32.mrb[13].mxu1 }
 0x4b8   :  { %v1431_v41 = vpop.f32.mrb[30].mxu0  ;;  %v1552_v42 = vpop.f32.mrb[14].mxu1  ;;  %v8583_v37 = vld [vmem:[%s9699_s25 + $0x4] ss:$8 sps:$4 sm:$0xff]   ;;  %v8586_v38 = vld [vmem:[%s9699_s25 + $0x14] ss:$8 sps:$4 sm:$0xff]  }
 0x4b9   :  { %v1564_v45 = vmax.f32 %v1431_v41, %v1552_v42  ;;  %v1433_v46 = vpop.f32.mrb[31].mxu0  ;;  %v1554_v47 = vpop.f32.mrb[15].mxu1  ;;  %2364 = vmatprep.subr.bf16.mxu1 %v8583_v37  ;;  %v8584_v41 = vld [vmem:[%s9699_s25 + $0x10] ss:$8 sps:$4 sm:$0xff]   ;;  %v8589_v42 = vld [vmem:[%s9699_s25 + $0x24] ss:$8 sps:$4 sm:$0xff]  }
 0x4ba   :  { %v8592_v46 = vld [vmem:[%s9699_s25 + $0x34] ss:$8 sps:$4 sm:$0xff]   ;;  %v8590_v47 = vld [vmem:[%s9699_s25 + $0x30] ss:$8 sps:$4 sm:$0xff]  }
 0x4bb   :  { %v1566_v35 = vpack.c.bf16 %v1564_v45, %v1563_v36  ;;  %v8581_v36 = vld [vmem:[%s9699_s25] ss:$8 sps:$4 sm:$0xff]  }
 0x4bc   :  { %2365 = vmatpush1.bf16.msra.mxu1 %v8581_v36  ;;  %v8587_v45 = vld [vmem:[%s9699_s25 + $0x20] ss:$8 sps:$4 sm:$0xff]  }
 0x4bd   :  { %v1569_v48 = vshrl.u32 %v1566_v35, 16  ;;  %v1572_v51 = vshll.u32 %v1566_v35, 16  ;;  %1594 = vrot.lane.b32.xlu0 %v1566_v35, %s9244_s21  ;;  %2366 = vmatprep.subr.bf16.mxu1 %v8586_v38  ;;  %v8595_v35 = vld [vmem:[%s9699_s25 + $0x44] ss:$8 sps:$4 sm:$0xff]  }
 0x4be   :  { %v1436_v53 = vpop.f32.mrb[32].mxu0  ;;  %v1557_v54 = vpop.f32.mrb[16].mxu1 }
 0x4bf   :  { %v1571_v61 = vrot.slane %v1569_v48, 7  ;;  %v1565_v58 = vmax.f32 %v1436_v53, %v1557_v54  ;;  %v1438_v59 = vpop.f32.mrb[33].mxu0  ;;  %v1559_v63 = vpop.f32.mrb[17].mxu1  ;;  %v1585_v6 = vrot.slane %v1572_v51, 1  ;;  %v8596_v53 = vld [vmem:[%s9699_s25 + $0x50] ss:$8 sps:$4 sm:$0xff]  }
 0x4c0   :  { %v1439_v0 = vpop.f32.mrb[34].mxu0  ;;  %v1560_v1 = vpop.f32.mrb[18].mxu1  ;;  %2367 = vmatpush1.bf16.msra.mxu1 %v8584_v41  ;;  %v8601_v54 = vld [vmem:[%s9699_s25 + $0x64] ss:$8 sps:$4 sm:$0xff]   ;;  %v8602_v59 = vld [vmem:[%s9699_s25 + $0x70] ss:$8 sps:$4 sm:$0xff]  }
 0x4c1   :  { %v1567_v3 = vpack.c.bf16 %v1565_v58, %v1565_v58  ;;  %v1440_v4 = vpop.f32.mrb[35].mxu0  ;;  %v1561_v5 = vpop.f32.mrb[19].mxu1  ;;  %v1574_v7 = vor.u32 %v1572_v51, %v1571_v61  ;;  %v1586_v13 = vor.u32 %v1585_v6, %v1569_v48  ;;  %2368 = vmatprep.subr.bf16.mxu1 %v8589_v42  ;;  %v8593_v48 = vld [vmem:[%s9699_s25 + $0x40] ss:$8 sps:$4 sm:$0xff]   ;;  %v8598_v51 = vld [vmem:[%s9699_s25 + $0x54] ss:$8 sps:$4 sm:$0xff]  }
 0x4c2   :  { %v8604_v58 = vld [vmem:[%s9699_s25 + $0x74] ss:$8 sps:$4 sm:$0xff]   ;;  %v8607_v63 = vld [vmem:[%s9699_s25 + $0x84] ss:$8 sps:$4 sm:$0xff]   ;;  %v8605_v0 = vld [vmem:[%s9699_s25 + $0x80] ss:$8 sps:$4 sm:$0xff]  }
 0x4c3   :  { %v1576_v8 = vshrl.u32 %v1567_v3, 16  ;;  %v1579_v9 = vshll.u32 %v1567_v3, 16  ;;  %1596 = vrot.lane.b32.xlu0 %v1567_v3, %s9244_s21  ;;  %v1584_v25 = vsel %vm9336_vm6, 0, %v1574_v7  ;;  %v8610_v1 = vld [vmem:[%s9699_s25 + $0x94] ss:$8 sps:$4 sm:$0xff]   ;;  %s9268_s21 = smov 34  }
 0x4c4   :  { %2369 = vmatpush1.bf16.msra.mxu1 %v8587_v45  ;;  %v8608_v3 = vld [vmem:[%s9699_s25 + $0x90] ss:$8 sps:$4 sm:$0xff]   ;;  %v8613_v4 = vld [vmem:[%s9699_s25 + $0xa4] ss:$8 sps:$4 sm:$0xff]   ;;  %v8611_v5 = vld [vmem:[%s9699_s25 + $0xa0] ss:$8 sps:$4 sm:$0xff]  }
 0x4c5   :  { %v1578_v12 = vrot.slane %v1576_v8, 7  ;;  %v1587_v15 = vrot.slane %v1579_v9, 1  ;;  %2370 = vmatprep.subr.bf16.mxu1 %v8592_v46  ;;  %v8616_v6 = vld [vmem:[%s9699_s25 + $0xb4] ss:$8 sps:$4 sm:$0xff]   ;;  %v8614_v7 = vld [vmem:[%s9699_s25 + $0xb0] ss:$8 sps:$4 sm:$0xff]  }
 0x4c6   :  { %v1650_v45 = vld [vmem:[%s7413_s30 + $0x20] sm:$0xf] }
 0x4c7   :  { %v1581_v16 = vor.u32 %v1579_v9, %v1578_v12  ;;  %1875 = vperm.xlu0 %8396, %v1870_v11   ;;  %v1588_v17 = vsel %vm197_vm0, %v1586_v13, %v1587_v15  ;;  %v1589_v18 = vor.u32 %v1587_v15, %v1576_v8  ;;  %v8619_v8 = vld [vmem:[%s9699_s25 + $0xc4] ss:$8 sps:$4 sm:$0xff]   ;;  %v8617_v9 = vld [vmem:[%s9699_s25 + $0xc0] ss:$8 sps:$4 sm:$0xff]   ;;  %v8622_v11 = vld [vmem:[%s9699_s25 + $0xd4] ss:$8 sps:$4 sm:$0xff]  }
 0x4c8   :  { %1599 = vrot.lane.b32.xlu1 %v1588_v17, %s9238_s28  ;;  %2371 = vmatpush1.bf16.msra.mxu1 %v8590_v47  ;;  %v8620_v12 = vld [vmem:[%s9699_s25 + $0xd0] ss:$8 sps:$4 sm:$0xff]   ;;  %v8625_v13 = vld [vmem:[%s9699_s25 + $0xe4] ss:$8 sps:$4 sm:$0xff]   ;;  %v8623_v15 = vld [vmem:[%s9699_s25 + $0xe0] ss:$8 sps:$4 sm:$0xff]  }
 0x4c9   :  { %v1582_v22 = vsel %vm169_vm4, %v1571_v61, %v1581_v16  ;;  %v1591_v2 = vsel %vm9295_vm3, %v1589_v18, 0  ;;  %2372 = vmatprep.subr.bf16.mxu1 %v8595_v35  ;;  %v8599_v61 = vld [vmem:[%s9699_s25 + $0x60] ss:$8 sps:$4 sm:$0xff]   ;;  %v8628_v16 = vld [vmem:[%s9699_s25 + $0xf4] ss:$8 sps:$4 sm:$0xff]  }
 0x4ca   :  { %v8626_v17 = vld [vmem:[%s9699_s25 + $0xf0] ss:$8 sps:$4 sm:$0xff]   ;;  %v1646_v18 = vld [vmem:[%s7413_s30] sm:$0xff]  ;;  %v1651_v35 = vld [vmem:[%s7413_s30 + $0x28] sm:$0xf] }
 0x4cb   :  { %1885 = vperm.xlu0 %8396, %v1872_v19   ;;  %v1647_v19 = vld [vmem:[%s7413_s30 + $0x8] sm:$0xff] }
 0x4cc   :  { %1601 = vrot.lane.b32.xlu1 %v1591_v2, %s9238_s28  ;;  %2373 = vmatpush1.bf16.msra.mxu1 %v8593_v48 }
 0x4cd   :  { %2374 = vmatprep.subr.bf16.mxu1 %v8598_v51 }
 0x4d0   :  { %1880 = vperm.xlu1 %8397, %v1871_v23   ;;  %2375 = vmatpush1.bf16.msra.mxu1 %v8596_v53  ;;  %v1648_v23 = vld [vmem:[%s7413_s30 + $0x10] sm:$0xff] }
 0x4d1   :  { %2376 = vmatprep.subr.bf16.mxu1 %v8601_v54 }
 0x4d4   :  { %2377 = vmatpush1.bf16.msra.mxu1 %v8599_v61 }
 0x4d5   :  { %2378 = vmatprep.subr.bf16.mxu1 %v8604_v58 }
 0x4d8   :  { %2379 = vmatpush1.bf16.msra.mxu1 %v8602_v59 }
 0x4d9   :  { %2380 = vmatprep.subr.bf16.mxu1 %v8607_v63 }
 0x4dc   :  { %2381 = vmatpush1.bf16.msra.mxu1 %v8605_v0 }
 0x4dd   :  { %2382 = vmatprep.subr.bf16.mxu1 %v8610_v1 }
 0x4e0   :  { %2383 = vmatpush1.bf16.msra.mxu1 %v8608_v3 }
 0x4e1   :  { %2384 = vmatprep.subr.bf16.mxu1 %v8613_v4 }
 0x4e4   :  { %2385 = vmatpush1.bf16.msra.mxu1 %v8611_v5 }
 0x4e5   :  { %2386 = vmatprep.subr.bf16.mxu1 %v8616_v6 }
 0x4e8   :  { %2387 = vmatpush1.bf16.msra.mxu1 %v8614_v7 }
 0x4e9   :  { %2388 = vmatprep.subr.bf16.mxu1 %v8619_v8 }
 0x4ec   :  { %2389 = vmatpush1.bf16.msra.mxu1 %v8617_v9 }
 0x4ed   :  { %2390 = vmatprep.subr.bf16.mxu1 %v8622_v11 }
 0x4f0   :  { %2391 = vmatpush1.bf16.msra.mxu1 %v8620_v12 }
 0x4f1   :  { %2392 = vmatprep.subr.bf16.mxu1 %v8625_v13 }
 0x4f4   :  { %2393 = vmatpush1.bf16.msra.mxu1 %v8623_v15 }
 0x4f5   :  { %2394 = vmatprep.subr.bf16.mxu1 %v8628_v16 }
 0x4f8   :  { %2395 = vmatpush1.bf16.msra.mxu1 %v8626_v17 }
 0x52f   :  { %v1595_v24 = vpop.permute.xlu0 %1594 }
 0x530   :  { %v1606_v28 = vsel %vm1603_vm14, %v1584_v25, %v1595_v24  ;;  %v1649_v25 = vld [vmem:[%s7413_s30 + $0x18] sm:$0xff]  ;;  %s9257_s30 = smov 17  }
 0x531   :  { %s7422_s4 = sld [smem:[%s10989_s0 + %s9257_s30]]  }
 0x535   :  { %v1597_v30 = vpop.permute.xlu0 %1596 }
 0x536   :  { %v1610_v33 = vsel %vm1603_vm14, %v1582_v22, %v1597_v30  ;;  %v8631_v22 = vld [vmem:[%s9699_s25 + $0x104] ss:$8 sps:$4 sm:$0xff]  }
 0x537   :  { %2415 = vmatprep.subr.bf16.mxu1 %v8631_v22 }
 0x53a   :  { %v1600_v21 = vpop.permute.xlu1 %1599 }
 0x53b   :  { %v1613_v27 = vsel %vm629_vm11, %v1595_v24, %v1600_v21 }
 0x53c   :  { %7611 = vmatprep.mubr.msk.bf16.mxu0 %vm1802_vm15, %v1613_v27 }
 0x53d   :  { %1840 = vmatmul.mubr.bf16.vlgmr.msra.gmra.mrb[36].mxu0 %v1606_v28 }
 0x53e   :  { %v1602_v31 = vpop.permute.xlu1 %1601 }
 0x53f   :  { %v1615_v32 = vsel %vm629_vm11, %v1597_v30, %v1602_v31 }
 0x540   :  { %7612 = vmatprep.mubr.msk.bf16.mxu0 %vm1802_vm15, %v1615_v32  ;;  %vm9948_vm15 = vmand %vm2869_vm9, %vm2870_vm13  ;;  %vm3291_vm13 = vcmask 97280  }
 0x545   :  { %1850 = vmatmul.mubr.bf16.gmra.mrb[40].mxu0 %v1610_v33 }
 0x546   :  { %2537 = vmatprep.mubr.bf16.mxu0 %v9234_v34  ;;  %v9737_v46 = vpop.permute.xlu0 %1875 }
 0x54a   :  { %v9746_v13 = vpop.permute.xlu0 %1885 }
 0x54f   :  { %v9739_v48 = vpop.permute.xlu1 %1880 }
 0x610   :  { %v1841_v2 = vpop.f32.mrb[36].mxu0 }
 0x611   :  { %v1842_v24 = vadd.f32 %v1841_v2, %v1646_v18  ;;  %v1843_v21 = vpop.f32.mrb[37].mxu0 }
 0x612   :  { %v1844_v27 = vadd.f32 %v1843_v21, %v1647_v19  ;;  %v1845_v28 = vpop.f32.mrb[38].mxu0 }
 0x613   :  { %v1858_v30 = vmul.f32 0.2, %v1842_v24  ;;  %v1846_v31 = vadd.f32 %v1845_v28, %v1648_v23  ;;  %v1847_v32 = vpop.f32.mrb[39].mxu0 }
 0x614   :  { %v1859_v33 = vmul.f32 0.2, %v1844_v27  ;;  %v1848_v36 = vadd.f32 %v1847_v32, %v1649_v25 }
 0x615   :  { %v1864_v37 = vmax.f32 %v1842_v24, %v1858_v30  ;;  %v1860_v38 = vmul.f32 0.2, %v1846_v31 }
 0x616   :  { %v1865_v41 = vmax.f32 %v1844_v27, %v1859_v33  ;;  %v1861_v42 = vmul.f32 0.2, %v1848_v36 }
 0x617   :  { %v1866_v47 = vmax.f32 %v1846_v31, %v1860_v38  ;;  %v1888_v54 = vmul.f32 %v9737_v46, %v1864_v37 }
 0x618   :  { %v1867_v51 = vmax.f32 %v1848_v36, %v1861_v42  ;;  %v1851_v53 = vpop.f32.mrb[40].mxu0  ;;  %v1889_v63 = vmul.f32 %v9737_v46, %v1865_v41 }
 0x619   :  { %v1890_v61 = vmul.f32 %v9739_v48, %v1866_v47  ;;  %v1852_v58 = vadd.f32 %v1851_v53, %v1650_v45  ;;  %v1853_v59 = vpop.f32.mrb[41].mxu0 }
 0x61a   :  { %v1891_v0 = vmul.f32 %v9739_v48, %v1867_v51  ;;  %v1854_v1 = vadd.f32 %v1853_v59, %v1651_v35  ;;  %v1855_v3 = vpop.f32.mrb[42].mxu0 }
 0x61b   :  { %v1862_v4 = vmul.f32 0.2, %v1852_v58  ;;  %v1856_v5 = vpop.f32.mrb[43].mxu0  ;;  %v1894_v6 = vpack.c.bf16 %v1890_v61, %v1888_v54 }
 0x61c   :  { %v1863_v7 = vmul.f32 0.2, %v1854_v1  ;;  %v1895_v8 = vpack.c.bf16 %v1891_v0, %v1889_v63 }
 0x61d   :  { %v1868_v9 = vmax.f32 %v1852_v58, %v1862_v4  ;;  %1951 = vrot.lane.b32.xlu1 %v1894_v6, %s9238_s28  ;;  %v1902_v11 = vshll.u32 %v1894_v6, 16  ;;  %v1899_v12 = vshrl.u32 %v1894_v6, 16  ;;  %v8629_v4 = vld [vmem:[%s9699_s25 + $0x100] ss:$8 sps:$4 sm:$0xff]   ;;  %v8634_v6 = vld [vmem:[%s9699_s25 + $0x114] ss:$8 sps:$4 sm:$0xff]  }
 0x61e   :  { %v1869_v15 = vmax.f32 %v1854_v1, %v1863_v7  ;;  %v1909_v16 = vshll.u32 %v1895_v8, 16  ;;  %v1906_v17 = vshrl.u32 %v1895_v8, 16 }
 0x61f   :  { %v1892_v18 = vmul.f32 %v9746_v13, %v1868_v9  ;;  %v1901_v19 = vrot.slane %v1899_v12, 7  ;;  %v1933_v24 = vrot.slane %v1902_v11, 1  ;;  %v8637_v9 = vld [vmem:[%s9699_s25 + $0x124] ss:$8 sps:$4 sm:$0xff]  }
 0x620   :  { %v1893_v22 = vmul.f32 %v9746_v13, %v1869_v15  ;;  %v1908_v2 = vrot.slane %v1906_v17, 7  ;;  %v1937_v27 = vrot.slane %v1909_v16, 1 }
 0x621   :  { %1953 = vrot.lane.b32.xlu1 %v1895_v8, %s9238_s28  ;;  %v1896_v23 = vpack.c.bf16 %v1892_v18, %v1892_v18  ;;  %v1904_v21 = vor.u32 %v1902_v11, %v1901_v19  ;;  %v1934_v36 = vor.u32 %v1933_v24, %v1899_v12  ;;  %v8632_v8 = vld [vmem:[%s9699_s25 + $0x110] ss:$8 sps:$4 sm:$0xff]   ;;  %v8641_v24 = vld [vmem:[%s9699_s25 + $0x140] ss:$8 sps:$4 sm:$0xff]  }
 0x622   :  { %v1897_v25 = vpack.c.bf16 %v1893_v22, %v1893_v22  ;;  %v1911_v28 = vor.u32 %v1909_v16, %v1908_v2  ;;  %v1938_v41 = vor.u32 %v1937_v27, %v1906_v17  ;;  %v8635_v16 = vld [vmem:[%s9699_s25 + $0x120] ss:$8 sps:$4 sm:$0xff]   ;;  %v8640_v17 = vld [vmem:[%s9699_s25 + $0x134] ss:$8 sps:$4 sm:$0xff]   ;;  %v8638_v22 = vld [vmem:[%s9699_s25 + $0x130] ss:$8 sps:$4 sm:$0xff]  }
 0x623   :  { %1955 = vrot.lane.b32.xlu0 %v1896_v23, %s9238_s28  ;;  %v1916_v30 = vshll.u32 %v1896_v23, 16  ;;  %v1913_v31 = vshrl.u32 %v1896_v23, 16  ;;  %v1931_v7 = vsel %vm9336_vm6, 0, %v1904_v21  ;;  %v8643_v23 = vld [vmem:[%s9699_s25 + $0x144] ss:$8 sps:$4 sm:$0xff]  }
 0x624   :  { %v1924_v32 = vshll.u32 %v1897_v25, 16  ;;  %v1921_v33 = vshrl.u32 %v1897_v25, 16  ;;  %v1932_v3 = vsel %vm9336_vm6, 0, %v1911_v28  ;;  %v8646_v21 = vld [vmem:[%s9699_s25 + $0x154] ss:$8 sps:$4 sm:$0xff]  }
 0x625   :  { %v1935_v37 = vrot.slane %v1916_v30, 1  ;;  %v1915_v38 = vrot.slane %v1913_v31, 7  ;;  %v8649_v27 = vld [vmem:[%s9699_s25 + $0x164] ss:$8 sps:$4 sm:$0xff]   ;;  %v8647_v28 = vld [vmem:[%s9699_s25 + $0x160] ss:$8 sps:$4 sm:$0xff]  }
 0x626   :  { %v1939_v42 = vrot.slane %v1924_v32, 1  ;;  %v1923_v45 = vrot.slane %v1921_v33, 7 }
 0x627   :  { %v1936_v47 = vsel %vm197_vm0, %v1934_v36, %v1935_v37  ;;  %v1918_v35 = vor.u32 %v1916_v30, %v1915_v38  ;;  %v1941_v53 = vor.u32 %v1935_v37, %v1913_v31  ;;  %v8652_v30 = vld [vmem:[%s9699_s25 + $0x174] ss:$8 sps:$4 sm:$0xff]   ;;  %v8650_v31 = vld [vmem:[%s9699_s25 + $0x170] ss:$8 sps:$4 sm:$0xff]   ;;  %v8661_v38 = vld [vmem:[%s9699_s25 + $0x1a4] ss:$8 sps:$4 sm:$0xff]  }
 0x628   :  { %1963 = vrot.lane.b32.xlu0 %v1936_v47, %s9247_s1  ;;  %v1940_v51 = vsel %vm197_vm0, %v1938_v41, %v1939_v42  ;;  %v1926_v54 = vor.u32 %v1924_v32, %v1923_v45  ;;  %v1942_v59 = vor.u32 %v1939_v42, %v1921_v33  ;;  %v8655_v32 = vld [vmem:[%s9699_s25 + $0x184] ss:$8 sps:$4 sm:$0xff]   ;;  %v8653_v33 = vld [vmem:[%s9699_s25 + $0x180] ss:$8 sps:$4 sm:$0xff]   ;;  %v8658_v36 = vld [vmem:[%s9699_s25 + $0x194] ss:$8 sps:$4 sm:$0xff]  }
 0x629   :  { %1965 = vrot.lane.b32.xlu1 %v1940_v51, %s9247_s1  ;;  %v1919_v61 = vsel %vm169_vm4, %v1901_v19, %v1918_v35  ;;  %v1945_v63 = vsel %vm9295_vm3, %v1941_v53, 0  ;;  %v8656_v37 = vld [vmem:[%s9699_s25 + $0x190] ss:$8 sps:$4 sm:$0xff]   ;;  %v8659_v41 = vld [vmem:[%s9699_s25 + $0x1a0] ss:$8 sps:$4 sm:$0xff]  }
 0x62a   :  { %v1927_v58 = vsel %vm169_vm4, %v1908_v2, %v1926_v54  ;;  %v1946_v0 = vsel %vm9295_vm3, %v1942_v59, 0  ;;  %v8664_v42 = vld [vmem:[%s9699_s25 + $0x1b4] ss:$8 sps:$4 sm:$0xff]   ;;  %v8662_v45 = vld [vmem:[%s9699_s25 + $0x1b0] ss:$8 sps:$4 sm:$0xff]  }
 0x62b   :  { %v8667_v47 = vld [vmem:[%s9699_s25 + $0x1c4] ss:$8 sps:$4 sm:$0xff]   ;;  %v8665_v35 = vld [vmem:[%s9699_s25 + $0x1c0] ss:$8 sps:$4 sm:$0xff]   ;;  %v8670_v51 = vld [vmem:[%s9699_s25 + $0x1d4] ss:$8 sps:$4 sm:$0xff]  }
 0x62c   :  { %1957 = vrot.lane.b32.xlu0 %v1897_v25, %s9238_s28  ;;  %v8644_v25 = vld [vmem:[%s9699_s25 + $0x150] ss:$8 sps:$4 sm:$0xff]  }
 0x62d   :  { %1967 = vrot.lane.b32.xlu1 %v1945_v63, %s9247_s1  ;;  %v8668_v54 = vld [vmem:[%s9699_s25 + $0x1d0] ss:$8 sps:$4 sm:$0xff]   ;;  %s9256_s25 = smov 21  }
 0x62e   :  { %s9963_s29 = sld [smem:[%s10989_s0 + %s9256_s25]]   ;;  %s9263_s25 = smov 24  }
 0x630   :  { %1969 = vrot.lane.b32.xlu0 %v1946_v0, %s9247_s1 }
 0x68f   :  { %v9765_v1 = vpop.permute.xlu1 %1951 }
 0x690   :  { %v1976_v5 = vsel %vm629_vm11, %v1932_v3, %v9765_v1 }
 0x691   :  { %2396 = vmatprep.mubr.bf16.mxu1 %v1976_v5  ;;  %v2052_v5 = vld [vmem:[%s7414_s13 + $0x8] sm:$0xff] }
 0x692   :  { %2397 = vmatmul.mubr.bf16.vlgmr.msra.gmra.mrb[20].mxu1 %v1931_v7  ;;  %v2053_v7 = vld [vmem:[%s7414_s13 + $0x10] sm:$0xff] }
 0x693   :  { %2416 = vmatpush1.bf16.msra.mxu1 %v8629_v4  ;;  %v1954_v15 = vpop.permute.xlu1 %1953 }
 0x694   :  { %2417 = vmatprep.subr.bf16.mxu1 %v8634_v6 }
 0x695   :  { %v9777_v11 = vpop.permute.xlu0 %1955 }
 0x696   :  { %v1980_v12 = vsel %vm629_vm11, %v1927_v58, %v9777_v11  ;;  %v1959_v58 = vsel %vm629_vm11, %v9765_v1, %v1954_v15  ;;  %v2051_v1 = vld [vmem:[%s7414_s13] sm:$0xff] }
 0x697   :  { %2418 = vmatpush1.bf16.msra.mxu1 %v8632_v8  ;;  %2406 = vmatprep.mubr.bf16.mxu1 %v1980_v12 }
 0x698   :  { %2419 = vmatprep.subr.bf16.mxu1 %v8637_v9 }
 0x69a   :  { %v1964_v18 = vpop.permute.xlu0 %1963  ;;  %2407 = vmatmul.mubr.bf16.gmra.mrb[24].mxu1 %v1919_v61 }
 0x69b   :  { %2420 = vmatpush1.bf16.msra.mxu1 %v8635_v16  ;;  %v1966_v19 = vpop.permute.xlu1 %1965  ;;  %v1985_v59 = vsel %vm1971_vm1, %v1959_v58, %v1964_v18 }
 0x69c   :  { %v1972_v2 = vsel %vm1971_vm1, %v1964_v18, %v1966_v19  ;;  %2421 = vmatprep.subr.bf16.mxu1 %v8640_v17 }
 0x69d   :  { %7673 = vmatprep.mubr.msk.bf16.mxu1 %vm2357_vm5, %v1972_v2 }
 0x69e   :  { %v1958_v53 = vpop.permute.xlu0 %1957 }
 0x69f   :  { %2422 = vmatpush1.bf16.msra.mxu1 %v8638_v22  ;;  %v1968_v63 = vpop.permute.xlu1 %1967  ;;  %v1960_v3 = vsel %vm629_vm11, %v9777_v11, %v1958_v53  ;;  %v2054_v11 = vld [vmem:[%s7414_s13 + $0x18] sm:$0xff] }
 0x6a0   :  { %2423 = vmatprep.subr.bf16.mxu1 %v8643_v23  ;;  %v1989_v4 = vsel %vm1971_vm1, %v1960_v3, %v1968_v63 }
 0x6a2   :  { %v1970_v61 = vpop.permute.xlu0 %1969 }
 0x6a3   :  { %2424 = vmatpush1.bf16.msra.mxu1 %v8641_v24  ;;  %v1973_v0 = vsel %vm1971_vm1, %v1968_v63, %v1970_v61 }
 0x6a4   :  { %2425 = vmatprep.subr.bf16.mxu1 %v8646_v21 }
 0x6a7   :  { %2426 = vmatpush1.bf16.msra.mxu1 %v8644_v25  ;;  %v2055_v25 = vld [vmem:[%s7414_s13 + $0x20] sm:$0xf] }
 0x6a8   :  { %2427 = vmatprep.subr.bf16.mxu1 %v8649_v27 }
 0x6ab   :  { %2428 = vmatpush1.bf16.msra.mxu1 %v8647_v28  ;;  %v2056_v28 = vld [vmem:[%s7414_s13 + $0x28] sm:$0xf]  ;;  %s10001_s13 = sld [smem:[%s10989_s0 + %s9260_s10]]  }
 0x6ac   :  { %2429 = vmatprep.subr.bf16.mxu1 %v8652_v30 }
 0x6af   :  { %2430 = vmatpush1.bf16.msra.mxu1 %v8650_v31 }
 0x6b0   :  { %2431 = vmatprep.subr.bf16.mxu1 %v8655_v32 }
 0x6b3   :  { %2432 = vmatpush1.bf16.msra.mxu1 %v8653_v33 }
 0x6b4   :  { %2433 = vmatprep.subr.bf16.mxu1 %v8658_v36 }
 0x6b7   :  { %2434 = vmatpush1.bf16.msra.mxu1 %v8656_v37 }
 0x6b8   :  { %2435 = vmatprep.subr.bf16.mxu1 %v8661_v38 }
 0x6bb   :  { %2436 = vmatpush1.bf16.msra.mxu1 %v8659_v41 }
 0x6bc   :  { %2437 = vmatprep.subr.bf16.mxu1 %v8664_v42 }
 0x6bf   :  { %2438 = vmatpush1.bf16.msra.mxu1 %v8662_v45 }
 0x6c0   :  { %2439 = vmatprep.subr.bf16.mxu1 %v8667_v47 }
 0x6c3   :  { %2440 = vmatpush1.bf16.msra.mxu1 %v8665_v35 }
 0x6c4   :  { %2441 = vmatprep.subr.bf16.mxu1 %v8670_v51 }
 0x6c7   :  { %2442 = vmatpush1.bf16.msra.mxu1 %v8668_v54 }
 0x6ca   :  { %2448 = vmatmul.mubr.bf16.vlgmr.msra.gmra.mrb[20].mxu1 %v1985_v59 }
 0x6cb   :  { %7674 = vmatprep.mubr.msk.bf16.mxu1 %vm2357_vm5, %v1973_v0 }
 0x6d2   :  { %2458 = vmatmul.mubr.bf16.gmra.mrb[24].mxu1 %v1989_v4 }
 0x79d   :  { %v2449_v6 = vpop.f32.mrb[20].mxu1 }
 0x79e   :  { %v8226_v8 = vadd.f32 %v2449_v6, %v2051_v1  ;;  %v2451_v9 = vpop.f32.mrb[21].mxu1 }
 0x79f   :  { %v8227_v12 = vadd.f32 %v2451_v9, %v2052_v5  ;;  %v2453_v15 = vpop.f32.mrb[22].mxu1 }
 0x7a0   :  { %v2466_v16 = vmul.f32 0.2, %v8226_v8  ;;  %v8228_v17 = vadd.f32 %v2453_v15, %v2053_v7  ;;  %v2455_v18 = vpop.f32.mrb[23].mxu1  ;;  %v8673_v15 = vld [vmem:[%s9822_s9] sm:$0xff]  }
 0x7a1   :  { %v2467_v19 = vmul.f32 0.2, %v8227_v12  ;;  %v8229_v22 = vadd.f32 %v2455_v18, %v2054_v11  ;;  %v8676_v18 = vld [vmem:[%s9822_s9 + $0x18] sm:$0xff]  }
 0x7a2   :  { %v2472_v2 = vmax.f32 %v8226_v8, %v2466_v16  ;;  %v2468_v23 = vmul.f32 0.2, %v8228_v17  ;;  %v8674_v16 = vld [vmem:[%s9822_s9 + $0x8] sm:$0xff]  }
 0x7a3   :  { %v2473_v24 = vmax.f32 %v8227_v12, %v2467_v19  ;;  %v2469_v21 = vmul.f32 0.2, %v8229_v22  ;;  %v8672_v12 = vld [vmem:[%s9817_s5 + $0x8] sm:$0x3f]   ;;  %v8677_v19 = vld [vmem:[%s9822_s9 + $0x20] sm:$0xff]  }
 0x7a4   :  { %v2474_v27 = vmax.f32 %v8228_v17, %v2468_v23  ;;  %v2478_v32 = vmul.f32 %v2472_v2, %v9737_v46  ;;  %v8675_v17 = vld [vmem:[%s9822_s9 + $0x10] sm:$0xff]   ;;  %v8680_v23 = vld [vmem:[%s9822_s9 + $0x38] sm:$0xff]  }
 0x7a5   :  { %v2475_v30 = vmax.f32 %v8229_v22, %v2469_v21  ;;  %v2459_v31 = vpop.f32.mrb[24].mxu1  ;;  %v2479_v38 = vmul.f32 %v2473_v24, %v9737_v46  ;;  %v8678_v22 = vld [vmem:[%s9822_s9 + $0x28] sm:$0xff]   ;;  %v8679_v2 = vld [vmem:[%s9822_s9 + $0x30] sm:$0xff]   ;;  %v8681_v24 = vld [vmem:[%s9822_s9 + $0x40] sm:$0xff]  }
 0x7a6   :  { %v2480_v33 = vmul.f32 %v2474_v27, %v9739_v48  ;;  %v8230_v36 = vadd.f32 %v2459_v31, %v2055_v25  ;;  %v2461_v37 = vpop.f32.mrb[25].mxu1  ;;  %v8682_v21 = vld [vmem:[%s9822_s9 + $0x48] sm:$0xff]  }
 0x7a7   :  { %v2481_v41 = vmul.f32 %v2475_v30, %v9739_v48  ;;  %v8231_v42 = vadd.f32 %v2461_v37, %v2056_v28  ;;  %v2463_v45 = vpop.f32.mrb[26].mxu1 }
 0x7a8   :  { %v9831_v47 = vpack.c.bf16 %v2480_v33, %v2478_v32  ;;  %v2470_v35 = vmul.f32 0.2, %v8230_v36  ;;  %v2464_v51 = vpop.f32.mrb[27].mxu1 }
 0x7a9   :  { %v9833_v53 = vpack.c.bf16 %v2481_v41, %v2479_v38  ;;  %v2471_v54 = vmul.f32 0.2, %v8231_v42  ;;  %v8683_v51 = vld [vmem:[%s9822_s9 + $0x50] sm:$0xff]  }
 0x7aa   :  { %v2476_v61 = vmax.f32 %v8230_v36, %v2470_v35 }
 0x7ab   :  { %v2477_v58 = vmax.f32 %v8231_v42, %v2471_v54  ;;  %2505 = vmatprep.subr.bf16.mxu0 %v9833_v53  ;;  %v3584_v59 = vshrl.u32 %v9833_v53, 16  ;;  %v3587_v63 = vshll.u32 %v9833_v53, 16  ;;  %v8684_v54 = vld [vmem:[%s9822_s9 + $0x58] sm:$0xff]  }
 0x7ac   :  { %v2482_v46 = vmul.f32 %v2476_v61, %v9746_v13  ;;  %2506 = vmatpush1.bf16.msra.mxu0 %v9831_v47  ;;  %v8685_v61 = vld [vmem:[%s9822_s9 + $0x60] sm:$0xff]  }
 0x7ad   :  { %v2483_v48 = vmul.f32 %v2477_v58, %v9746_v13  ;;  %v3586_v0 = vrot.slane %v3584_v59, 7  ;;  %v8671_v13 = vld [vmem:[%s9817_s5] sm:$0x3f]   ;;  %v8686_v58 = vld [vmem:[%s9822_s9 + $0x68] sm:$0xff]   ;;  %s9258_s5 = smov 48  }
 0x7ae   :  { %v9843_v3 = vpack.c.bf16 %v2482_v46, %v2482_v46  ;;  %v8687_v46 = vld [vmem:[%s9822_s9 + $0x70] sm:$0xff]  }
 0x7af   :  { %v9845_v4 = vpack.c.bf16 %v2483_v48, %v2483_v48  ;;  %v9849_v1 = vor.u32 %v3587_v63, %v3586_v0  ;;  %v8688_v48 = vld [vmem:[%s9822_s9 + $0x78] sm:$0xff]  }
 0x7b0   :  { %v2500_v5 = vsel %vm207_vm2, %v9843_v3, 0 }
 0x7b1   :  { %7676 = vmatprep.subr.msk.bf16.mxu0 %vm207_vm2, %v9845_v4  ;;  %v3597_v6 = vshrl.u32 %v9845_v4, 16  ;;  %v3600_v7 = vshll.u32 %v9845_v4, 16 }
 0x7b2   :  { %2508 = vmatpush1.bf16.msra.mxu0 %v2500_v5 }
 0x7b3   :  { %2559 = vmatprep.subr.bf16.mxu0 %v9833_v53  ;;  %v3599_v8 = vrot.slane %v3597_v6, 7 }
 0x7b5   :  { %7677 = vmatmul.mubr.msk.bf16.vlgmr.msra.gmra.mrb[44].mxu0 %vm2495_vm7, %v8671_v13  ;;  %v3602_v9 = vor.u32 %v3600_v7, %v3599_v8  ;;  %v8691_v13 = vld [vmem:[%s9822_s9 + $0x90] sm:$0xff]   ;;  %v8692_v8 = vld [vmem:[%s9822_s9 + $0x98] sm:$0xff]  }
 0x7b6   :  { %2560 = vmatpush1.bf16.msra.mxu0 %v9831_v47  ;;  %2591 = vmatprep.mubr.bf16.mxu0 %v9234_v34 }
 0x7b7   :  { %7681 = vmatprep.subr.msk.bf16.mxu0 %vm207_vm2, %v9845_v4  ;;  %v9869_v11 = vsel %vm169_vm4, %v3586_v0, %v3602_v9  ;;  %v8689_v0 = vld [vmem:[%s9822_s9 + $0x80] sm:$0xff]   ;;  %v9252_v9 = vmov 0.0  }
 0x7ba   :  { %2562 = vmatpush1.bf16.msra.mxu0 %v2500_v5  ;;  %v8690_v5 = vld [vmem:[%s9822_s9 + $0x88] sm:$0xff]   ;;  %s7431_s9 = sld [smem:[%s10989_s0 + %s9259_s6]]  }
 0x7bb   :  { %2691 = vmatprep.subr.bf16.mxu0 %v9234_v34 }
 0x7bd   :  { %7682 = vmatmul.mubr.msk.bf16.vlgmr.msra.gmra.mrb[48].mxu0 %vm2495_vm7, %v8672_v12  ;;  %v8693_v12 = vld [vmem:[%s9918_s18 + $0x40] sm:$0xff]  }
 0x7be   :  { %2692 = vmatpush1.bf16.msra.mxu0 %v8673_v15  ;;  %v8694_v15 = vld [vmem:[%s9918_s18] sm:$0xff]   ;;  %8125 = vmatprep.subr.bf16.mxu1 %v8693_v12 }
 0x7bf   :  { %2693 = vmatprep.subr.bf16.mxu0 %v9234_v34  ;;  %8126 = vmatpush3.bf16.msra.mxu1 %v8694_v15 }
 0x7c2   :  { %2694 = vmatpush1.bf16.msra.mxu0 %v8674_v16  ;;  %v8695_v16 = vld [vmem:[%s9918_s18 + $0x48] sm:$0xff]  }
 0x7c3   :  { %2695 = vmatprep.subr.bf16.mxu0 %v9234_v34  ;;  %8127 = vmatprep.subr.bf16.mxu1 %v8695_v16 }
 0x7c6   :  { %2696 = vmatpush1.bf16.msra.mxu0 %v8675_v17  ;;  %v8696_v17 = vld [vmem:[%s9918_s18 + $0x8] sm:$0xff]  }
 0x7c7   :  { %2697 = vmatprep.subr.bf16.mxu0 %v9234_v34  ;;  %8128 = vmatpush3.bf16.msra.mxu1 %v8696_v17  ;;  %v3119_v17 = vld [vmem:[%s7424_s23 + $0x8] sm:$0xf] }
 0x7ca   :  { %2698 = vmatpush1.bf16.msra.mxu0 %v8676_v18  ;;  %v8697_v18 = vld [vmem:[%s9918_s18 + $0x50] sm:$0xff]  }
 0x7cb   :  { %2699 = vmatprep.subr.bf16.mxu0 %v9234_v34  ;;  %8129 = vmatprep.subr.bf16.mxu1 %v8697_v18 }
 0x7ce   :  { %2700 = vmatpush1.bf16.msra.mxu0 %v8677_v19  ;;  %v8698_v19 = vld [vmem:[%s9918_s18 + $0x10] sm:$0xff]  }
 0x7cf   :  { %2701 = vmatprep.subr.bf16.mxu0 %v9234_v34  ;;  %8130 = vmatpush3.bf16.msra.mxu1 %v8698_v19 }
 0x7d2   :  { %2702 = vmatpush1.bf16.msra.mxu0 %v8678_v22  ;;  %v8699_v22 = vld [vmem:[%s9918_s18 + $0x58] sm:$0xff]  }
 0x7d3   :  { %2703 = vmatprep.subr.bf16.mxu0 %v9234_v34  ;;  %8131 = vmatprep.subr.bf16.mxu1 %v8699_v22 }
 0x7d6   :  { %2704 = vmatpush1.bf16.msra.mxu0 %v8679_v2  ;;  %v8700_v2 = vld [vmem:[%s9918_s18 + $0x18] sm:$0xff]  }
 0x7d7   :  { %2705 = vmatprep.subr.bf16.mxu0 %v9234_v34  ;;  %8132 = vmatpush3.bf16.msra.mxu1 %v8700_v2 }
 0x7da   :  { %2706 = vmatpush1.bf16.msra.mxu0 %v8680_v23  ;;  %v8701_v23 = vld [vmem:[%s9918_s18 + $0x60] sm:$0xff]  }
 0x7db   :  { %2707 = vmatprep.subr.bf16.mxu0 %v9234_v34  ;;  %8133 = vmatprep.subr.bf16.mxu1 %v8701_v23 }
 0x7de   :  { %2708 = vmatpush1.bf16.msra.mxu0 %v8681_v24  ;;  %v8702_v24 = vld [vmem:[%s9918_s18 + $0x20] sm:$0xff]  }
 0x7df   :  { %2709 = vmatprep.subr.bf16.mxu0 %v9234_v34  ;;  %8134 = vmatpush3.bf16.msra.mxu1 %v8702_v24  ;;  %v8711_v24 = vld [vmem:[%s9963_s29] sm:$0xff]  }
 0x7e2   :  { %2710 = vmatpush1.bf16.msra.mxu0 %v8682_v21  ;;  %v8703_v21 = vld [vmem:[%s9918_s18 + $0x68] sm:$0xff]  }
 0x7e3   :  { %2813 = vmatprep.subr.bf16.mxu0 %v9234_v34  ;;  %8135 = vmatprep.subr.bf16.mxu1 %v8703_v21  ;;  %v8712_v21 = vld [vmem:[%s9963_s29 + $0x8] sm:$0xff]  }
 0x888   :  { %v2539_v25 = vpop.f32.mrb[44].mxu0 }
 0x889   :  { %v2541_v27 = vpop.f32.mrb[45].mxu0 }
 0x88a   :  { %v2543_v28 = vpop.f32.mrb[46].mxu0 }
 0x88b   :  { %v2545_v30 = vpop.f32.mrb[47].mxu0 }
 0x890   :  { %v2593_v31 = vpop.f32.mrb[48].mxu0 }
 0x891   :  { %v2602_v32 = vmax.f32 %v2539_v25, %v2593_v31  ;;  %v2595_v33 = vpop.f32.mrb[49].mxu0  ;;  %v8704_v25 = vld [vmem:[%s9918_s18 + $0x28] sm:$0xff]  }
 0x892   :  { %v2603_v36 = vmax.f32 %v2541_v27, %v2595_v33  ;;  %v2597_v37 = vpop.f32.mrb[50].mxu0  ;;  %8136 = vmatpush3.bf16.msra.mxu1 %v8704_v25  ;;  %v8706_v33 = vld [vmem:[%s9918_s18 + $0x70] sm:$0xff]  }
 0x893   :  { %v2604_v38 = vmax.f32 %v2543_v28, %v2597_v37  ;;  %v2599_v41 = vpop.f32.mrb[51].mxu0  ;;  %v8708_v37 = vld [vmem:[%s9918_s18 + $0x88] sm:$0xff]   ;;  %8137 = vmatprep.subr.bf16.mxu1 %v8706_v33  ;;  %v8713_v25 = vld [vmem:[%s9963_s29 + $0x10] sm:$0xff]  }
 0x894   :  { %v2605_v42 = vmax.f32 %v2545_v30, %v2599_v41  ;;  %v8710_v41 = vld [vmem:[%s9918_s18 + $0x38] sm:$0xff]  }
 0x895   :  { %v2606_v45 = vpack.c.bf16 %v2604_v38, %v2602_v32  ;;  %v8705_v32 = vld [vmem:[%s9918_s18 + $0x80] sm:$0xff]   ;;  %v8709_v38 = vld [vmem:[%s9918_s18 + $0x78] sm:$0xff]  }
 0x896   :  { %v2607_v35 = vpack.c.bf16 %v2605_v42, %v2603_v36  ;;  %v8707_v36 = vld [vmem:[%s9918_s18 + $0x30] sm:$0xff]   ;;  %s7423_s18 = sld [smem:[%s10989_s0 + %s9261_s14]]  }
 0x897   :  { %8138 = vmatpush3.bf16.msra.mxu1 %v8707_v36  ;;  %s10401_s14 = sld [smem:[%s10989_s0 + %s9238_s28]]  }
 0x898   :  { %7693 = vmatprep.mubr.msk.bf16.mxu0 %vm629_vm11, %v2607_v35  ;;  %8139 = vmatprep.subr.bf16.mxu1 %v8709_v38  ;;  %v2922_v38 = vld [vmem:[%s7422_s4] sm:$0xff] }
 0x899   :  { %2724 = vmatmul.mubr.bf16.vlgmr.msra.gmra.mrb[52].mxu0 %v2606_v45 }
 0x89a   :  { %2814 = vmatpush1.bf16.msra.mxu0 %v8683_v51  ;;  %7724 = vmatprep.mubr.msk.bf16.mxu0 %vm629_vm11, %v2607_v35 }
 0x89b   :  { %2815 = vmatprep.subr.bf16.mxu0 %v9234_v34  ;;  %8140 = vmatpush3.bf16.msra.mxu1 %v8710_v41 }
 0x89e   :  { %2816 = vmatpush1.bf16.msra.mxu0 %v8684_v54 }
 0x89f   :  { %2817 = vmatprep.subr.bf16.mxu0 %v9234_v34 }
 0x8a2   :  { %2818 = vmatpush1.bf16.msra.mxu0 %v8685_v61 }
 0x8a3   :  { %2819 = vmatprep.subr.bf16.mxu0 %v9234_v34 }
 0x8a6   :  { %2820 = vmatpush1.bf16.msra.mxu0 %v8686_v58 }
 0x8a7   :  { %2821 = vmatprep.subr.bf16.mxu0 %v9234_v34 }
 0x8aa   :  { %2822 = vmatpush1.bf16.msra.mxu0 %v8687_v46 }
 0x8ab   :  { %2823 = vmatprep.subr.bf16.mxu0 %v9234_v34 }
 0x8ae   :  { %2824 = vmatpush1.bf16.msra.mxu0 %v8688_v48 }
 0x8af   :  { %2825 = vmatprep.subr.bf16.mxu0 %v9234_v34 }
 0x8b2   :  { %2826 = vmatpush1.bf16.msra.mxu0 %v8689_v0  ;;  %v3118_v0 = vld [vmem:[%s7424_s23] sm:$0xff]  ;;  %s10028_s23 = sld [smem:[%s10989_s0 + %s9262_s20]]  }
 0x8b3   :  { %2827 = vmatprep.subr.bf16.mxu0 %v9234_v34  ;;  %s7428_s20 = sld [smem:[%s10989_s0 + %s9267_s15]]  }
 0x8b6   :  { %2828 = vmatpush1.bf16.msra.mxu0 %v8690_v5 }
 0x8b7   :  { %2829 = vmatprep.subr.bf16.mxu0 %v9234_v34 }
 0x8ba   :  { %2830 = vmatpush1.bf16.msra.mxu0 %v8691_v13 }
 0x8bb   :  { %2831 = vmatprep.subr.bf16.mxu0 %v9234_v34 }
 0x8be   :  { %2832 = vmatpush1.bf16.msra.mxu0 %v8692_v8  ;;  %v8720_v8 = vld [vmem:[%s7431_s9] sm:$0xff]  }
 0x8bf   :  { %8186 = vmatprep.subr.bf16.mxu0 %v9252_v9 }
 0x8c1   :  { %2846 = vmatmul.mubr.bf16.vlgmr.msra.gmra.mrb[56].mxu0 %v2606_v45 }
 0x8c2   :  { %8187 = vmatpush3.bf16.msra.mxu0 %v8705_v32  ;;  %8190 = vmatprep.mubr.msk.bf16.mxu0 %vm9253_vm8, %v9252_v9 }
 0x8c3   :  { %8188 = vmatprep.subr.bf16.mxu0 %v9252_v9 }
 0x8c6   :  { %8189 = vmatpush3.bf16.msra.mxu0 %v8708_v37 }
 0x8c7   :  { %3234 = vmatprep.subr.bf16.mxu0 %v9234_v34 }
 0x96c   :  { %v2725_v27 = vpop.f32.mrb[52].mxu0 }
 0x96d   :  { %v2727_v28 = vpop.f32.mrb[53].mxu0 }
 0x96e   :  { %v2728_v30 = vpop.f32.mrb[54].mxu0  ;;  %v8715_v28 = vld [vmem:[%s9963_s29 + $0x20] sm:$0xff]  }
 0x96f   :  { %v2730_v31 = vpop.f32.mrb[55].mxu0 }
 0x970   :  { %v8717_v31 = vld [vmem:[%s9963_s29 + $0x30] sm:$0xff]  }
 0x994   :  { %v2847_v42 = vpop.f32.mrb[56].mxu0 }
 0x995   :  { %v2854_v45 = vmax.f32 %v2725_v27, %v2847_v42  ;;  %v2849_v35 = vpop.f32.mrb[57].mxu0  ;;  %v8714_v27 = vld [vmem:[%s9963_s29 + $0x18] sm:$0xff]  }
 0x996   :  { %v2850_v51 = vpop.f32.mrb[58].mxu0 }
 0x997   :  { %v2855_v54 = vmax.f32 %v2728_v30, %v2850_v51  ;;  %v2852_v61 = vpop.f32.mrb[59].mxu0  ;;  %v8716_v30 = vld [vmem:[%s9963_s29 + $0x28] sm:$0xff]   ;;  %v8718_v51 = vld [vmem:[%s9963_s29 + $0x38] sm:$0xff]  }
 0x999   :  { %v2856_v58 = vpack.c.bf16 %v2855_v54, %v2854_v45  ;;  %v2923_v54 = vld [vmem:[%s7422_s4 + $0x8] sm:$0xf]  ;;  %s9265_s4 = smov 22  }
 0x99a   :  { %s10309_s8 = sld [smem:[%s10989_s0 + %s9265_s4]]   ;;  %s9271_s4 = smov 29  }
 0x99b   :  { %v2861_v46 = vshll.u32 %v2856_v58, 16  ;;  %2874 = vrot.lane.b32.xlu1 %v2856_v58, %s9255_s24  ;;  %v2858_v48 = vshrl.u32 %v2856_v58, 16 }
 0x99d   :  { %v2866_v5 = vrot.slane %v2861_v46, 1  ;;  %v2860_v13 = vrot.slane %v2858_v48, 7 }
 0x99f   :  { %3122 = vperm.xlu1 %8397, %v3118_v0   ;;  %v2867_v12 = vor.u32 %v2866_v5, %v2858_v48  ;;  %v2863_v15 = vor.u32 %v2861_v46, %v2860_v13  ;;  %v8719_v48 = vld [vmem:[%s9963_s29 + $0x40] sm:$0xff]   ;;  %s10163_s29 = sld [smem:[%s10989_s0 + %s9263_s25]]  }
 0x9a0   :  { %s10439_s25 = sld [smem:[%s10989_s0 + %s9268_s21]]  }
 0x9a1   :  { %v2872_v16 = vsel %vm9948_vm15, %v2867_v12, 0  ;;  %v2865_v22 = vsel %vm9336_vm6, 0, %v2863_v15 }
 0x9a2   :  { %2877 = vrot.lane.b32.xlu0 %v2872_v16, %s9247_s1 }
 0x9a6   :  { %3127 = vperm.xlu0 %8396, %v3119_v17  }
 0xa0d   :  { %v2875_v18 = vpop.permute.xlu1 %2874 }
 0xa0e   :  { %v2881_v23 = vsel %vm2357_vm5, %v2865_v22, %v2875_v18 }
 0xa14   :  { %v2878_v19 = vpop.permute.xlu0 %2877 }
 0xa15   :  { %8191 = vmatmul.mubr.msk.bf16.vlgmr.msra.gmra.mrb[60].mxu0 %vm629_vm11, %v2878_v19  ;;  %v2884_v2 = vsel %vm1971_vm1, %v2875_v18, %v2878_v19 }
 0xa16   :  { %3066 = vmatprep.mubr.bf16.mxu1 %v2884_v2  ;;  %3235 = vmatpush1.bf16.msra.mxu0 %v8711_v24 }
 0xa17   :  { %3067 = vmatmul.mubr.bf16.vlgmr.msra.gmra.mrb[28].mxu1 %v2881_v23  ;;  %3236 = vmatprep.subr.bf16.mxu0 %v9234_v34 }
 0xa18   :  { %8196 = vmatprep.mubr.msk.bf16.mxu1 %vm3291_vm13, %v8720_v8  ;;  %v8742_v8 = vld [vmem:[%s10028_s23 + $0x4] ss:$8 sps:$4 sm:$0xff]  }
 0xa1a   :  { %3237 = vmatpush1.bf16.msra.mxu0 %v8712_v21 }
 0xa1b   :  { %3238 = vmatprep.subr.bf16.mxu0 %v9234_v34 }
 0xa1e   :  { %3239 = vmatpush1.bf16.msra.mxu0 %v8713_v25  ;;  %v3123_v16 = vpop.permute.xlu1 %3122 }
 0xa1f   :  { %3240 = vmatprep.subr.bf16.mxu0 %v9234_v34 }
 0xa22   :  { %3241 = vmatpush1.bf16.msra.mxu0 %v8714_v27 }
 0xa23   :  { %3242 = vmatprep.subr.bf16.mxu0 %v9234_v34 }
 0xa25   :  { %v3128_v17 = vpop.permute.xlu0 %3127 }
 0xa26   :  { %3243 = vmatpush1.bf16.msra.mxu0 %v8715_v28 }
 0xa27   :  { %3244 = vmatprep.subr.bf16.mxu0 %v9234_v34 }
 0xa2a   :  { %3245 = vmatpush1.bf16.msra.mxu0 %v8716_v30 }
 0xa2b   :  { %3246 = vmatprep.subr.bf16.mxu0 %v9234_v34 }
 0xa2e   :  { %3247 = vmatpush1.bf16.msra.mxu0 %v8717_v31 }
 0xa2f   :  { %3248 = vmatprep.subr.bf16.mxu0 %v9234_v34 }
 0xa32   :  { %3249 = vmatpush1.bf16.msra.mxu0 %v8718_v51 }
 0xa33   :  { %3250 = vmatprep.subr.bf16.mxu0 %v9234_v34 }
 0xa36   :  { %3251 = vmatpush1.bf16.msra.mxu0 %v8719_v48 }
 0xa37   :  { %4434 = vmatprep.subr.bf16.mxu0 %v8742_v8 }
 0xae8   :  { %v3109_v32 = vpop.f32.mrb[60].mxu0 }
 0xae9   :  { %v8192_v33 = vpop.f32.mrb[61].mxu0 }
 0xaea   :  { %v8141_v36 = vpop.f32.mrb[28].mxu1  ;;  %v3112_v37 = vpop.f32.mrb[62].mxu0 }
 0xaeb   :  { %v8142_v41 = vpop.f32.mrb[29].mxu1  ;;  %v8193_v42 = vpop.f32.mrb[63].mxu0 }
 0xaec   :  { %v8143_v45 = vadd.f32 %v8142_v41, %v8141_v36  ;;  %v8144_v35 = vpop.f32.mrb[30].mxu1  ;;  %v3177_v41 = vld [vmem:[%s7423_s18 + $0x8] sm:$0xf] }
 0xaed   :  { %v8145_v61 = vpop.f32.mrb[31].mxu1 }
 0xaee   :  { %v3069_v58 = vadd.f32 %v8143_v45, %v2922_v38  ;;  %v8146_v46 = vadd.f32 %v8145_v61, %v8144_v35 }
 0xaf0   :  { %v3110_v0 = vadd.f32 %v3109_v32, %v3069_v58  ;;  %v3072_v5 = vadd.f32 %v8146_v46, %v2923_v54 }
 0xaf2   :  { %v3116_v13 = vmax.f32 %v3110_v0, 0.0  ;;  %v3113_v12 = vadd.f32 %v3112_v37, %v3072_v5  ;;  %v3176_v37 = vld [vmem:[%s7423_s18] sm:$0xff] }
 0xaf3   :  { %v8724_v5 = vld [vmem:[%s10001_s13 + $0x4] ss:$8 sps:$4 sm:$0xff]  }
 0xaf4   :  { %v3117_v15 = vmax.f32 %v3113_v12, 0.0  ;;  %v3130_v18 = vmul.f32 %v3123_v16, %v3116_v13  ;;  %v8721_v12 = vld [vmem:[%s7431_s9 + $0x8] ss:$0 sps:$4 sm:$0x33]  }
 0xaf6   :  { %v3131_v19 = vmul.f32 %v3128_v17, %v3117_v15  ;;  %v8722_v15 = vld [vmem:[%s10001_s13] ss:$8 sps:$4 sm:$0xff]  }
 0xaf8   :  { %v3132_v22 = vpack.c.bf16 %v3131_v19, %v3130_v18  ;;  %v8727_v18 = vld [vmem:[%s10001_s13 + $0x14] ss:$8 sps:$4 sm:$0xff]   ;;  %v8728_v19 = vld [vmem:[%s10001_s13 + $0x20] ss:$8 sps:$4 sm:$0xff]  }
 0xafa   :  { %3147 = vrot.lane.b32.xlu1 %v3132_v22, %s9258_s5  ;;  %v3134_v2 = vshrl.u32 %v3132_v22, 16  ;;  %v3137_v23 = vshll.u32 %v3132_v22, 16  ;;  %v8733_v22 = vld [vmem:[%s10001_s13 + $0x34] ss:$8 sps:$4 sm:$0xff]  }
 0xafc   :  { %v3142_v24 = vrot.slane %v3137_v23, 1  ;;  %v3136_v21 = vrot.slane %v3134_v2, 7 }
 0xafe   :  { %v3143_v25 = vor.u32 %v3142_v24, %v3134_v2  ;;  %v3139_v27 = vor.u32 %v3137_v23, %v3136_v21  ;;  %v8731_v2 = vld [vmem:[%s10001_s13 + $0x30] ss:$8 sps:$4 sm:$0xff]   ;;  %v8736_v23 = vld [vmem:[%s10001_s13 + $0x44] ss:$8 sps:$4 sm:$0xff]   ;;  %v8734_v24 = vld [vmem:[%s10001_s13 + $0x40] ss:$8 sps:$4 sm:$0xff]  }
 0xaff   :  { %v8739_v21 = vld [vmem:[%s10001_s13 + $0x54] ss:$8 sps:$4 sm:$0xff]  }
 0xb00   :  { %v3145_v28 = vsel %vm9948_vm15, %v3143_v25, 0  ;;  %v3141_v31 = vsel %vm9336_vm6, 0, %v3139_v27  ;;  %v8737_v25 = vld [vmem:[%s10001_s13 + $0x50] ss:$8 sps:$4 sm:$0xff]  }
 0xb01   :  { %3150 = vrot.lane.b32.xlu0 %v3145_v28, %s9255_s24 }
 0xb6c   :  { %v3148_v30 = vpop.permute.xlu1 %3147 }
 0xb6d   :  { %v3154_v32 = vsel %vm993_vm12, %v3141_v31, %v3148_v30 }
 0xb73   :  { %v3151_v33 = vpop.permute.xlu0 %3150 }
 0xb74   :  { %v3156_v36 = vsel %vm2357_vm5, %v3154_v32, %v3151_v33  ;;  %7753 = vmatprep.mubr.msk.bf16.mxu0 %vm611_vm10, %v3151_v33 }
 0xb75   :  { %3267 = vmatmul.mubr.bf16.vlgmr.msra.gmra.mrb[64].mxu0 %v3156_v36  ;;  %v8740_v36 = vld [vmem:[%s10028_s23] ss:$8 sps:$4 sm:$0xff]  }
 0xb76   :  { %4435 = vmatpush1.bf16.msra.mxu0 %v8740_v36 }
 0xc48   :  { %v3268_v38 = vpop.f32.mrb[64].mxu0 }
 0xc49   :  { %v3269_v42 = vadd.f32 %v3268_v38, %v3176_v37  ;;  %v3270_v45 = vpop.f32.mrb[65].mxu0  ;;  %v8745_v37 = vld [vmem:[%s10028_s23 + $0x14] ss:$8 sps:$4 sm:$0xff]   ;;  %v8743_v38 = vld [vmem:[%s10028_s23 + $0x10] ss:$8 sps:$4 sm:$0xff]  }
 0xc4a   :  { %v3271_v35 = vpop.f32.mrb[66].mxu0  ;;  %4436 = vmatprep.subr.bf16.mxu0 %v8745_v37  ;;  %v8751_v45 = vld [vmem:[%s10028_s23 + $0x34] ss:$8 sps:$4 sm:$0xff]  }
 0xc4b   :  { %v3275_v51 = vmax.f32 %v3269_v42, 0.0  ;;  %v3272_v54 = vadd.f32 %v3271_v35, %v3177_v41  ;;  %v3273_v61 = vpop.f32.mrb[67].mxu0  ;;  %v8748_v41 = vld [vmem:[%s10028_s23 + $0x24] ss:$8 sps:$4 sm:$0xff]   ;;  %4437 = vmatpush1.bf16.msra.mxu0 %v8743_v38  ;;  %v8746_v42 = vld [vmem:[%s10028_s23 + $0x20] ss:$8 sps:$4 sm:$0xff]  }
 0xc4c   :  { %4438 = vmatprep.subr.bf16.mxu0 %v8748_v41  ;;  %v8749_v35 = vld [vmem:[%s10028_s23 + $0x30] ss:$8 sps:$4 sm:$0xff]   ;;  %v8757_v61 = vld [vmem:[%s10028_s23 + $0x54] ss:$8 sps:$4 sm:$0xff]  }
 0xc4d   :  { %v3276_v58 = vmax.f32 %v3272_v54, 0.0  ;;  %v3277_v46 = vmul.f32 %v3275_v51, %v3123_v16  ;;  %v8725_v16 = vld [vmem:[%s10001_s13 + $0x10] ss:$8 sps:$4 sm:$0xff]   ;;  %v8754_v51 = vld [vmem:[%s10028_s23 + $0x44] ss:$8 sps:$4 sm:$0xff]  }
 0xc4e   :  { %v8752_v54 = vld [vmem:[%s10028_s23 + $0x40] ss:$8 sps:$4 sm:$0xff]  }
 0xc4f   :  { %v3278_v48 = vmul.f32 %v3276_v58, %v3128_v17  ;;  %v8730_v17 = vld [vmem:[%s10001_s13 + $0x24] ss:$8 sps:$4 sm:$0xff]   ;;  %4439 = vmatpush1.bf16.msra.mxu0 %v8746_v42  ;;  %v8755_v58 = vld [vmem:[%s10028_s23 + $0x50] ss:$8 sps:$4 sm:$0xff]   ;;  %s9274_s13 = smov 36  }
 0xc50   :  { %4440 = vmatprep.subr.bf16.mxu0 %v8751_v45  ;;  %s7441_s17 = sld [smem:[%s10989_s0 + %s9274_s13]]  }
 0xc51   :  { %v3279_v0 = vpack.c.bf16 %v3278_v48, %v3277_v46  ;;  %v8760_v46 = vld [vmem:[%s10028_s23 + $0x64] ss:$8 sps:$4 sm:$0xff]   ;;  %v8758_v48 = vld [vmem:[%s10028_s23 + $0x60] ss:$8 sps:$4 sm:$0xff]  }
 0xc53   :  { %8350 = vmatprep.subr.msk.bf16.mxu1 %vm2869_vm9, %v3279_v0  ;;  %v3300_v13 = vsel %vm2869_vm9, %v3279_v0, 0  ;;  %4441 = vmatpush1.bf16.msra.mxu0 %v8749_v35  ;;  %v8763_v0 = vld [vmem:[%s10028_s23 + $0x74] ss:$8 sps:$4 sm:$0xff]  }
 0xc54   :  { %8195 = vmatpush3.bf16.msra.mxu1 %v3300_v13  ;;  %4442 = vmatprep.subr.bf16.mxu0 %v8754_v51  ;;  %v8766_v13 = vld [vmem:[%s10028_s23 + $0x84] ss:$8 sps:$4 sm:$0xff]  }
 0xc55   :  { %3430 = vmatprep.subr.bf16.mxu1 %v8724_v5  ;;  %v8761_v5 = vld [vmem:[%s10028_s23 + $0x70] ss:$8 sps:$4 sm:$0xff]  }
 0xc57   :  { %8197 = vmatmul.mubr.msk.bf16.vlgmr.msra.gmra.mrb[32].mxu1 %vm3291_vm13, %v8721_v12  ;;  %4443 = vmatpush1.bf16.msra.mxu0 %v8752_v54  ;;  %v8764_v12 = vld [vmem:[%s10028_s23 + $0x80] ss:$8 sps:$4 sm:$0xff]  }
 0xc58   :  { %3431 = vmatpush1.bf16.msra.mxu1 %v8722_v15  ;;  %3462 = vmatprep.mubr.bf16.mxu1 %v9234_v34  ;;  %v8769_v15 = vld [vmem:[%s10028_s23 + $0x94] ss:$8 sps:$4 sm:$0xff]  }
 0xc59   :  { %3432 = vmatprep.subr.bf16.mxu1 %v8727_v18  ;;  %4444 = vmatprep.subr.bf16.mxu0 %v8757_v61  ;;  %v8767_v18 = vld [vmem:[%s10028_s23 + $0x90] ss:$8 sps:$4 sm:$0xff]  }
 0xc5b   :  { %4445 = vmatpush1.bf16.msra.mxu0 %v8755_v58  ;;  %v3577_v58 = vshrl.u32 %v9831_v47, 16 }
 0xc5c   :  { %3433 = vmatpush1.bf16.msra.mxu1 %v8725_v16  ;;  %4446 = vmatprep.subr.bf16.mxu0 %v8760_v46  ;;  %v8772_v16 = vld [vmem:[%s10028_s23 + $0xa4] ss:$8 sps:$4 sm:$0xff]  }
 0xc5d   :  { %3434 = vmatprep.subr.bf16.mxu1 %v8730_v17  ;;  %v8770_v17 = vld [vmem:[%s10028_s23 + $0xa0] ss:$8 sps:$4 sm:$0xff]  }
 0xc5f   :  { %4447 = vmatpush1.bf16.msra.mxu0 %v8758_v48 }
 0xc60   :  { %3435 = vmatpush1.bf16.msra.mxu1 %v8728_v19  ;;  %4448 = vmatprep.subr.bf16.mxu0 %v8763_v0  ;;  %v8775_v19 = vld [vmem:[%s10028_s23 + $0xb4] ss:$8 sps:$4 sm:$0xff]  }
 0xc61   :  { %3436 = vmatprep.subr.bf16.mxu1 %v8733_v22  ;;  %v8773_v22 = vld [vmem:[%s10028_s23 + $0xb0] ss:$8 sps:$4 sm:$0xff]  }
 0xc63   :  { %4449 = vmatpush1.bf16.msra.mxu0 %v8761_v5 }
 0xc64   :  { %3437 = vmatpush1.bf16.msra.mxu1 %v8731_v2  ;;  %4450 = vmatprep.subr.bf16.mxu0 %v8766_v13  ;;  %v8778_v2 = vld [vmem:[%s10028_s23 + $0xc4] ss:$8 sps:$4 sm:$0xff]  }
 0xc65   :  { %3438 = vmatprep.subr.bf16.mxu1 %v8736_v23  ;;  %v8776_v23 = vld [vmem:[%s10028_s23 + $0xc0] ss:$8 sps:$4 sm:$0xff]  }
 0xc67   :  { %4451 = vmatpush1.bf16.msra.mxu0 %v8764_v12 }
 0xc68   :  { %3439 = vmatpush1.bf16.msra.mxu1 %v8734_v24  ;;  %4452 = vmatprep.subr.bf16.mxu0 %v8769_v15  ;;  %v8781_v24 = vld [vmem:[%s10028_s23 + $0xd4] ss:$8 sps:$4 sm:$0xff]  }
 0xc69   :  { %3440 = vmatprep.subr.bf16.mxu1 %v8739_v21  ;;  %v8779_v21 = vld [vmem:[%s10028_s23 + $0xd0] ss:$8 sps:$4 sm:$0xff]  }
 0xc6b   :  { %4453 = vmatpush1.bf16.msra.mxu0 %v8767_v18 }
 0xc6c   :  { %3441 = vmatpush1.bf16.msra.mxu1 %v8737_v25  ;;  %4454 = vmatprep.subr.bf16.mxu0 %v8772_v16  ;;  %v8784_v25 = vld [vmem:[%s10028_s23 + $0xe4] ss:$8 sps:$4 sm:$0xff]  }
 0xc6f   :  { %4455 = vmatpush1.bf16.msra.mxu0 %v8770_v17 }
 0xc70   :  { %4456 = vmatprep.subr.bf16.mxu0 %v8775_v19 }
 0xc73   :  { %4457 = vmatpush1.bf16.msra.mxu0 %v8773_v22 }
 0xc74   :  { %4458 = vmatprep.subr.bf16.mxu0 %v8778_v2 }
 0xc77   :  { %4459 = vmatpush1.bf16.msra.mxu0 %v8776_v23  ;;  %v3579_v23 = vrot.slane %v3577_v58, 7 }
 0xc78   :  { %4460 = vmatprep.subr.bf16.mxu0 %v8781_v24 }
 0xc7b   :  { %4461 = vmatpush1.bf16.msra.mxu0 %v8779_v21 }
 0xc7c   :  { %4462 = vmatprep.subr.bf16.mxu0 %v8784_v25 }
 0xd2a   :  { %v8198_v27 = vpop.f32.mrb[32].mxu1 }
 0xd2b   :  { %v3336_v28 = vpop.f32.mrb[33].mxu1  ;;  %v3351_v33 = vpack.c.bf16 %v8198_v27, %v8198_v27  ;;  %v8782_v27 = vld [vmem:[%s10028_s23 + $0xe0] ss:$8 sps:$4 sm:$0xff]  }
 0xd2c   :  { %v8199_v30 = vpop.f32.mrb[34].mxu1  ;;  %4463 = vmatpush1.bf16.msra.mxu0 %v8782_v27  ;;  %v3580_v27 = vshll.u32 %v9831_v47, 16 }
 0xd2d   :  { %v3339_v31 = vpop.f32.mrb[35].mxu1  ;;  %v8785_v30 = vld [vmem:[%s10028_s23 + $0xf0] ss:$8 sps:$4 sm:$0xff]  }
 0xd2e   :  { %v3350_v32 = vpack.c.bf16 %v3339_v31, %v3336_v28  ;;  %v8787_v28 = vld [vmem:[%s10028_s23 + $0xf4] ss:$8 sps:$4 sm:$0xff]   ;;  %v8790_v31 = vld [vmem:[%s10028_s23 + $0x104] ss:$8 sps:$4 sm:$0xff]  }
 0xd2f   :  { %4464 = vmatprep.subr.bf16.mxu0 %v8787_v28 }
 0xd30   :  { %7770 = vmatmul.mubr.msk.bf16.vlgmr.msra.gmra.mrb[36].mxu1 %vm2357_vm5, %v3350_v32  ;;  %4465 = vmatpush1.bf16.msra.mxu0 %v8785_v30 }
 0xd31   :  { %3472 = vmatprep.mubr.bf16.mxu1 %v9234_v34  ;;  %4485 = vmatprep.subr.bf16.mxu0 %v8790_v31 }
 0xd38   :  { %7771 = vmatmul.mubr.msk.bf16.gmra.mrb[40].mxu1 %vm2357_vm5, %v3351_v33 }
 0xe03   :  { %v3464_v32 = vpop.f32.mrb[36].mxu1 }
 0xe04   :  { %v3466_v33 = vpop.f32.mrb[37].mxu1 }
 0xe05   :  { %v3468_v36 = vpop.f32.mrb[38].mxu1 }
 0xe06   :  { %v3481_v8 = vpack.c.bf16 %v3468_v36, %v3464_v32  ;;  %v3470_v37 = vpop.f32.mrb[39].mxu1 }
 0xe07   :  { %v3482_v38 = vpack.c.bf16 %v3470_v37, %v3466_v33  ;;  %v3593_v33 = vshll.u32 %v9843_v3, 16 }
 0xe08   :  { %v3486_v41 = vshrl.u32 %v3481_v8, 16  ;;  %v3489_v42 = vshll.u32 %v3481_v8, 16  ;;  %3538 = vrot.lane.b32.xlu1 %v3481_v8, %s9238_s28 }
 0xe09   :  { %v3493_v45 = vshrl.u32 %v3482_v38, 16  ;;  %v3496_v35 = vshll.u32 %v3482_v38, 16 }
 0xe0a   :  { %v3488_v51 = vrot.slane %v3486_v41, 7  ;;  %v3520_v46 = vrot.slane %v3489_v42, 1 }
 0xe0b   :  { %v3495_v54 = vrot.slane %v3493_v45, 7  ;;  %v3474_v61 = vpop.f32.mrb[40].mxu1  ;;  %v3524_v13 = vrot.slane %v3496_v35, 1 }
 0xe0c   :  { %v3483_v48 = vpack.c.bf16 %v3474_v61, %v3474_v61  ;;  %3540 = vrot.lane.b32.xlu1 %v3482_v38, %s9238_s28  ;;  %v3476_v0 = vpop.f32.mrb[41].mxu1  ;;  %v10066_v5 = vor.u32 %v3489_v42, %v3488_v51  ;;  %v3521_v21 = vor.u32 %v3520_v46, %v3486_v41  ;;  %v3582_v38 = vor.u32 %v3580_v27, %v3579_v23 }
 0xe0d   :  { %v3484_v12 = vpack.c.bf16 %v3476_v0, %v3476_v0  ;;  %v3478_v15 = vpop.f32.mrb[42].mxu1  ;;  %v3498_v18 = vor.u32 %v3496_v35, %v3495_v54  ;;  %v3525_v30 = vor.u32 %v3524_v13, %v3493_v45  ;;  %v3608_v41 = vrot.slane %v3580_v27, 1 }
 0xe0e   :  { %v3500_v16 = vshrl.u32 %v3483_v48, 16  ;;  %v3503_v17 = vshll.u32 %v3483_v48, 16  ;;  %3542 = vrot.lane.b32.xlu0 %v3483_v48, %s9238_s28  ;;  %v3479_v19 = vpop.f32.mrb[43].mxu1  ;;  %v3610_v45 = vrot.slane %v3593_v33, 1  ;;  %v3606_v61 = vsel %vm9336_vm6, 0, %v3582_v38 }
 0xe0f   :  { %v3508_v22 = vshrl.u32 %v3484_v12, 16  ;;  %v3511_v2 = vshll.u32 %v3484_v12, 16  ;;  %v3609_v46 = vor.u32 %v3608_v41, %v3577_v58 }
 0xe10   :  { %v3502_v24 = vrot.slane %v3500_v16, 7  ;;  %v3522_v25 = vrot.slane %v3503_v17, 1 }
 0xe11   :  { %v3510_v28 = vrot.slane %v3508_v22, 7  ;;  %v3526_v31 = vrot.slane %v3511_v2, 1  ;;  %v3611_v48 = vsel %vm197_vm0, %v3609_v46, %v3610_v45 }
 0xe12   :  { %v3523_v32 = vsel %vm197_vm0, %v3521_v21, %v3522_v25  ;;  %v3505_v36 = vor.u32 %v3503_v17, %v3502_v24  ;;  %v3528_v17 = vor.u32 %v3522_v25, %v3500_v16  ;;  %v8793_v21 = vld [vmem:[%s10028_s23 + $0x114] ss:$8 sps:$4 sm:$0xff]   ;;  %v8796_v25 = vld [vmem:[%s10028_s23 + $0x124] ss:$8 sps:$4 sm:$0xff]  }
 0xe13   :  { %v3513_v8 = vor.u32 %v3511_v2, %v3510_v28  ;;  %3550 = vrot.lane.b32.xlu1 %v3523_v32, %s9247_s1  ;;  %v3527_v37 = vsel %vm197_vm0, %v3525_v30, %v3526_v31  ;;  %v8788_v2 = vld [vmem:[%s10028_s23 + $0x100] ss:$8 sps:$4 sm:$0xff]  }
 0xe14   :  { %3552 = vrot.lane.b32.xlu0 %v3527_v37, %s9247_s1  ;;  %v3506_v42 = vsel %vm169_vm4, %v3488_v51, %v3505_v36  ;;  %v3612_v51 = vrot.slane %v3587_v63, 1  ;;  %v3529_v63 = vor.u32 %v3526_v31, %v3508_v22  ;;  %v3519_v22 = vsel %vm9336_vm6, 0, %v3498_v18  ;;  %v8794_v30 = vld [vmem:[%s10028_s23 + $0x120] ss:$8 sps:$4 sm:$0xff]   ;;  %v8802_v36 = vld [vmem:[%s10028_s23 + $0x144] ss:$8 sps:$4 sm:$0xff]  }
 0xe15   :  { %v3514_v35 = vsel %vm169_vm4, %v3495_v54, %v3513_v8  ;;  %v3590_v54 = vshrl.u32 %v9843_v3, 16  ;;  %v3607_v37 = vsel %vm9336_vm6, 0, %v9849_v1 }
 0xe16   :  { %v3613_v58 = vor.u32 %v3612_v51, %v3584_v59 }
 0xe17   :  { %3626 = vrot.lane.b32.xlu1 %v9831_v47, %s9238_s28  ;;  %v3614_v47 = vrot.slane %v3600_v7, 1  ;;  %v3616_v0 = vor.u32 %v3610_v45, %v3590_v54  ;;  %v3592_v15 = vrot.slane %v3590_v54, 7  ;;  %v8803_v54 = vld [vmem:[%s10028_s23 + $0x150] ss:$8 sps:$4 sm:$0xff]  }
 0xe18   :  { %3665 = vrot.lane.b32.xlu0 %v3606_v61, %s9255_s24  ;;  %v8805_v61 = vld [vmem:[%s10028_s23 + $0x154] ss:$8 sps:$4 sm:$0xff]  }
 0xe19   :  { %v3615_v13 = vsel %vm197_vm0, %v3613_v58, %v3614_v47  ;;  %v3620_v7 = vsel %vm9295_vm3, %v3616_v0, 0  ;;  %v3595_v19 = vor.u32 %v3593_v33, %v3592_v15  ;;  %v8797_v33 = vld [vmem:[%s10028_s23 + $0x130] ss:$8 sps:$4 sm:$0xff]   ;;  %v3617_v45 = vor.u32 %v3614_v47, %v3597_v6  ;;  %v8808_v6 = vld [vmem:[%s10028_s23 + $0x164] ss:$8 sps:$4 sm:$0xff]  }
 0xe1b   :  { %3638 = vrot.lane.b32.xlu1 %v3611_v48, %s9247_s1  ;;  %v3596_v59 = vsel %vm169_vm4, %v3579_v23, %v3595_v19  ;;  %v3518_v23 = vsel %vm9336_vm6, 0, %v10066_v5  ;;  %v8799_v5 = vld [vmem:[%s10028_s23 + $0x134] ss:$8 sps:$4 sm:$0xff]   ;;  %v3621_v51 = vsel %vm9295_vm3, %v3617_v45, 0  ;;  %v8809_v19 = vld [vmem:[%s10028_s23 + $0x170] ss:$8 sps:$4 sm:$0xff]  }
 0xe1c   :  { %3628 = vrot.lane.b32.xlu0 %v9833_v53, %s9238_s28  ;;  %v3532_v53 = vsel %vm9295_vm3, %v3528_v17, 0  ;;  %v8838_v45 = vld [vmem:[%s10028_s23 + $0x204] ss:$8 sps:$4 sm:$0xff]  }
 0xe1f   :  { %3632 = vrot.lane.b32.xlu1 %v9845_v4, %s9238_s28 }
 0xe20   :  { %3630 = vrot.lane.b32.xlu0 %v9843_v3, %s9238_s28  ;;  %v3533_v3 = vsel %vm9295_vm3, %v3529_v63, 0  ;;  %v8811_v63 = vld [vmem:[%s10028_s23 + $0x174] ss:$8 sps:$4 sm:$0xff]  }
 0xe23   :  { %3640 = vrot.lane.b32.xlu1 %v3615_v13, %s9247_s1  ;;  %v8806_v13 = vld [vmem:[%s10028_s23 + $0x160] ss:$8 sps:$4 sm:$0xff]  }
 0xe24   :  { %3642 = vrot.lane.b32.xlu0 %v3620_v7, %s9247_s1 }
 0xe27   :  { %3556 = vrot.lane.b32.xlu1 %v3533_v3, %s9247_s1 }
 0xe28   :  { %3554 = vrot.lane.b32.xlu0 %v3532_v53, %s9247_s1 }
 0xe2b   :  { %3673 = vrot.lane.b32.xlu1 %v3596_v59, %s9255_s24 }
 0xe2c   :  { %3544 = vrot.lane.b32.xlu0 %v3484_v12, %s9238_s28  ;;  %v8791_v12 = vld [vmem:[%s10028_s23 + $0x110] ss:$8 sps:$4 sm:$0xff]  }
 0xe7a   :  { %v10111_v16 = vpop.permute.xlu1 %3538 }
 0xe7b   :  { %v3562_v24 = vsel %vm629_vm11, %v3519_v22, %v10111_v16  ;;  %v8812_v22 = vld [vmem:[%s10028_s23 + $0x180] ss:$8 sps:$4 sm:$0xff]  }
 0xe7c   :  { %4466 = vmatprep.mubr.bf16.mxu0 %v3562_v24  ;;  %v8817_v24 = vld [vmem:[%s10028_s23 + $0x194] ss:$8 sps:$4 sm:$0xff]  }
 0xe7d   :  { %4467 = vmatmul.mubr.bf16.vlgmr.msra.gmra.mrb[68].mxu0 %v3518_v23  ;;  %v4646_v23 = vld [vmem:[%s10163_s29 + $0x10] sm:$0xf] }
 0xe7e   :  { %4486 = vmatpush1.bf16.msra.mxu0 %v8788_v2  ;;  %v10126_v27 = vpop.permute.xlu1 %3540  ;;  %v4644_v2 = vld [vmem:[%s10163_s29] sm:$0xff] }
 0xe7f   :  { %4487 = vmatprep.subr.bf16.mxu0 %v8793_v21  ;;  %v8815_v21 = vld [vmem:[%s10028_s23 + $0x190] ss:$8 sps:$4 sm:$0xff]  }
 0xe80   :  { %v10124_v18 = vpop.permute.xlu0 %3542 }
 0xe81   :  { %v3566_v28 = vsel %vm629_vm11, %v3514_v35, %v10124_v18  ;;  %v8800_v35 = vld [vmem:[%s10028_s23 + $0x140] ss:$8 sps:$4 sm:$0xff]  }
 0xe82   :  { %4488 = vmatpush1.bf16.msra.mxu0 %v8791_v12  ;;  %4476 = vmatprep.mubr.bf16.mxu0 %v3566_v28  ;;  %v8820_v12 = vld [vmem:[%s10028_s23 + $0x1a4] ss:$8 sps:$4 sm:$0xff]   ;;  %v8823_v28 = vld [vmem:[%s10028_s23 + $0x1b4] ss:$8 sps:$4 sm:$0xff]  }
 0xe83   :  { %4489 = vmatprep.subr.bf16.mxu0 %v8796_v25  ;;  %v8818_v25 = vld [vmem:[%s10028_s23 + $0x1a0] ss:$8 sps:$4 sm:$0xff]  }
 0xe85   :  { %v10132_v31 = vpop.permute.xlu1 %3550  ;;  %4477 = vmatmul.mubr.bf16.gmra.mrb[72].mxu0 %v3506_v42 }
 0xe86   :  { %4490 = vmatpush1.bf16.msra.mxu0 %v8794_v30  ;;  %v3553_v32 = vpop.permute.xlu0 %3552  ;;  %v8821_v30 = vld [vmem:[%s10028_s23 + $0x1b0] ss:$8 sps:$4 sm:$0xff]  }
 0xe87   :  { %4491 = vmatprep.subr.bf16.mxu0 %v8799_v5  ;;  %v3558_v38 = vsel %vm1971_vm1, %v10132_v31, %v3553_v32  ;;  %v8826_v5 = vld [vmem:[%s10028_s23 + $0x1c4] ss:$8 sps:$4 sm:$0xff]   ;;  %v8824_v32 = vld [vmem:[%s10028_s23 + $0x1c0] ss:$8 sps:$4 sm:$0xff]  }
 0xe89   :  { %v3627_v8 = vpop.permute.xlu1 %3626 }
 0xe8a   :  { %4492 = vmatpush1.bf16.msra.mxu0 %v8797_v33  ;;  %v10141_v41 = vpop.permute.xlu0 %3665  ;;  %v3650_v42 = vsel %vm629_vm11, %v3607_v37, %v3627_v8  ;;  %v8829_v33 = vld [vmem:[%s10028_s23 + $0x1d4] ss:$8 sps:$4 sm:$0xff]   ;;  %v8830_v37 = vld [vmem:[%s10028_s23 + $0x1e0] ss:$8 sps:$4 sm:$0xff]  }
 0xe8b   :  { %3667 = vrot.lane.b32.xlu0 %v3650_v42, %s9255_s24  ;;  %4493 = vmatprep.subr.bf16.mxu0 %v8802_v36  ;;  %v3696_v1 = vsel %vm2357_vm5, %v3558_v38, %v10141_v41  ;;  %v8827_v36 = vld [vmem:[%s10028_s23 + $0x1d0] ss:$8 sps:$4 sm:$0xff]   ;;  %v8835_v38 = vld [vmem:[%s10028_s23 + $0x1f4] ss:$8 sps:$4 sm:$0xff]  }
 0xe8c   :  { %4517 = vmatprep.mubr.bf16.mxu0 %v3696_v1 }
 0xe8d   :  { %v3639_v46 = vpop.permute.xlu1 %3638 }
 0xe8e   :  { %4494 = vmatpush1.bf16.msra.mxu0 %v8800_v35  ;;  %v3629_v48 = vpop.permute.xlu0 %3628  ;;  %v8833_v35 = vld [vmem:[%s10028_s23 + $0x1f0] ss:$8 sps:$4 sm:$0xff]  }
 0xe8f   :  { %v3634_v4 = vsel %vm629_vm11, %v3627_v8, %v3629_v48  ;;  %3644 = vrot.lane.b32.xlu0 %v3621_v51, %s9247_s1  ;;  %4495 = vmatprep.subr.bf16.mxu0 %v8805_v61  ;;  %v8832_v8 = vld [vmem:[%s10028_s23 + $0x1e4] ss:$8 sps:$4 sm:$0xff]   ;;  %v3546_v48 = vsel %vm629_vm11, %v10111_v16, %v10126_v27  ;;  %v8841_v51 = vld [vmem:[%s10028_s23 + $0x214] ss:$8 sps:$4 sm:$0xff]  }
 0xe90   :  { %v3656_v47 = vsel %vm1971_vm1, %v3634_v4, %v3639_v46  ;;  %v8844_v16 = vld [vmem:[%s10028_s23 + $0x224] ss:$8 sps:$4 sm:$0xff]  }
 0xe91   :  { %v3633_v0 = vpop.permute.xlu1 %3632  ;;  %3669 = vrot.lane.b32.xlu1 %v3656_v47, %s9255_s24 }
 0xe92   :  { %4496 = vmatpush1.bf16.msra.mxu0 %v8803_v54  ;;  %v3631_v58 = vpop.permute.xlu0 %3630  ;;  %v3570_v54 = vsel %vm1971_vm1, %v3546_v48, %v10132_v31  ;;  %v8842_v31 = vld [vmem:[%s10028_s23 + $0x220] ss:$8 sps:$4 sm:$0xff]  }
 0xe93   :  { %4497 = vmatprep.subr.bf16.mxu0 %v8808_v6  ;;  %v3653_v15 = vsel %vm629_vm11, %v9869_v11, %v3631_v58  ;;  %v3635_v17 = vsel %vm629_vm11, %v3631_v58, %v3633_v0  ;;  %v8814_v11 = vld [vmem:[%s10028_s23 + $0x184] ss:$8 sps:$4 sm:$0xff]   ;;  %v8839_v0 = vld [vmem:[%s10028_s23 + $0x210] ss:$8 sps:$4 sm:$0xff]   ;;  %v8847_v58 = vld [vmem:[%s10028_s23 + $0x234] ss:$8 sps:$4 sm:$0xff]  }
 0xe94   :  { %v8884_v48 = vld [vmem:[%s10028_s23 + $0x300] ss:$8 sps:$4 sm:$0xff]  }
 0xe95   :  { %v3641_v7 = vpop.permute.xlu1 %3640  ;;  %3675 = vrot.lane.b32.xlu1 %v3653_v15, %s9255_s24  ;;  %v8845_v15 = vld [vmem:[%s10028_s23 + $0x230] ss:$8 sps:$4 sm:$0xff]  }
 0xe96   :  { %4498 = vmatpush1.bf16.msra.mxu0 %v8806_v13  ;;  %v10170_v3 = vpop.permute.xlu0 %3642  ;;  %v3646_v59 = vsel %vm1971_vm1, %v3639_v46, %v3641_v7  ;;  %v8836_v46 = vld [vmem:[%s10028_s23 + $0x200] ss:$8 sps:$4 sm:$0xff]  }
 0xe97   :  { %4499 = vmatprep.subr.bf16.mxu0 %v8811_v63  ;;  %v3659_v53 = vsel %vm1971_vm1, %v3635_v17, %v10170_v3  ;;  %v8850_v63 = vld [vmem:[%s10028_s23 + $0x244] ss:$8 sps:$4 sm:$0xff]   ;;  %v8848_v7 = vld [vmem:[%s10028_s23 + $0x240] ss:$8 sps:$4 sm:$0xff]   ;;  %v8851_v17 = vld [vmem:[%s10028_s23 + $0x250] ss:$8 sps:$4 sm:$0xff]  }
 0xe98   :  { %3677 = vrot.lane.b32.xlu0 %v3659_v53, %s9255_s24  ;;  %v8854_v53 = vld [vmem:[%s10028_s23 + $0x260] ss:$8 sps:$4 sm:$0xff]  }
 0xe99   :  { %3671 = vrot.lane.b32.xlu1 %v3646_v59, %s9255_s24  ;;  %v3557_v42 = vpop.permute.xlu1 %3556  ;;  %v8857_v59 = vld [vmem:[%s10028_s23 + $0x270] ss:$8 sps:$4 sm:$0xff]  }
 0xe9a   :  { %4500 = vmatpush1.bf16.msra.mxu0 %v8809_v19  ;;  %v3555_v1 = vpop.permute.xlu0 %3554  ;;  %v8856_v19 = vld [vmem:[%s10028_s23 + $0x264] ss:$8 sps:$4 sm:$0xff]  }
 0xe9b   :  { %4501 = vmatprep.subr.bf16.mxu0 %v8814_v11  ;;  %v3559_v4 = vsel %vm1971_vm1, %v3555_v1, %v3557_v42  ;;  %v8859_v11 = vld [vmem:[%s10028_s23 + $0x274] ss:$8 sps:$4 sm:$0xff]   ;;  %v8886_v42 = vld [vmem:[%s10028_s23 + $0x304] ss:$8 sps:$4 sm:$0xff]  }
 0xe9d   :  { %4649 = vperm.xlu1 %8397, %v4644_v2   ;;  %v10197_v61 = vpop.permute.xlu1 %3673  ;;  %v8860_v2 = vld [vmem:[%s10028_s23 + $0x280] ss:$8 sps:$4 sm:$0xff]  }
 0xe9e   :  { %4502 = vmatpush1.bf16.msra.mxu0 %v8812_v22  ;;  %v3700_v6 = vsel %vm2357_vm5, %v3559_v4, %v10197_v61  ;;  %v3545_v47 = vpop.permute.xlu0 %3544  ;;  %v8862_v22 = vld [vmem:[%s10028_s23 + $0x284] ss:$8 sps:$4 sm:$0xff]   ;;  %v8889_v4 = vld [vmem:[%s10028_s23 + $0x314] ss:$8 sps:$4 sm:$0xff]  }
 0xe9f   :  { %4503 = vmatprep.subr.bf16.mxu0 %v8817_v24  ;;  %v3547_v27 = vsel %vm629_vm11, %v10124_v18, %v3545_v47  ;;  %v8853_v18 = vld [vmem:[%s10028_s23 + $0x254] ss:$8 sps:$4 sm:$0xff]  }
 0xea0   :  { %v3574_v13 = vsel %vm1971_vm1, %v3547_v27, %v3555_v1  ;;  %v8865_v24 = vld [vmem:[%s10028_s23 + $0x294] ss:$8 sps:$4 sm:$0xff]  }
 0xea1   :  { %4659 = vperm.xlu1 %8397, %v4646_v23   ;;  %v8868_v23 = vld [vmem:[%s10028_s23 + $0x2a4] ss:$8 sps:$4 sm:$0xff]  }
 0xea2   :  { %4504 = vmatpush1.bf16.msra.mxu0 %v8815_v21  ;;  %v8863_v21 = vld [vmem:[%s10028_s23 + $0x290] ss:$8 sps:$4 sm:$0xff]  }
 0xea3   :  { %4505 = vmatprep.subr.bf16.mxu0 %v8820_v12  ;;  %v8866_v12 = vld [vmem:[%s10028_s23 + $0x2a0] ss:$8 sps:$4 sm:$0xff]  }
 0xea6   :  { %4506 = vmatpush1.bf16.msra.mxu0 %v8818_v25  ;;  %v8871_v25 = vld [vmem:[%s10028_s23 + $0x2b4] ss:$8 sps:$4 sm:$0xff]  }
 0xea7   :  { %4507 = vmatprep.subr.bf16.mxu0 %v8823_v28  ;;  %v8869_v28 = vld [vmem:[%s10028_s23 + $0x2b0] ss:$8 sps:$4 sm:$0xff]  }
 0xeaa   :  { %4508 = vmatpush1.bf16.msra.mxu0 %v8821_v30  ;;  %v8874_v30 = vld [vmem:[%s10028_s23 + $0x2c4] ss:$8 sps:$4 sm:$0xff]  }
 0xeab   :  { %4509 = vmatprep.subr.bf16.mxu0 %v8826_v5  ;;  %v8872_v5 = vld [vmem:[%s10028_s23 + $0x2c0] ss:$8 sps:$4 sm:$0xff]  }
 0xeae   :  { %4510 = vmatpush1.bf16.msra.mxu0 %v8824_v32  ;;  %v8877_v32 = vld [vmem:[%s10028_s23 + $0x2d4] ss:$8 sps:$4 sm:$0xff]  }
 0xeaf   :  { %4511 = vmatprep.subr.bf16.mxu0 %v8829_v33  ;;  %v8875_v33 = vld [vmem:[%s10028_s23 + $0x2d0] ss:$8 sps:$4 sm:$0xff]  }
 0xeb2   :  { %4512 = vmatpush1.bf16.msra.mxu0 %v8827_v36  ;;  %v8880_v36 = vld [vmem:[%s10028_s23 + $0x2e4] ss:$8 sps:$4 sm:$0xff]  }
 0xeb3   :  { %4513 = vmatprep.subr.bf16.mxu0 %v8832_v8  ;;  %v8878_v8 = vld [vmem:[%s10028_s23 + $0x2e0] ss:$8 sps:$4 sm:$0xff]  }
 0xeb6   :  { %4514 = vmatpush1.bf16.msra.mxu0 %v8830_v37  ;;  %v8883_v37 = vld [vmem:[%s10028_s23 + $0x2f4] ss:$8 sps:$4 sm:$0xff]  }
 0xeb7   :  { %4515 = vmatprep.subr.bf16.mxu0 %v8835_v38  ;;  %v8881_v38 = vld [vmem:[%s10028_s23 + $0x2f0] ss:$8 sps:$4 sm:$0xff]  }
 0xeba   :  { %4516 = vmatpush1.bf16.msra.mxu0 %v8833_v35 }
 0xebb   :  { %4536 = vmatprep.subr.bf16.mxu0 %v8838_v45 }
 0xebd   :  { %4518 = vmatmul.mubr.bf16.vlgmr.msra.gmra.mrb[68].mxu0 %v3570_v54  ;;  %v4645_v54 = vld [vmem:[%s10163_s29 + $0x8] sm:$0xff] }
 0xebe   :  { %4527 = vmatprep.mubr.bf16.mxu0 %v3700_v6  ;;  %4537 = vmatpush1.bf16.msra.mxu0 %v8836_v46 }
 0xebf   :  { %4538 = vmatprep.subr.bf16.mxu0 %v8841_v51 }
 0xec2   :  { %4539 = vmatpush1.bf16.msra.mxu0 %v8839_v0  ;;  %v8892_v0 = vld [vmem:[%s10028_s23 + $0x324] ss:$8 sps:$4 sm:$0xff]  }
 0xec3   :  { %4540 = vmatprep.subr.bf16.mxu0 %v8844_v16 }
 0xec5   :  { %4528 = vmatmul.mubr.bf16.gmra.mrb[72].mxu0 %v3574_v13 }
 0xec6   :  { %4541 = vmatpush1.bf16.msra.mxu0 %v8842_v31  ;;  %v8890_v31 = vld [vmem:[%s10028_s23 + $0x320] ss:$8 sps:$4 sm:$0xff]  }
 0xec7   :  { %4542 = vmatprep.subr.bf16.mxu0 %v8847_v58 }
 0xeca   :  { %4543 = vmatpush1.bf16.msra.mxu0 %v8845_v15  ;;  %v8893_v15 = vld [vmem:[%s10028_s23 + $0x330] ss:$8 sps:$4 sm:$0xff]  }
 0xecb   :  { %4544 = vmatprep.subr.bf16.mxu0 %v8850_v63  ;;  %v8898_v63 = vld [vmem:[%s10028_s23 + $0x344] ss:$8 sps:$4 sm:$0xff]  }
 0xece   :  { %4545 = vmatpush1.bf16.msra.mxu0 %v8848_v7  ;;  %v8896_v7 = vld [vmem:[%s10028_s23 + $0x340] ss:$8 sps:$4 sm:$0xff]  }
 0xecf   :  { %4546 = vmatprep.subr.bf16.mxu0 %v8853_v18  ;;  %v8901_v18 = vld [vmem:[%s10028_s23 + $0x354] ss:$8 sps:$4 sm:$0xff]  }
 0xed2   :  { %4547 = vmatpush1.bf16.msra.mxu0 %v8851_v17  ;;  %v8904_v17 = vld [vmem:[%s10028_s23 + $0x364] ss:$8 sps:$4 sm:$0xff]  }
 0xed3   :  { %4548 = vmatprep.subr.bf16.mxu0 %v8856_v19  ;;  %v8902_v19 = vld [vmem:[%s10028_s23 + $0x360] ss:$8 sps:$4 sm:$0xff]  }
 0xed6   :  { %4549 = vmatpush1.bf16.msra.mxu0 %v8854_v53  ;;  %v8907_v53 = vld [vmem:[%s10028_s23 + $0x374] ss:$8 sps:$4 sm:$0xff]  }
 0xed7   :  { %4550 = vmatprep.subr.bf16.mxu0 %v8859_v11  ;;  %v8905_v11 = vld [vmem:[%s10028_s23 + $0x370] ss:$8 sps:$4 sm:$0xff]  }
 0xeda   :  { %4551 = vmatpush1.bf16.msra.mxu0 %v8857_v59  ;;  %v8910_v59 = vld [vmem:[%s10028_s23 + $0x384] ss:$8 sps:$4 sm:$0xff]  }
 0xedb   :  { %4552 = vmatprep.subr.bf16.mxu0 %v8862_v22  ;;  %v8908_v22 = vld [vmem:[%s10028_s23 + $0x380] ss:$8 sps:$4 sm:$0xff]  }
 0xede   :  { %4553 = vmatpush1.bf16.msra.mxu0 %v8860_v2  ;;  %v8913_v2 = vld [vmem:[%s10028_s23 + $0x394] ss:$8 sps:$4 sm:$0xff]  }
 0xedf   :  { %4554 = vmatprep.subr.bf16.mxu0 %v8865_v24  ;;  %v8911_v24 = vld [vmem:[%s10028_s23 + $0x390] ss:$8 sps:$4 sm:$0xff]  }
 0xee2   :  { %4555 = vmatpush1.bf16.msra.mxu0 %v8863_v21  ;;  %v8916_v21 = vld [vmem:[%s10028_s23 + $0x3a4] ss:$8 sps:$4 sm:$0xff]  }
 0xee3   :  { %4556 = vmatprep.subr.bf16.mxu0 %v8868_v23  ;;  %v8914_v23 = vld [vmem:[%s10028_s23 + $0x3a0] ss:$8 sps:$4 sm:$0xff]  }
 0xee6   :  { %4557 = vmatpush1.bf16.msra.mxu0 %v8866_v12  ;;  %v8919_v12 = vld [vmem:[%s10028_s23 + $0x3b4] ss:$8 sps:$4 sm:$0xff]  }
 0xee7   :  { %4558 = vmatprep.subr.bf16.mxu0 %v8871_v25  ;;  %v8917_v25 = vld [vmem:[%s10028_s23 + $0x3b0] ss:$8 sps:$4 sm:$0xff]  }
 0xeea   :  { %4559 = vmatpush1.bf16.msra.mxu0 %v8869_v28 }
 0xeeb   :  { %4560 = vmatprep.subr.bf16.mxu0 %v8874_v30 }
 0xeee   :  { %4561 = vmatpush1.bf16.msra.mxu0 %v8872_v5 }
 0xeef   :  { %4562 = vmatprep.subr.bf16.mxu0 %v8877_v32 }
 0xef2   :  { %4563 = vmatpush1.bf16.msra.mxu0 %v8875_v33 }
 0xef3   :  { %4564 = vmatprep.subr.bf16.mxu0 %v8880_v36 }
 0xef6   :  { %4565 = vmatpush1.bf16.msra.mxu0 %v8878_v8 }
 0xef7   :  { %4566 = vmatprep.subr.bf16.mxu0 %v8883_v37 }
 0xefa   :  { %4567 = vmatpush1.bf16.msra.mxu0 %v8881_v38 }
 0xefb   :  { %4587 = vmatprep.subr.bf16.mxu0 %v8886_v42 }
 0xefd   :  { %v3668_v35 = vpop.permute.xlu0 %3667 }
 0xefe   :  { %v3682_v6 = vsel %vm2357_vm5, %v10141_v41, %v3668_v35  ;;  %v8895_v41 = vld [vmem:[%s10028_s23 + $0x334] ss:$8 sps:$4 sm:$0xff]  }
 0xf01   :  { %v3645_v45 = vpop.permute.xlu0 %3644 }
 0xf02   :  { %v3647_v1 = vsel %vm1971_vm1, %v10170_v3, %v3645_v45  ;;  %v8887_v3 = vld [vmem:[%s10028_s23 + $0x310] ss:$8 sps:$4 sm:$0xff]  }
 0xf03   :  { %3679 = vrot.lane.b32.xlu0 %v3647_v1, %s9255_s24  ;;  %v10245_v46 = vpop.permute.xlu1 %3669  ;;  %s9264_s24 = smov 28  }
 0xf04   :  { %v3683_v51 = vsel %vm2357_vm5, %v3668_v35, %v10245_v46  ;;  %s10289_s3 = sld [smem:[%s10989_s0 + %s9264_s24]]  }
 0xf05   :  { %4568 = vmatprep.mubr.bf16.mxu0 %v3683_v51  ;;  %s10663_s24 = sld [smem:[%s10989_s0 + %s9269_s26]]  }
 0xf06   :  { %4569 = vmatmul.mubr.bf16.vlgmr.msra.gmra.mrb[68].mxu0 %v3682_v6 }
 0xf07   :  { %4588 = vmatpush1.bf16.msra.mxu0 %v8884_v48  ;;  %4654 = vperm.xlu0 %8396, %v4645_v54   ;;  %v3676_v47 = vpop.permute.xlu1 %3675 }
 0xf08   :  { %4589 = vmatprep.subr.bf16.mxu0 %v8889_v4  ;;  %v3685_v58 = vsel %vm2357_vm5, %v10197_v61, %v3676_v47  ;;  %v8899_v61 = vld [vmem:[%s10028_s23 + $0x350] ss:$8 sps:$4 sm:$0xff]  }
 0xf0a   :  { %v3678_v16 = vpop.permute.xlu0 %3677  ;;  %v8920_v32 = vld [vmem:[%s10289_s3 + $0x40] sm:$0xff]   ;;  %v8922_v36 = vld [vmem:[%s10289_s3 + $0x48] sm:$0xff]   ;;  %v8924_v37 = vld [vmem:[%s10289_s3 + $0x50] sm:$0xff]  }
 0xf0b   :  { %4590 = vmatpush1.bf16.msra.mxu0 %v8887_v3  ;;  %v3686_v27 = vsel %vm2357_vm5, %v3676_v47, %v3678_v16  ;;  %v3672_v13 = vpop.permute.xlu1 %3671  ;;  %v8921_v33 = vld [vmem:[%s10289_s3] sm:$0xff]   ;;  %8153 = vmatprep.subr.bf16.mxu1 %v8920_v32  ;;  %v8923_v8 = vld [vmem:[%s10289_s3 + $0x8] sm:$0xff]   ;;  %v8925_v38 = vld [vmem:[%s10289_s3 + $0x10] sm:$0xff]  }
 0xf0c   :  { %4578 = vmatprep.mubr.bf16.mxu0 %v3686_v27  ;;  %4591 = vmatprep.subr.bf16.mxu0 %v8892_v0  ;;  %v3684_v28 = vsel %vm2357_vm5, %v10245_v46, %v3672_v13  ;;  %v8926_v42 = vld [vmem:[%s10289_s3 + $0x58] sm:$0xff]   ;;  %v8928_v45 = vld [vmem:[%s10289_s3 + $0x60] sm:$0xff]   ;;  %v8930_v46 = vld [vmem:[%s10289_s3 + $0x68] sm:$0xff]  }
 0xf0d   :  { %8154 = vmatpush3.bf16.msra.mxu1 %v8921_v33  ;;  %v8927_v35 = vld [vmem:[%s10289_s3 + $0x18] sm:$0xff]   ;;  %v8929_v1 = vld [vmem:[%s10289_s3 + $0x20] sm:$0xff]   ;;  %v8931_v48 = vld [vmem:[%s10289_s3 + $0x28] sm:$0xff]  }
 0xf0e   :  { %4579 = vmatmul.mubr.bf16.gmra.mrb[72].mxu0 %v3685_v58  ;;  %8155 = vmatprep.subr.bf16.mxu1 %v8922_v36  ;;  %v8932_v51 = vld [vmem:[%s10289_s3 + $0x70] sm:$0xff]   ;;  %v8934_v4 = vld [vmem:[%s10289_s3 + $0x78] sm:$0xff]   ;;  %v3822_v3 = vld [vmem:[%s10309_s8] sm:$0xff] }
 0xf0f   :  { %4592 = vmatpush1.bf16.msra.mxu0 %v8890_v31  ;;  %7892 = vmatprep.mubr.msk.bf16.mxu0 %vm1971_vm1, %v3672_v13  ;;  %v8933_v54 = vld [vmem:[%s10289_s3 + $0x30] sm:$0xff]   ;;  %v8935_v6 = vld [vmem:[%s10289_s3 + $0x38] sm:$0xff]   ;;  %v3823_v47 = vld [vmem:[%s10309_s8 + $0x8] sm:$0xff] }
 0xf10   :  { %4593 = vmatprep.subr.bf16.mxu0 %v8895_v41  ;;  %v3825_v41 = vld [vmem:[%s10309_s8 + $0x18] sm:$0xff] }
 0xf11   :  { %8156 = vmatpush3.bf16.msra.mxu1 %v8923_v8 }
 0xf12   :  { %8157 = vmatprep.subr.bf16.mxu1 %v8924_v37 }
 0xf13   :  { %4594 = vmatpush1.bf16.msra.mxu0 %v8893_v15 }
 0xf14   :  { %4595 = vmatprep.subr.bf16.mxu0 %v8898_v63 }
 0xf15   :  { %8158 = vmatpush3.bf16.msra.mxu1 %v8925_v38 }
 0xf16   :  { %8159 = vmatprep.subr.bf16.mxu1 %v8926_v42 }
 0xf17   :  { %4596 = vmatpush1.bf16.msra.mxu0 %v8896_v7 }
 0xf18   :  { %4597 = vmatprep.subr.bf16.mxu0 %v8901_v18 }
 0xf19   :  { %8160 = vmatpush3.bf16.msra.mxu1 %v8927_v35 }
 0xf1a   :  { %8161 = vmatprep.subr.bf16.mxu1 %v8928_v45 }
 0xf1b   :  { %4598 = vmatpush1.bf16.msra.mxu0 %v8899_v61 }
 0xf1c   :  { %4599 = vmatprep.subr.bf16.mxu0 %v8904_v17 }
 0xf1d   :  { %8162 = vmatpush3.bf16.msra.mxu1 %v8929_v1 }
 0xf1e   :  { %8163 = vmatprep.subr.bf16.mxu1 %v8930_v46 }
 0xf1f   :  { %4600 = vmatpush1.bf16.msra.mxu0 %v8902_v19  ;;  %v10317_v19 = vpop.permute.xlu1 %4649 }
 0xf20   :  { %4601 = vmatprep.subr.bf16.mxu0 %v8907_v53 }
 0xf21   :  { %8164 = vmatpush3.bf16.msra.mxu1 %v8931_v48 }
 0xf22   :  { %8165 = vmatprep.subr.bf16.mxu1 %v8932_v51 }
 0xf23   :  { %4602 = vmatpush1.bf16.msra.mxu0 %v8905_v11  ;;  %v10329_v38 = vpop.permute.xlu1 %4659 }
 0xf24   :  { %4603 = vmatprep.subr.bf16.mxu0 %v8910_v59 }
 0xf25   :  { %8166 = vmatpush3.bf16.msra.mxu1 %v8933_v54 }
 0xf26   :  { %8167 = vmatprep.subr.bf16.mxu1 %v8934_v4 }
 0xf27   :  { %4604 = vmatpush1.bf16.msra.mxu0 %v8908_v22 }
 0xf28   :  { %4605 = vmatprep.subr.bf16.mxu0 %v8913_v2 }
 0xf29   :  { %8168 = vmatpush3.bf16.msra.mxu1 %v8935_v6 }
 0xf2a   :  { %5060 = vmatprep.subr.bf16.mxu1 %v9234_v34 }
 0xf2b   :  { %4606 = vmatpush1.bf16.msra.mxu0 %v8911_v24 }
 0xf2c   :  { %4607 = vmatprep.subr.bf16.mxu0 %v8916_v21 }
 0xf2f   :  { %4608 = vmatpush1.bf16.msra.mxu0 %v8914_v23 }
 0xf30   :  { %4609 = vmatprep.subr.bf16.mxu0 %v8919_v12  ;;  %v3826_v12 = vld [vmem:[%s10309_s8 + $0x20] sm:$0xf] }
 0xf33   :  { %4610 = vmatpush1.bf16.msra.mxu0 %v8917_v25  ;;  %v3827_v25 = vld [vmem:[%s10309_s8 + $0x28] sm:$0xf] }
 0xf34   :  { %8200 = vmatprep.subr.bf16.mxu0 %v9252_v9 }
 0xf36   :  { %4620 = vmatmul.mubr.bf16.vlgmr.msra.gmra.mrb[68].mxu0 %v3684_v28 }
 0xf75   :  { %v3680_v30 = vpop.permute.xlu0 %3679 }
 0xf76   :  { %7893 = vmatprep.mubr.msk.bf16.mxu0 %vm1971_vm1, %v3680_v30  ;;  %v3687_v5 = vsel %vm2357_vm5, %v3678_v16, %v3680_v30  ;;  %v3824_v16 = vld [vmem:[%s10309_s8 + $0x10] sm:$0xff]  ;;  %s10802_s8 = sld [smem:[%s10989_s0 + %s9271_s4]]  }
 0xf77   :  { %4630 = vmatmul.mubr.bf16.gmra.mrb[72].mxu0 %v3687_v5 }
 0xf78   :  { %8204 = vmatprep.mubr.msk.bf16.mxu0 %vm9253_vm8, %v9252_v9 }
 0xf86   :  { %v10319_v53 = vpop.permute.xlu0 %4654 }
0x1009   :  { %v4621_v0 = vpop.f32.mrb[68].mxu0 }
0x100a   :  { %v8232_v27 = vadd.f32 %v4621_v0, %v3822_v3  ;;  %v4623_v31 = vpop.f32.mrb[69].mxu0 }
0x100b   :  { %v8233_v58 = vadd.f32 %v4623_v31, %v3823_v47  ;;  %v4625_v13 = vpop.f32.mrb[70].mxu0 }
0x100c   :  { %v4638_v15 = vmax.f32 %v8232_v27, 0.0  ;;  %v8234_v63 = vadd.f32 %v4625_v13, %v3824_v16  ;;  %v4627_v7 = vpop.f32.mrb[71].mxu0 }
0x100d   :  { %v4639_v18 = vmax.f32 %v8233_v58, 0.0  ;;  %v8235_v61 = vadd.f32 %v4627_v7, %v3825_v41 }
0x100e   :  { %v4640_v17 = vmax.f32 %v8234_v63, 0.0  ;;  %v4662_v59 = vmul.f32 %v10317_v19, %v4638_v15 }
0x100f   :  { %v4641_v11 = vmax.f32 %v8235_v61, 0.0  ;;  %v4663_v2 = vmul.f32 %v10317_v19, %v4639_v18 }
0x1010   :  { %v4664_v22 = vmul.f32 %v10319_v53, %v4640_v17 }
0x1011   :  { %v4665_v24 = vmul.f32 %v10319_v53, %v4641_v11 }
0x1012   :  { %v4668_v21 = vpack.c.bf16 %v4664_v22, %v4662_v59 }
0x1013   :  { %v4669_v23 = vpack.c.bf16 %v4665_v24, %v4663_v2 }
0x1014   :  { %4725 = vrot.lane.b32.xlu0 %v4668_v21, %s9238_s28  ;;  %v4676_v36 = vshll.u32 %v4668_v21, 16  ;;  %v4673_v6 = vshrl.u32 %v4668_v21, 16 }
0x1015   :  { %v4683_v42 = vshll.u32 %v4669_v23, 16  ;;  %v4680_v0 = vshrl.u32 %v4669_v23, 16 }
0x1016   :  { %v4707_v48 = vrot.slane %v4676_v36, 1  ;;  %v4675_v24 = vrot.slane %v4673_v6, 7 }
0x1017   :  { %v4711_v54 = vrot.slane %v4683_v42, 1  ;;  %v4682_v2 = vrot.slane %v4680_v0, 7 }
0x1018   :  { %4727 = vrot.lane.b32.xlu0 %v4669_v23, %s9238_s28  ;;  %v4708_v27 = vor.u32 %v4707_v48, %v4673_v6  ;;  %v4678_v23 = vor.u32 %v4676_v36, %v4675_v24  ;;  %v8939_v36 = vld [vmem:[%s10289_s3 + $0x98] sm:$0xff]  }
0x1019   :  { %v4712_v58 = vor.u32 %v4711_v54, %v4680_v0  ;;  %v4685_v21 = vor.u32 %v4683_v42, %v4682_v2  ;;  %v8942_v42 = vld [vmem:[%s10289_s3 + $0xb0] sm:$0xff]   ;;  %v8947_v48 = vld [vmem:[%s10289_s3 + $0xd8] sm:$0xff]   ;;  %v8949_v54 = vld [vmem:[%s10289_s3 + $0xe8] sm:$0xff]  }
0x104a   :  { %v4631_v28 = vpop.f32.mrb[72].mxu0 }
0x104b   :  { %v8236_v30 = vadd.f32 %v4631_v28, %v3826_v12  ;;  %v4633_v5 = vpop.f32.mrb[73].mxu0  ;;  %v8936_v28 = vld [vmem:[%s10289_s3 + $0x80] sm:$0xff]  }
0x104c   :  { %v8237_v32 = vadd.f32 %v4633_v5, %v3827_v25  ;;  %v4635_v33 = vpop.f32.mrb[74].mxu0  ;;  %v4706_v25 = vsel %vm9336_vm6, 0, %v4685_v21  ;;  %v4705_v5 = vsel %vm9336_vm6, 0, %v4678_v23  ;;  %v8964_v21 = vld [vmem:[%s10401_s14 + $0x34] ss:$8 sps:$4 sm:$0xff]  }
0x104d   :  { %v4642_v8 = vmax.f32 %v8236_v30, 0.0  ;;  %v4636_v37 = vpop.f32.mrb[75].mxu0  ;;  %v8938_v33 = vld [vmem:[%s10289_s3 + $0x90] sm:$0xff]  }
0x104e   :  { %v4643_v35 = vmax.f32 %v8237_v32, 0.0  ;;  %v8937_v32 = vld [vmem:[%s10289_s3 + $0x88] sm:$0xff]   ;;  %v8962_v23 = vld [vmem:[%s10401_s14 + $0x30] ss:$8 sps:$4 sm:$0xff]  }
0x104f   :  { %v4666_v45 = vmul.f32 %v10329_v38, %v4642_v8  ;;  %v8940_v8 = vld [vmem:[%s10289_s3 + $0xa0] sm:$0xff]   ;;  %v8941_v37 = vld [vmem:[%s10289_s3 + $0xa8] sm:$0xff]  }
0x1050   :  { %v4667_v1 = vmul.f32 %v10329_v38, %v4643_v35  ;;  %v8943_v35 = vld [vmem:[%s10289_s3 + $0xb8] sm:$0xff]  }
0x1051   :  { %v4670_v46 = vpack.c.bf16 %v4666_v45, %v4666_v45  ;;  %v8944_v45 = vld [vmem:[%s10289_s3 + $0xc0] sm:$0xff]  }
0x1052   :  { %v4671_v51 = vpack.c.bf16 %v4667_v1, %v4667_v1  ;;  %v8945_v1 = vld [vmem:[%s10289_s3 + $0xc8] sm:$0xff]  }
0x1053   :  { %v4690_v4 = vshll.u32 %v4670_v46, 16  ;;  %4729 = vrot.lane.b32.xlu1 %v4670_v46, %s9238_s28  ;;  %v4687_v3 = vshrl.u32 %v4670_v46, 16  ;;  %v8946_v46 = vld [vmem:[%s10289_s3 + $0xd0] sm:$0xff]  }
0x1054   :  { %v4698_v47 = vshll.u32 %v4671_v51, 16  ;;  %v4695_v16 = vshrl.u32 %v4671_v51, 16 }
0x1055   :  { %v4709_v31 = vrot.slane %v4690_v4, 1  ;;  %v4689_v41 = vrot.slane %v4687_v3, 7 }
0x1056   :  { %v4713_v13 = vrot.slane %v4698_v47, 1  ;;  %v4697_v15 = vrot.slane %v4695_v16, 7 }
0x1057   :  { %v4710_v63 = vsel %vm197_vm0, %v4708_v27, %v4709_v31  ;;  %v10335_v7 = vor.u32 %v4690_v4, %v4689_v41  ;;  %v4715_v61 = vor.u32 %v4709_v31, %v4687_v3 }
0x1058   :  { %4737 = vrot.lane.b32.xlu1 %v4710_v63, %s9247_s1  ;;  %v4714_v18 = vsel %vm197_vm0, %v4712_v58, %v4713_v13  ;;  %v4700_v17 = vor.u32 %v4698_v47, %v4697_v15  ;;  %v4716_v11 = vor.u32 %v4713_v13, %v4695_v16 }
0x1059   :  { %4739 = vrot.lane.b32.xlu0 %v4714_v18, %s9247_s1  ;;  %v4719_v59 = vsel %vm9295_vm3, %v4715_v61, 0  ;;  %v4693_v0 = vsel %vm169_vm4, %v4675_v24, %v10335_v7  ;;  %v8959_v24 = vld [vmem:[%s10401_s14 + $0x20] ss:$8 sps:$4 sm:$0xff]  }
0x105a   :  { %v4720_v22 = vsel %vm9295_vm3, %v4716_v11, 0  ;;  %v4701_v6 = vsel %vm169_vm4, %v4682_v2, %v4700_v17  ;;  %v8953_v17 = vld [vmem:[%s10401_s14] ss:$8 sps:$4 sm:$0xff]   ;;  %v8955_v11 = vld [vmem:[%s10401_s14 + $0x4] ss:$8 sps:$4 sm:$0xff]  }
0x105b   :  { %v8961_v2 = vld [vmem:[%s10401_s14 + $0x24] ss:$8 sps:$4 sm:$0xff]  }
0x105c   :  { %4731 = vrot.lane.b32.xlu1 %v4671_v51, %s9238_s28  ;;  %v8948_v51 = vld [vmem:[%s10289_s3 + $0xe0] sm:$0xff]  }
0x105d   :  { %4741 = vrot.lane.b32.xlu0 %v4719_v59, %s9247_s1  ;;  %v8958_v59 = vld [vmem:[%s10401_s14 + $0x14] ss:$8 sps:$4 sm:$0xff]  }
0x1060   :  { %4743 = vrot.lane.b32.xlu1 %v4720_v22, %s9247_s1  ;;  %s9266_s1 = smov 33   ;;  %v8956_v22 = vld [vmem:[%s10401_s14 + $0x10] ss:$8 sps:$4 sm:$0xff]  }
0x1061   :  { %s10395_s11 = sld [smem:[%s10989_s0 + %s9266_s1]]  }
0x1086   :  { %v4726_v12 = vpop.permute.xlu0 %4725 }
0x1087   :  { %v4749_v30 = vsel %vm629_vm11, %v4706_v25, %v4726_v12 }
0x1088   :  { %5044 = vmatprep.mubr.bf16.mxu1 %v4749_v30 }
0x1089   :  { %5045 = vmatmul.mubr.bf16.vlgmr.msra.gmra.mrb[44].mxu1 %v4705_v5 }
0x108a   :  { %5061 = vmatpush1.bf16.msra.mxu1 %v8936_v28  ;;  %v4728_v47 = vpop.permute.xlu0 %4727 }
0x108b   :  { %5062 = vmatprep.subr.bf16.mxu1 %v9234_v34  ;;  %v4733_v41 = vsel %vm629_vm11, %v4726_v12, %v4728_v47 }
0x108e   :  { %5063 = vmatpush1.bf16.msra.mxu1 %v8937_v32 }
0x108f   :  { %5064 = vmatprep.subr.bf16.mxu1 %v9234_v34 }
0x1092   :  { %5065 = vmatpush1.bf16.msra.mxu1 %v8938_v33 }
0x1093   :  { %5066 = vmatprep.subr.bf16.mxu1 %v9234_v34 }
0x1096   :  { %5067 = vmatpush1.bf16.msra.mxu1 %v8939_v36 }
0x1097   :  { %5068 = vmatprep.subr.bf16.mxu1 %v9234_v34 }
0x109a   :  { %5069 = vmatpush1.bf16.msra.mxu1 %v8940_v8 }
0x109b   :  { %5070 = vmatprep.subr.bf16.mxu1 %v9234_v34 }
0x109e   :  { %5071 = vmatpush1.bf16.msra.mxu1 %v8941_v37 }
0x109f   :  { %5072 = vmatprep.subr.bf16.mxu1 %v9234_v34 }
0x10a2   :  { %5073 = vmatpush1.bf16.msra.mxu1 %v8942_v42 }
0x10a3   :  { %5074 = vmatprep.subr.bf16.mxu1 %v9234_v34 }
0x10a6   :  { %5075 = vmatpush1.bf16.msra.mxu1 %v8943_v35  ;;  %v4823_v35 = vld [vmem:[%s7428_s20] sm:$0xff] }
0x10a7   :  { %5076 = vmatprep.subr.bf16.mxu1 %v9234_v34 }
0x10aa   :  { %5077 = vmatpush1.bf16.msra.mxu1 %v8944_v45  ;;  %v4824_v45 = vld [vmem:[%s7428_s20 + $0x8] sm:$0xff] }
0x10ab   :  { %5078 = vmatprep.subr.bf16.mxu1 %v9234_v34 }
0x10ae   :  { %5079 = vmatpush1.bf16.msra.mxu1 %v8945_v1 }
0x10af   :  { %5080 = vmatprep.subr.bf16.mxu1 %v9234_v34 }
0x10b2   :  { %5081 = vmatpush1.bf16.msra.mxu1 %v8946_v46 }
0x10b3   :  { %5082 = vmatprep.subr.bf16.mxu1 %v9234_v34 }
0x10b6   :  { %5083 = vmatpush1.bf16.msra.mxu1 %v8947_v48 }
0x10b7   :  { %5084 = vmatprep.subr.bf16.mxu1 %v9234_v34 }
0x10ba   :  { %5085 = vmatpush1.bf16.msra.mxu1 %v8948_v51 }
0x10bb   :  { %5086 = vmatprep.subr.bf16.mxu1 %v9234_v34 }
0x10be   :  { %5087 = vmatpush1.bf16.msra.mxu1 %v8949_v54 }
0x10bf   :  { %5274 = vmatprep.subr.bf16.mxu1 %v8955_v11  ;;  %v8950_v11 = vld [vmem:[%s10395_s11] sm:$0xff]  }
0x10c5   :  { %v4730_v4 = vpop.permute.xlu1 %4729 }
0x10c6   :  { %v4753_v3 = vsel %vm629_vm11, %v4701_v6, %v4730_v4 }
0x10c7   :  { %5052 = vmatprep.mubr.bf16.mxu1 %v4753_v3 }
0x10c8   :  { %5053 = vmatmul.mubr.bf16.gmra.mrb[48].mxu1 %v4693_v0  ;;  %v4825_v0 = vld [vmem:[%s7428_s20 + $0x10] sm:$0xf] }
0x10ca   :  { %v4738_v16 = vpop.permute.xlu1 %4737 }
0x10cb   :  { %v4740_v27 = vpop.permute.xlu0 %4739  ;;  %v4757_v13 = vsel %vm1971_vm1, %v4733_v41, %v4738_v16 }
0x10cc   :  { %v4745_v31 = vsel %vm1971_vm1, %v4738_v16, %v4740_v27 }
0x10cd   :  { %7924 = vmatprep.mubr.msk.bf16.mxu1 %vm2357_vm5, %v4745_v31 }
0x10ce   :  { %v4732_v58 = vpop.permute.xlu1 %4731 }
0x10cf   :  { %v4742_v15 = vpop.permute.xlu0 %4741  ;;  %v4734_v61 = vsel %vm629_vm11, %v4730_v4, %v4732_v58 }
0x10d0   :  { %5093 = vmatmul.mubr.bf16.vlgmr.msra.gmra.mrb[52].mxu1 %v4757_v13  ;;  %v4761_v7 = vsel %vm1971_vm1, %v4734_v61, %v4742_v15 }
0x10d1   :  { %5275 = vmatpush1.bf16.msra.mxu1 %v8953_v17 }
0x10d2   :  { %v4744_v63 = vpop.permute.xlu1 %4743  ;;  %5276 = vmatprep.subr.bf16.mxu1 %v8958_v59  ;;  %v8951_v59 = vld [vmem:[%s10395_s11 + $0x8] sm:$0xff]  }
0x10d3   :  { %v4746_v18 = vsel %vm1971_vm1, %v4742_v15, %v4744_v63 }
0x10d4   :  { %7925 = vmatprep.mubr.msk.bf16.mxu1 %vm2357_vm5, %v4746_v18 }
0x10d5   :  { %5277 = vmatpush1.bf16.msra.mxu1 %v8956_v22  ;;  %v8952_v22 = vld [vmem:[%s10395_s11 + $0x10] ss:$0 sps:$4 sm:$0x33]  }
0x10d6   :  { %5278 = vmatprep.subr.bf16.mxu1 %v8961_v2  ;;  %v8965_v2 = vld [vmem:[%s10401_s14 + $0x40] ss:$8 sps:$4 sm:$0xff]  }
0x10d8   :  { %5101 = vmatmul.mubr.bf16.gmra.mrb[56].mxu1 %v4761_v7 }
0x10d9   :  { %5306 = vmatprep.mubr.bf16.mxu1 %v9234_v34  ;;  %5279 = vmatpush1.bf16.msra.mxu1 %v8959_v24 }
0x10da   :  { %5280 = vmatprep.subr.bf16.mxu1 %v8964_v21 }
0x10dd   :  { %5281 = vmatpush1.bf16.msra.mxu1 %v8962_v23 }
0x115c   :  { %v8169_v12 = vpop.f32.mrb[44].mxu1 }
0x115d   :  { %v8170_v25 = vpop.f32.mrb[45].mxu1 }
0x115e   :  { %v8171_v28 = vadd.f32 %v8170_v25, %v8169_v12  ;;  %v8172_v30 = vpop.f32.mrb[46].mxu1 }
0x115f   :  { %v8173_v5 = vpop.f32.mrb[47].mxu1 }
0x1160   :  { %v8174_v32 = vadd.f32 %v8173_v5, %v8172_v30  ;;  %v5047_v1 = vadd.f32 %v8171_v28, %v4823_v35  ;;  %v8968_v35 = vld [vmem:[%s10439_s25] ss:$8 sps:$4 sm:$0xff]  }
0x1162   :  { %v5050_v54 = vadd.f32 %v8174_v32, %v4824_v45  ;;  %v8970_v45 = vld [vmem:[%s10439_s25 + $0x4] ss:$8 sps:$4 sm:$0xff]  }
0x119b   :  { %v8175_v33 = vpop.f32.mrb[48].mxu1 }
0x119c   :  { %v8176_v36 = vpop.f32.mrb[49].mxu1 }
0x119d   :  { %v8177_v8 = vadd.f32 %v8176_v36, %v8175_v33  ;;  %v8178_v37 = vpop.f32.mrb[50].mxu1 }
0x119e   :  { %v8179_v42 = vpop.f32.mrb[51].mxu1 }
0x119f   :  { %v5055_v41 = vadd.f32 %v8177_v8, %v4825_v0  ;;  %v8983_v0 = vld [vmem:[%s10439_s25 + $0x50] ss:$8 sps:$4 sm:$0xff]  }
0x11a3   :  { %v5094_v46 = vpop.f32.mrb[52].mxu1 }
0x11a4   :  { %v5095_v48 = vadd.f32 %v5094_v46, %v5047_v1  ;;  %v5096_v51 = vpop.f32.mrb[53].mxu1  ;;  %v8971_v1 = vld [vmem:[%s10439_s25 + $0x10] ss:$8 sps:$4 sm:$0xff]   ;;  %v8973_v46 = vld [vmem:[%s10439_s25 + $0x14] ss:$8 sps:$4 sm:$0xff]  }
0x11a5   :  { %v5097_v4 = vpop.f32.mrb[54].mxu1  ;;  %v8974_v51 = vld [vmem:[%s10439_s25 + $0x20] ss:$8 sps:$4 sm:$0xff]  }
0x11a6   :  { %v5108_v6 = vmax.f32 %v5095_v48, 0.0  ;;  %v5098_v3 = vadd.f32 %v5097_v4, %v5050_v54  ;;  %v5099_v47 = vpop.f32.mrb[55].mxu1  ;;  %v8976_v48 = vld [vmem:[%s10439_s25 + $0x24] ss:$8 sps:$4 sm:$0xff]   ;;  %v8979_v54 = vld [vmem:[%s10439_s25 + $0x34] ss:$8 sps:$4 sm:$0xff]  }
0x11a7   :  { %v8977_v4 = vld [vmem:[%s10439_s25 + $0x30] ss:$8 sps:$4 sm:$0xff]   ;;  %v8985_v47 = vld [vmem:[%s10439_s25 + $0x54] ss:$8 sps:$4 sm:$0xff]  }
0x11a8   :  { %v5109_v16 = vmax.f32 %v5098_v3, 0.0  ;;  %v5111_v27 = vmul.f32 %v5108_v6, %v10317_v19  ;;  %v8982_v6 = vld [vmem:[%s10439_s25 + $0x44] ss:$8 sps:$4 sm:$0xff]   ;;  %v8980_v3 = vld [vmem:[%s10439_s25 + $0x40] ss:$8 sps:$4 sm:$0xff]  }
0x11aa   :  { %v5112_v31 = vmul.f32 %v5109_v16, %v10319_v53  ;;  %v8988_v16 = vld [vmem:[%s10439_s25 + $0x64] ss:$8 sps:$4 sm:$0xff]  }
0x11ab   :  { %v5102_v58 = vpop.f32.mrb[56].mxu1 }
0x11ac   :  { %v5114_v13 = vpack.c.bf16 %v5112_v31, %v5111_v27  ;;  %v5103_v15 = vadd.f32 %v5102_v58, %v5055_v41  ;;  %v5104_v63 = vpop.f32.mrb[57].mxu1  ;;  %v8986_v27 = vld [vmem:[%s10439_s25 + $0x60] ss:$8 sps:$4 sm:$0xff]   ;;  %v8991_v31 = vld [vmem:[%s10439_s25 + $0x74] ss:$8 sps:$4 sm:$0xff]  }
0x11ad   :  { %v5105_v18 = vpop.f32.mrb[58].mxu1  ;;  %v8989_v41 = vld [vmem:[%s10439_s25 + $0x70] ss:$8 sps:$4 sm:$0xff]   ;;  %v8994_v58 = vld [vmem:[%s10439_s25 + $0x84] ss:$8 sps:$4 sm:$0xff]  }
0x11ae   :  { %v5110_v61 = vmax.f32 %v5103_v15, 0.0  ;;  %v5106_v7 = vpop.f32.mrb[59].mxu1  ;;  %8201 = vmatpush3.bf16.msra.mxu0 %v5114_v13  ;;  %v8992_v13 = vld [vmem:[%s10439_s25 + $0x80] ss:$8 sps:$4 sm:$0xff]   ;;  %v8997_v15 = vld [vmem:[%s10439_s25 + $0x94] ss:$8 sps:$4 sm:$0xff]  }
0x11af   :  { %8202 = vmatprep.subr.bf16.mxu0 %v9252_v9  ;;  %v8995_v63 = vld [vmem:[%s10439_s25 + $0x90] ss:$8 sps:$4 sm:$0xff]   ;;  %v9000_v18 = vld [vmem:[%s10439_s25 + $0xa4] ss:$8 sps:$4 sm:$0xff]   ;;  %v9003_v7 = vld [vmem:[%s10439_s25 + $0xb4] ss:$8 sps:$4 sm:$0xff]  }
0x11b0   :  { %v5113_v17 = vmul.f32 %v5110_v61, %v10329_v38  ;;  %v8967_v38 = vld [vmem:[%s10401_s14 + $0x44] ss:$8 sps:$4 sm:$0xff]   ;;  %v8998_v61 = vld [vmem:[%s10439_s25 + $0xa0] ss:$8 sps:$4 sm:$0xff]  }
0x11b1   :  { %5282 = vmatprep.subr.bf16.mxu1 %v8967_v38  ;;  %v9010_v38 = vld [vmem:[%s10439_s25 + $0xe0] ss:$8 sps:$4 sm:$0xff]  }
0x11b2   :  { %v5115_v19 = vpack.c.bf16 %v5113_v17, %v5113_v17  ;;  %5283 = vmatpush1.bf16.msra.mxu1 %v8965_v2  ;;  %v9001_v17 = vld [vmem:[%s10439_s25 + $0xb0] ss:$8 sps:$4 sm:$0xff]   ;;  %v9015_v2 = vld [vmem:[%s10439_s25 + $0xf4] ss:$8 sps:$4 sm:$0xff]  }
0x11b3   :  { %6325 = vmatprep.subr.bf16.mxu1 %v8970_v45 }
0x11b4   :  { %v5144_v53 = vsel %vm207_vm2, %v5115_v19, 0  ;;  %v9006_v19 = vld [vmem:[%s10439_s25 + $0xc4] ss:$8 sps:$4 sm:$0xff]  }
0x11b5   :  { %8203 = vmatpush3.bf16.msra.mxu0 %v5144_v53  ;;  %v9004_v53 = vld [vmem:[%s10439_s25 + $0xc0] ss:$8 sps:$4 sm:$0xff]  }
0x11b8   :  { %8205 = vmatmul.mubr.msk.bf16.vlgmr.msra.gmra.mrb[76].mxu0 %vm2495_vm7, %v8950_v11  ;;  %v9009_v11 = vld [vmem:[%s10439_s25 + $0xd4] ss:$8 sps:$4 sm:$0xff]  }
0x11b9   :  { %8208 = vmatprep.mubr.msk.bf16.mxu0 %vm9253_vm8, %v9252_v9 }
0x11c0   :  { %8209 = vmatmul.mubr.msk.bf16.gmra.mrb[80].mxu0 %vm2495_vm7, %v8951_v59  ;;  %v9007_v59 = vld [vmem:[%s10439_s25 + $0xd0] ss:$8 sps:$4 sm:$0xff]  }
0x11c1   :  { %8212 = vmatprep.mubr.msk.bf16.mxu0 %vm9253_vm8, %v9252_v9 }
0x11c8   :  { %8213 = vmatmul.mubr.msk.bf16.gmra.mrb[84].mxu0 %vm2495_vm7, %v8952_v22  ;;  %v9012_v22 = vld [vmem:[%s10439_s25 + $0xe4] ss:$8 sps:$4 sm:$0xff]  }
0x128b   :  { %v5180_v24 = vpop.f32.mrb[76].mxu0 }
0x128c   :  { %v8206_v21 = vpop.f32.mrb[77].mxu0 }
0x128d   :  { %v5183_v23 = vpop.f32.mrb[78].mxu0  ;;  %v9018_v21 = vld [vmem:[%s10439_s25 + $0x104] ss:$8 sps:$4 sm:$0xff]  }
0x128e   :  { %v5202_v12 = vpack.c.bf16 %v5183_v23, %v5180_v24  ;;  %v8207_v25 = vpop.f32.mrb[79].mxu0  ;;  %v9013_v24 = vld [vmem:[%s10439_s25 + $0xf0] ss:$8 sps:$4 sm:$0xff]  }
0x1290   :  { %7942 = vmatmul.mubr.msk.bf16.vlgmr.msra.gmra.mrb[60].mxu1 %vm1603_vm14, %v5202_v12 }
0x1291   :  { %5316 = vmatprep.mubr.bf16.mxu1 %v9234_v34  ;;  %6326 = vmatpush1.bf16.msra.mxu1 %v8968_v35 }
0x1292   :  { %6327 = vmatprep.subr.bf16.mxu1 %v8973_v46  ;;  %v5476_v46 = vshrl.u32 %v9536_v10, 16 }
0x1293   :  { %v5188_v28 = vpop.f32.mrb[80].mxu0 }
0x1294   :  { %v8210_v30 = vpop.f32.mrb[81].mxu0 }
0x1295   :  { %v5191_v5 = vpop.f32.mrb[82].mxu0  ;;  %6328 = vmatpush1.bf16.msra.mxu1 %v8971_v1 }
0x1296   :  { %v5203_v9 = vpack.c.bf16 %v5191_v5, %v5188_v28  ;;  %v8211_v32 = vpop.f32.mrb[83].mxu0  ;;  %6329 = vmatprep.subr.bf16.mxu1 %v8976_v48 }
0x1298   :  { %7943 = vmatmul.mubr.msk.bf16.gmra.mrb[64].mxu1 %vm1603_vm14, %v5203_v9 }
0x1299   :  { %5326 = vmatprep.mubr.bf16.mxu1 %v9234_v34  ;;  %6330 = vmatpush1.bf16.msra.mxu1 %v8974_v51 }
0x129a   :  { %6331 = vmatprep.subr.bf16.mxu1 %v8979_v54 }
0x129b   :  { %v5196_v33 = vpop.f32.mrb[84].mxu0 }
0x129c   :  { %v5204_v36 = vpack.c.bf16 %v5196_v33, %v5196_v33  ;;  %v8214_v8 = vpop.f32.mrb[85].mxu0 }
0x129d   :  { %v5199_v37 = vpop.f32.mrb[86].mxu0  ;;  %6332 = vmatpush1.bf16.msra.mxu1 %v8977_v4 }
0x129e   :  { %v8215_v42 = vpop.f32.mrb[87].mxu0  ;;  %6333 = vmatprep.subr.bf16.mxu1 %v8982_v6 }
0x12a0   :  { %7944 = vmatmul.mubr.msk.bf16.gmra.mrb[68].mxu1 %vm1603_vm14, %v5204_v36 }
0x12a1   :  { %6334 = vmatpush1.bf16.msra.mxu1 %v8980_v3 }
0x12a2   :  { %6335 = vmatprep.subr.bf16.mxu1 %v8985_v47 }
0x12a5   :  { %6336 = vmatpush1.bf16.msra.mxu1 %v8983_v0 }
0x12a6   :  { %6337 = vmatprep.subr.bf16.mxu1 %v8988_v16 }
0x12a9   :  { %6338 = vmatpush1.bf16.msra.mxu1 %v8986_v27 }
0x12aa   :  { %6339 = vmatprep.subr.bf16.mxu1 %v8991_v31  ;;  %v10485_v31 = vrot.slane %v5476_v46, 7 }
0x12ad   :  { %6340 = vmatpush1.bf16.msra.mxu1 %v8989_v41 }
0x12ae   :  { %6341 = vmatprep.subr.bf16.mxu1 %v8994_v58 }
0x12b1   :  { %6342 = vmatpush1.bf16.msra.mxu1 %v8992_v13 }
0x12b2   :  { %6343 = vmatprep.subr.bf16.mxu1 %v8997_v15 }
0x12b5   :  { %6344 = vmatpush1.bf16.msra.mxu1 %v8995_v63 }
0x12b6   :  { %6345 = vmatprep.subr.bf16.mxu1 %v9000_v18  ;;  %v5479_v18 = vshll.u32 %v9536_v10, 16 }
0x12b9   :  { %6346 = vmatpush1.bf16.msra.mxu1 %v8998_v61 }
0x12ba   :  { %6347 = vmatprep.subr.bf16.mxu1 %v9003_v7 }
0x12bd   :  { %6348 = vmatpush1.bf16.msra.mxu1 %v9001_v17 }
0x12be   :  { %6349 = vmatprep.subr.bf16.mxu1 %v9006_v19 }
0x12c1   :  { %6350 = vmatpush1.bf16.msra.mxu1 %v9004_v53 }
0x12c2   :  { %6351 = vmatprep.subr.bf16.mxu1 %v9009_v11 }
0x12c5   :  { %6352 = vmatpush1.bf16.msra.mxu1 %v9007_v59 }
0x12c6   :  { %6353 = vmatprep.subr.bf16.mxu1 %v9012_v22 }
0x12c9   :  { %6354 = vmatpush1.bf16.msra.mxu1 %v9010_v38  ;;  %v5481_v38 = vor.u32 %v5479_v18, %v10485_v31 }
0x12ca   :  { %6355 = vmatprep.subr.bf16.mxu1 %v9015_v2 }
0x12cd   :  { %6356 = vmatpush1.bf16.msra.mxu1 %v9013_v24 }
0x12ce   :  { %6386 = vmatprep.subr.bf16.mxu1 %v9018_v21 }
0x1363   :  { %v5308_v23 = vpop.f32.mrb[60].mxu1 }
0x1364   :  { %v5310_v12 = vpop.f32.mrb[61].mxu1 }
0x1365   :  { %v5312_v25 = vpop.f32.mrb[62].mxu1 }
0x1366   :  { %v5335_v28 = vpack.c.bf16 %v5312_v25, %v5308_v23  ;;  %v5314_v30 = vpop.f32.mrb[63].mxu1 }
0x1367   :  { %v5336_v5 = vpack.c.bf16 %v5314_v30, %v5310_v12 }
0x1368   :  { %v5342_v9 = vshrl.u32 %v5335_v28, 16  ;;  %5419 = vrot.lane.b32.xlu0 %v5335_v28, %s9235_s16  ;;  %v5345_v36 = vshll.u32 %v5335_v28, 16 }
0x1369   :  { %v5349_v32 = vshrl.u32 %v5336_v5, 16  ;;  %v5352_v37 = vshll.u32 %v5336_v5, 16 }
0x136a   :  { %v5344_v33 = vrot.slane %v5342_v9, 7  ;;  %v5393_v51 = vrot.slane %v5345_v36, 1 }
0x136b   :  { %v5351_v8 = vrot.slane %v5349_v32, 7  ;;  %v5318_v42 = vpop.f32.mrb[64].mxu1  ;;  %v5397_v6 = vrot.slane %v5352_v37, 1 }
0x136c   :  { %v10475_v35 = vor.u32 %v5345_v36, %v5344_v33  ;;  %v5320_v45 = vpop.f32.mrb[65].mxu1  ;;  %v5394_v58 = vor.u32 %v5393_v51, %v5342_v9 }
0x136d   :  { %v5322_v1 = vpop.f32.mrb[66].mxu1  ;;  %v10478_v48 = vor.u32 %v5352_v37, %v5351_v8  ;;  %v5398_v61 = vor.u32 %v5397_v6, %v5349_v32  ;;  %v5523_v37 = vrot.slane %v5479_v18, 1 }
0x136e   :  { %v5337_v54 = vpack.c.bf16 %v5322_v1, %v5318_v42  ;;  %v5324_v4 = vpop.f32.mrb[67].mxu1  ;;  %v5521_v1 = vsel %vm9336_vm6, 0, %v5481_v38 }
0x136f   :  { %v10480_v3 = vpack.c.bf16 %v5324_v4, %v5320_v45 }
0x1370   :  { %v5356_v47 = vshrl.u32 %v5337_v54, 16  ;;  %v5359_v0 = vshll.u32 %v5337_v54, 16  ;;  %5423 = vrot.lane.b32.xlu1 %v5337_v54, %s9235_s16 }
0x1371   :  { %v5364_v16 = vshrl.u32 %v10480_v3, 16  ;;  %v5367_v27 = vshll.u32 %v10480_v3, 16 }
0x1372   :  { %v5358_v41 = vrot.slane %v5356_v47, 7  ;;  %v5395_v13 = vrot.slane %v5359_v0, 1 }
0x1373   :  { %v5366_v15 = vrot.slane %v5364_v16, 7  ;;  %v5328_v63 = vpop.f32.mrb[68].mxu1  ;;  %v5399_v7 = vrot.slane %v5367_v27, 1 }
0x1374   :  { %v10488_v17 = vpack.c.bf16 %v5328_v63, %v5328_v63  ;;  %5421 = vrot.lane.b32.xlu1 %v5336_v5, %s9235_s16  ;;  %v5330_v19 = vpop.f32.mrb[69].mxu1  ;;  %v5396_v53 = vsel %vm197_vm0, %v5394_v58, %v5395_v13  ;;  %v5361_v11 = vor.u32 %v5359_v0, %v5358_v41  ;;  %v5493_v5 = vshll.u32 %v9556_v40, 16 }
0x1375   :  { %v5369_v59 = vor.u32 %v5367_v27, %v5366_v15  ;;  %v5340_v22 = vpack.c.bf16 %v5330_v19, %v5330_v19  ;;  %v5400_v2 = vsel %vm197_vm0, %v5398_v61, %v5399_v7  ;;  %v5332_v24 = vpop.f32.mrb[70].mxu1  ;;  %v5401_v42 = vor.u32 %v5395_v13, %v5356_v47 }
0x1376   :  { %v5372_v21 = vshrl.u32 %v10488_v17, 16  ;;  %v5375_v23 = vshll.u32 %v10488_v17, 16  ;;  %5427 = vrot.lane.b32.xlu0 %v10488_v17, %s9235_s16  ;;  %v5333_v12 = vpop.f32.mrb[71].mxu1  ;;  %v10499_v25 = vsel %vm169_vm4, %v5344_v33, %v5361_v11  ;;  %v5404_v51 = vor.u32 %v5399_v7, %v5364_v16 }
0x1377   :  { %v5380_v28 = vshrl.u32 %v5340_v22, 16  ;;  %v5383_v30 = vshll.u32 %v5340_v22, 16  ;;  %v10503_v9 = vsel %vm169_vm4, %v5351_v8, %v5369_v59  ;;  %v5525_v8 = vrot.slane %v5493_v5, 1  ;;  %v9019_v12 = vld [vmem:[%s10439_s25 + $0x110] ss:$8 sps:$4 sm:$0xff]  }
0x1378   :  { %v5374_v32 = vrot.slane %v5372_v21, 7  ;;  %v5402_v36 = vrot.slane %v5375_v23, 1  ;;  %5436 = vrot.lane.b32.xlu1 %v5396_v53, %s9238_s28  ;;  %v5524_v27 = vor.u32 %v5523_v37, %v5476_v46  ;;  %v5508_v13 = vshll.u32 %v9568_v52, 16  ;;  %v9030_v37 = vld [vmem:[%s10439_s25 + $0x144] ss:$8 sps:$4 sm:$0xff]  }
0x1379   :  { %v5382_v45 = vrot.slane %v5380_v28, 7  ;;  %v5405_v33 = vrot.slane %v5383_v30, 1  ;;  %v5505_v46 = vshrl.u32 %v9568_v52, 16  ;;  %v5527_v7 = vrot.slane %v5486_v26, 1 }
0x137a   :  { %5606 = vrot.lane.b32.xlu0 %v5521_v1, %s9258_s5  ;;  %v5403_v54 = vsel %vm197_vm0, %v5401_v42, %v5402_v36  ;;  %v5377_v4 = vor.u32 %v5375_v23, %v5374_v32  ;;  %v5526_v16 = vsel %vm197_vm0, %v5524_v27, %v5525_v8  ;;  %v5532_v63 = vrot.slane %v5508_v13, 1  ;;  %v9027_v32 = vld [vmem:[%s10439_s25 + $0x134] ss:$8 sps:$4 sm:$0xff]   ;;  %v9028_v1 = vld [vmem:[%s10439_s25 + $0x140] ss:$8 sps:$4 sm:$0xff]  }
0x137b   :  { %v5385_v6 = vor.u32 %v5383_v30, %v5382_v45  ;;  %v5406_v0 = vsel %vm197_vm0, %v5404_v51, %v5405_v33  ;;  %v5407_v53 = vor.u32 %v5402_v36, %v5372_v21  ;;  %v5507_v11 = vrot.slane %v5505_v46, 7  ;;  %v9021_v21 = vld [vmem:[%s10439_s25 + $0x114] ss:$8 sps:$4 sm:$0xff]   ;;  %v9022_v30 = vld [vmem:[%s10439_s25 + $0x120] ss:$8 sps:$4 sm:$0xff]  }
0x137c   :  { %5549 = vrot.lane.b32.xlu1 %v9536_v10, %s9235_s16  ;;  %v10514_v47 = vsel %vm169_vm4, %v5358_v41, %v5377_v4  ;;  %v5490_v10 = vshrl.u32 %v9556_v40, 16  ;;  %v5535_v59 = vrot.slane %v5515_v56, 1  ;;  %v5391_v23 = vsel %vm9336_vm6, 0, %v10475_v35  ;;  %v9025_v36 = vld [vmem:[%s10439_s25 + $0x130] ss:$8 sps:$4 sm:$0xff]  }
0x137d   :  { %v10517_v58 = vsel %vm169_vm4, %v5366_v15, %v5385_v6  ;;  %v5537_v15 = vor.u32 %v5532_v63, %v5505_v46  ;;  %v5510_v38 = vor.u32 %v5508_v13, %v5507_v11  ;;  %v9031_v4 = vld [vmem:[%s10439_s25 + $0x150] ss:$8 sps:$4 sm:$0xff]   ;;  %v9048_v11 = vld [vmem:[%s10439_s25 + $0x1a4] ss:$8 sps:$4 sm:$0xff]  }
0x137e   :  { %5438 = vrot.lane.b32.xlu0 %v5400_v2, %s9238_s28  ;;  %v5531_v41 = vor.u32 %v5525_v8, %v5490_v10  ;;  %v5492_v19 = vrot.slane %v5490_v10, 7  ;;  %v9036_v8 = vld [vmem:[%s10439_s25 + $0x164] ss:$8 sps:$4 sm:$0xff]  }
0x137f   :  { %v5541_v61 = vsel %vm9295_vm3, %v5537_v15, 0  ;;  %v9042_v15 = vld [vmem:[%s10439_s25 + $0x184] ss:$8 sps:$4 sm:$0xff]  }
0x1380   :  { %5566 = vrot.lane.b32.xlu1 %v5526_v16, %s9238_s28  ;;  %v5533_v18 = vsel %vm197_vm0, %v5531_v41, %v5532_v63  ;;  %v5495_v26 = vor.u32 %v5493_v5, %v5492_v19  ;;  %v5511_v2 = vsel %vm169_vm4, %v5492_v19, %v5510_v38  ;;  %v9034_v16 = vld [vmem:[%s10439_s25 + $0x160] ss:$8 sps:$4 sm:$0xff]   ;;  %v9037_v41 = vld [vmem:[%s10439_s25 + $0x170] ss:$8 sps:$4 sm:$0xff]  }
0x1382   :  { %5551 = vrot.lane.b32.xlu0 %v9538_v14, %s9235_s16  ;;  %v5496_v14 = vsel %vm169_vm4, %v10485_v31, %v5495_v26 }
0x1384   :  { %5555 = vrot.lane.b32.xlu1 %v9558_v43, %s9235_s16  ;;  %v5392_v43 = vsel %vm9336_vm6, 0, %v10478_v48 }
0x1386   :  { %5553 = vrot.lane.b32.xlu0 %v9556_v40, %s9235_s16  ;;  %v5529_v40 = vrot.slane %v5501_v50, 1  ;;  %v5408_v50 = vor.u32 %v5405_v33, %v5380_v28  ;;  %v9024_v28 = vld [vmem:[%s10439_s25 + $0x124] ss:$8 sps:$4 sm:$0xff]   ;;  %v5522_v33 = vsel %vm9336_vm6, 0, %v9554_v39 }
0x1388   :  { %5557 = vrot.lane.b32.xlu1 %v9568_v52, %s9235_s16  ;;  %v5528_v52 = vor.u32 %v5527_v7, %v5483_v62  ;;  %v5411_v62 = vsel %vm9295_vm3, %v5407_v53, 0 }
0x138a   :  { %5570 = vrot.lane.b32.xlu0 %v5533_v18, %s9238_s28  ;;  %v5530_v17 = vsel %vm197_vm0, %v5528_v52, %v5529_v40  ;;  %v9045_v52 = vld [vmem:[%s10439_s25 + $0x194] ss:$8 sps:$4 sm:$0xff]  }
0x138c   :  { %5574 = vrot.lane.b32.xlu1 %v5541_v61, %s9238_s28 }
0x138e   :  { %5559 = vrot.lane.b32.xlu0 %v9570_v49, %s9235_s16 }
0x1390   :  { %5425 = vrot.lane.b32.xlu1 %v10480_v3, %s9235_s16  ;;  %v5412_v3 = vsel %vm9295_vm3, %v5408_v50, 0  ;;  %v9043_v50 = vld [vmem:[%s10439_s25 + $0x190] ss:$8 sps:$4 sm:$0xff]  }
0x1392   :  { %5568 = vrot.lane.b32.xlu0 %v5530_v17, %s9238_s28 }
0x1394   :  { %5440 = vrot.lane.b32.xlu1 %v5403_v54, %s9238_s28 }
0x1396   :  { %5442 = vrot.lane.b32.xlu0 %v5406_v0, %s9238_s28  ;;  %v5538_v0 = vor.u32 %v5535_v59, %v5512_v55  ;;  %v9039_v55 = vld [vmem:[%s10439_s25 + $0x174] ss:$8 sps:$4 sm:$0xff]  }
0x1398   :  { %5429 = vrot.lane.b32.xlu1 %v5340_v22, %s9235_s16  ;;  %v5534_v22 = vor.u32 %v5529_v40, %v5498_v29  ;;  %v9016_v29 = vld [vmem:[%s10439_s25 + $0x100] ss:$8 sps:$4 sm:$0xff]   ;;  %v5542_v49 = vsel %vm9295_vm3, %v5538_v0, 0  ;;  %v9069_v0 = vld [vmem:[%s10439_s25 + $0x214] ss:$8 sps:$4 sm:$0xff]  }
0x1399   :  { %v9040_v40 = vld [vmem:[%s10439_s25 + $0x180] ss:$8 sps:$4 sm:$0xff]  }
0x139a   :  { %5614 = vrot.lane.b32.xlu0 %v5496_v14, %s9258_s5  ;;  %v5536_v31 = vsel %vm197_vm0, %v5534_v22, %v5535_v59  ;;  %v9046_v59 = vld [vmem:[%s10439_s25 + $0x1a0] ss:$8 sps:$4 sm:$0xff]   ;;  %v9051_v22 = vld [vmem:[%s10439_s25 + $0x1b4] ss:$8 sps:$4 sm:$0xff]  }
0x139c   :  { %5444 = vrot.lane.b32.xlu1 %v5411_v62, %s9238_s28 }
0x139e   :  { %5446 = vrot.lane.b32.xlu0 %v5412_v3, %s9238_s28 }
0x13a0   :  { %5572 = vrot.lane.b32.xlu1 %v5536_v31, %s9238_s28 }
0x13a2   :  { %5622 = vrot.lane.b32.xlu0 %v5511_v2, %s9258_s5 }
0x13da   :  { %v10570_v56 = vpop.permute.xlu0 %5419 }
0x13db   :  { %v5453_v24 = vsel %vm611_vm10, %v5392_v43, %v10570_v56  ;;  %v9049_v43 = vld [vmem:[%s10439_s25 + $0x1b0] ss:$8 sps:$4 sm:$0xff]  }
0x13dc   :  { %6357 = vmatprep.mubr.bf16.mxu1 %v5453_v24 }
0x13dd   :  { %6358 = vmatmul.mubr.bf16.vlgmr.msra.gmra.mrb[72].mxu1 %v5391_v23  ;;  %v9057_v23 = vld [vmem:[%s10439_s25 + $0x1d4] ss:$8 sps:$4 sm:$0xff]  }
0x13de   :  { %6387 = vmatpush1.bf16.msra.mxu1 %v9016_v29  ;;  %v9054_v29 = vld [vmem:[%s10439_s25 + $0x1c4] ss:$8 sps:$4 sm:$0xff]  }
0x13df   :  { %6388 = vmatprep.subr.bf16.mxu1 %v9021_v21  ;;  %v9052_v21 = vld [vmem:[%s10439_s25 + $0x1c0] ss:$8 sps:$4 sm:$0xff]  }
0x13e2   :  { %6389 = vmatpush1.bf16.msra.mxu1 %v9019_v12  ;;  %v10584_v48 = vpop.permute.xlu1 %5423 }
0x13e3   :  { %v5457_v5 = vsel %vm611_vm10, %v10503_v9, %v10584_v48  ;;  %6390 = vmatprep.subr.bf16.mxu1 %v9024_v28  ;;  %v9055_v28 = vld [vmem:[%s10439_s25 + $0x1d0] ss:$8 sps:$4 sm:$0xff]  }
0x13e4   :  { %6367 = vmatprep.mubr.bf16.mxu1 %v5457_v5 }
0x13e5   :  { %6368 = vmatmul.mubr.bf16.gmra.mrb[76].mxu1 %v10499_v25  ;;  %v9033_v25 = vld [vmem:[%s10439_s25 + $0x154] ss:$8 sps:$4 sm:$0xff]  }
0x13e6   :  { %6391 = vmatpush1.bf16.msra.mxu1 %v9022_v30  ;;  %v10592_v35 = vpop.permute.xlu1 %5421  ;;  %v9060_v30 = vld [vmem:[%s10439_s25 + $0x1e4] ss:$8 sps:$4 sm:$0xff]  }
0x13e7   :  { %6392 = vmatprep.subr.bf16.mxu1 %v9027_v32 }
0x13e8   :  { %v10596_v42 = vpop.permute.xlu0 %5427 }
0x13e9   :  { %v5461_v9 = vsel %vm611_vm10, %v10517_v58, %v10596_v42 }
0x13ea   :  { %6393 = vmatpush1.bf16.msra.mxu1 %v9025_v36  ;;  %v10601_v45 = vpop.permute.xlu1 %5436  ;;  %6377 = vmatprep.mubr.bf16.mxu1 %v5461_v9  ;;  %v9058_v36 = vld [vmem:[%s10439_s25 + $0x1e0] ss:$8 sps:$4 sm:$0xff]   ;;  %v9063_v9 = vld [vmem:[%s10439_s25 + $0x1f4] ss:$8 sps:$4 sm:$0xff]  }
0x13eb   :  { %6394 = vmatprep.subr.bf16.mxu1 %v9030_v37 }
0x13ec   :  { %v10605_v51 = vpop.permute.xlu0 %5606 }
0x13ed   :  { %6378 = vmatmul.mubr.bf16.gmra.mrb[80].mxu1 %v10514_v47 }
0x13ee   :  { %6395 = vmatpush1.bf16.msra.mxu1 %v9028_v1  ;;  %v5550_v54 = vpop.permute.xlu1 %5549  ;;  %v6579_v1 = vld [vmem:[%s10663_s24] sm:$0xff] }
0x13ef   :  { %v5583_v6 = vsel %vm611_vm10, %v5522_v33, %v5550_v54  ;;  %6396 = vmatprep.subr.bf16.mxu1 %v9033_v25  ;;  %v9061_v33 = vld [vmem:[%s10439_s25 + $0x1f0] ss:$8 sps:$4 sm:$0xff]  }
0x13f0   :  { %v5439_v27 = vpop.permute.xlu0 %5438  ;;  %5608 = vrot.lane.b32.xlu0 %v5583_v6, %s9258_s5  ;;  %v9064_v6 = vld [vmem:[%s10439_s25 + $0x200] ss:$8 sps:$4 sm:$0xff]  }
0x13f1   :  { %v5448_v47 = vsel %vm629_vm11, %v10601_v45, %v5439_v27 }
0x13f2   :  { %6397 = vmatpush1.bf16.msra.mxu1 %v9031_v4  ;;  %v5567_v58 = vpop.permute.xlu1 %5566  ;;  %v5648_v39 = vsel %vm993_vm12, %v5448_v47, %v10605_v51  ;;  %v6581_v4 = vld [vmem:[%s10663_s24 + $0x10] sm:$0xff] }
0x13f3   :  { %6418 = vmatprep.mubr.bf16.mxu1 %v5648_v39  ;;  %6398 = vmatprep.subr.bf16.mxu1 %v9036_v8  ;;  %v5431_v8 = vsel %vm611_vm10, %v10570_v56, %v10592_v35  ;;  %v9072_v56 = vld [vmem:[%s10439_s25 + $0x224] ss:$8 sps:$4 sm:$0xff]  }
0x13f4   :  { %v5552_v13 = vpop.permute.xlu0 %5551  ;;  %5576 = vrot.lane.b32.xlu0 %v5542_v49, %s9238_s28  ;;  %v5465_v27 = vsel %vm629_vm11, %v5431_v8, %v10601_v45  ;;  %v9067_v49 = vld [vmem:[%s10439_s25 + $0x210] ss:$8 sps:$4 sm:$0xff]   ;;  %v9118_v8 = vld [vmem:[%s10439_s25 + $0x320] ss:$8 sps:$4 sm:$0xff]  }
0x13f5   :  { %v5561_v63 = vsel %vm611_vm10, %v5550_v54, %v5552_v13  ;;  %v9066_v54 = vld [vmem:[%s10439_s25 + $0x204] ss:$8 sps:$4 sm:$0xff]  }
0x13f6   :  { %6399 = vmatpush1.bf16.msra.mxu1 %v9034_v16  ;;  %v5556_v10 = vpop.permute.xlu1 %5555  ;;  %v5592_v46 = vsel %vm629_vm11, %v5561_v63, %v5567_v58  ;;  %v6583_v16 = vld [vmem:[%s10663_s24 + $0x20] sm:$0xf]  ;;  %v9075_v63 = vld [vmem:[%s10439_s25 + $0x234] ss:$8 sps:$4 sm:$0xff]  }
0x13f7   :  { %5610 = vrot.lane.b32.xlu1 %v5592_v46, %s9258_s5  ;;  %6400 = vmatprep.subr.bf16.mxu1 %v9039_v55  ;;  %v9070_v55 = vld [vmem:[%s10439_s25 + $0x220] ss:$8 sps:$4 sm:$0xff]  }
0x13f8   :  { %v5554_v18 = vpop.permute.xlu0 %5553 }
0x13f9   :  { %v5586_v61 = vsel %vm611_vm10, %v9581_v44, %v5554_v18  ;;  %v5562_v17 = vsel %vm611_vm10, %v5554_v18, %v5556_v10  ;;  %v9076_v18 = vld [vmem:[%s10439_s25 + $0x240] ss:$8 sps:$4 sm:$0xff]  }
0x13fa   :  { %6401 = vmatpush1.bf16.msra.mxu1 %v9037_v41  ;;  %v5558_v7 = vpop.permute.xlu1 %5557  ;;  %v9073_v41 = vld [vmem:[%s10439_s25 + $0x230] ss:$8 sps:$4 sm:$0xff]  }
0x13fb   :  { %5616 = vrot.lane.b32.xlu1 %v5586_v61, %s9258_s5  ;;  %6402 = vmatprep.subr.bf16.mxu1 %v9042_v15  ;;  %v5589_v53 = vsel %vm611_vm10, %v9594_v60, %v5558_v7  ;;  %v9078_v15 = vld [vmem:[%s10439_s25 + $0x244] ss:$8 sps:$4 sm:$0xff]   ;;  %v9081_v61 = vld [vmem:[%s10439_s25 + $0x254] ss:$8 sps:$4 sm:$0xff]  }
0x13fc   :  { %v5571_v19 = vpop.permute.xlu0 %5570 }
0x13fd   :  { %v5595_v26 = vsel %vm629_vm11, %v5562_v17, %v5571_v19  ;;  %v9082_v17 = vld [vmem:[%s10439_s25 + $0x260] ss:$8 sps:$4 sm:$0xff]  }
0x13fe   :  { %6403 = vmatpush1.bf16.msra.mxu1 %v9040_v40  ;;  %v10640_v44 = vpop.permute.xlu1 %5574  ;;  %5618 = vrot.lane.b32.xlu0 %v5595_v26, %s9258_s5  ;;  %v9079_v40 = vld [vmem:[%s10439_s25 + $0x250] ss:$8 sps:$4 sm:$0xff]   ;;  %v9090_v26 = vld [vmem:[%s10439_s25 + $0x284] ss:$8 sps:$4 sm:$0xff]  }
0x13ff   :  { %5624 = vrot.lane.b32.xlu1 %v5589_v53, %s9258_s5  ;;  %6404 = vmatprep.subr.bf16.mxu1 %v9045_v52  ;;  %v9084_v52 = vld [vmem:[%s10439_s25 + $0x264] ss:$8 sps:$4 sm:$0xff]   ;;  %v9088_v53 = vld [vmem:[%s10439_s25 + $0x280] ss:$8 sps:$4 sm:$0xff]  }
0x1400   :  { %v5560_v14 = vpop.permute.xlu0 %5559 }
0x1401   :  { %v5563_v62 = vsel %vm611_vm10, %v5558_v7, %v5560_v14  ;;  %v9096_v14 = vld [vmem:[%s10439_s25 + $0x2a4] ss:$8 sps:$4 sm:$0xff]  }
0x1402   :  { %6405 = vmatpush1.bf16.msra.mxu1 %v9043_v50  ;;  %v10647_v3 = vpop.permute.xlu1 %5425  ;;  %v5598_v60 = vsel %vm629_vm11, %v5563_v62, %v10640_v44  ;;  %v9093_v50 = vld [vmem:[%s10439_s25 + $0x294] ss:$8 sps:$4 sm:$0xff]   ;;  %v9094_v62 = vld [vmem:[%s10439_s25 + $0x2a0] ss:$8 sps:$4 sm:$0xff]  }
0x1403   :  { %5626 = vrot.lane.b32.xlu0 %v5598_v60, %s9258_s5  ;;  %6406 = vmatprep.subr.bf16.mxu1 %v9048_v11  ;;  %v5432_v13 = vsel %vm611_vm10, %v10584_v48, %v10647_v3  ;;  %v9091_v11 = vld [vmem:[%s10439_s25 + $0x290] ss:$8 sps:$4 sm:$0xff]   ;;  %v9099_v3 = vld [vmem:[%s10439_s25 + $0x2b4] ss:$8 sps:$4 sm:$0xff]  }
0x1404   :  { %v5569_v38 = vpop.permute.xlu0 %5568  ;;  %v9097_v60 = vld [vmem:[%s10439_s25 + $0x2b0] ss:$8 sps:$4 sm:$0xff]  }
0x1405   :  { %v5578_v31 = vsel %vm629_vm11, %v5567_v58, %v5569_v38  ;;  %v9105_v38 = vld [vmem:[%s10439_s25 + $0x2d4] ss:$8 sps:$4 sm:$0xff]  }
0x1406   :  { %6407 = vmatpush1.bf16.msra.mxu1 %v9046_v59  ;;  %v5441_v2 = vpop.permute.xlu1 %5440  ;;  %5612 = vrot.lane.b32.xlu1 %v5578_v31, %s9258_s5  ;;  %v9102_v59 = vld [vmem:[%s10439_s25 + $0x2c4] ss:$8 sps:$4 sm:$0xff]   ;;  %v9103_v31 = vld [vmem:[%s10439_s25 + $0x2d0] ss:$8 sps:$4 sm:$0xff]  }
0x1407   :  { %6408 = vmatprep.subr.bf16.mxu1 %v9051_v22  ;;  %v5469_v10 = vsel %vm629_vm11, %v5432_v13, %v5441_v2  ;;  %v9100_v22 = vld [vmem:[%s10439_s25 + $0x2c0] ss:$8 sps:$4 sm:$0xff]  }
0x1408   :  { %v5443_v5 = vpop.permute.xlu0 %5442 }
0x1409   :  { %v5449_v47 = vsel %vm629_vm11, %v5441_v2, %v5443_v5  ;;  %v9108_v2 = vld [vmem:[%s10439_s25 + $0x2e4] ss:$8 sps:$4 sm:$0xff]  }
0x140a   :  { %6409 = vmatpush1.bf16.msra.mxu1 %v9049_v43  ;;  %v5430_v24 = vpop.permute.xlu1 %5429  ;;  %v9106_v43 = vld [vmem:[%s10439_s25 + $0x2e0] ss:$8 sps:$4 sm:$0xff]  }
0x140b   :  { %6410 = vmatprep.subr.bf16.mxu1 %v9054_v29  ;;  %v5433_v48 = vsel %vm611_vm10, %v10596_v42, %v5430_v24  ;;  %v9087_v42 = vld [vmem:[%s10439_s25 + $0x274] ss:$8 sps:$4 sm:$0xff]   ;;  %v9109_v24 = vld [vmem:[%s10439_s25 + $0x2f0] ss:$8 sps:$4 sm:$0xff]   ;;  %v6580_v5 = vld [vmem:[%s10663_s24 + $0x8] sm:$0xff] }
0x140c   :  { %v10672_v25 = vpop.permute.xlu0 %5614  ;;  %v9111_v29 = vld [vmem:[%s10439_s25 + $0x2f4] ss:$8 sps:$4 sm:$0xff]  }
0x140d   :  { %v5652_v39 = vsel %vm993_vm12, %v5449_v47, %v10672_v25 }
0x140e   :  { %6411 = vmatpush1.bf16.msra.mxu1 %v9052_v21  ;;  %v5445_v12 = vpop.permute.xlu1 %5444  ;;  %v9114_v21 = vld [vmem:[%s10439_s25 + $0x304] ss:$8 sps:$4 sm:$0xff]  }
0x140f   :  { %6412 = vmatprep.subr.bf16.mxu1 %v9057_v23  ;;  %v5473_v7 = vsel %vm629_vm11, %v5433_v48, %v5445_v12 }
0x1410   :  { %v5447_v58 = vpop.permute.xlu0 %5446 }
0x1411   :  { %v5450_v35 = vsel %vm629_vm11, %v5445_v12, %v5447_v58  ;;  %v9121_v58 = vld [vmem:[%s10439_s25 + $0x330] ss:$8 sps:$4 sm:$0xff]  }
0x1412   :  { %6413 = vmatpush1.bf16.msra.mxu1 %v9055_v28  ;;  %v5573_v32 = vpop.permute.xlu1 %5572 }
0x1413   :  { %v5579_v37 = vsel %vm629_vm11, %v5571_v19, %v5573_v32  ;;  %6414 = vmatprep.subr.bf16.mxu1 %v9060_v30  ;;  %v9085_v19 = vld [vmem:[%s10439_s25 + $0x270] ss:$8 sps:$4 sm:$0xff]   ;;  %v9112_v32 = vld [vmem:[%s10439_s25 + $0x300] ss:$8 sps:$4 sm:$0xff]  }
0x1414   :  { %5620 = vrot.lane.b32.xlu0 %v5579_v37, %s9258_s5  ;;  %v10691_v45 = vpop.permute.xlu0 %5622  ;;  %v9117_v37 = vld [vmem:[%s10439_s25 + $0x314] ss:$8 sps:$4 sm:$0xff]  }
0x1415   :  { %v5656_v46 = vsel %vm993_vm12, %v5450_v35, %v10691_v45 }
0x1416   :  { %6415 = vmatpush1.bf16.msra.mxu1 %v9058_v36 }
0x1417   :  { %6416 = vmatprep.subr.bf16.mxu1 %v9063_v9 }
0x1418   :  { %6586 = vperm.xlu0 %8396, %v6579_v1   ;;  %v6582_v1 = vld [vmem:[%s10663_s24 + $0x18] sm:$0xff] }
0x141a   :  { %6417 = vmatpush1.bf16.msra.mxu1 %v9061_v33  ;;  %v9115_v33 = vld [vmem:[%s10439_s25 + $0x310] ss:$8 sps:$4 sm:$0xff]  }
0x141b   :  { %6447 = vmatprep.subr.bf16.mxu1 %v9066_v54 }
0x141c   :  { %6596 = vperm.xlu0 %8396, %v6581_v4  }
0x141d   :  { %6419 = vmatmul.mubr.bf16.vlgmr.msra.gmra.mrb[72].mxu1 %v5465_v27 }
0x141e   :  { %6428 = vmatprep.mubr.bf16.mxu1 %v5652_v39  ;;  %6448 = vmatpush1.bf16.msra.mxu1 %v9064_v6 }
0x141f   :  { %6449 = vmatprep.subr.bf16.mxu1 %v9069_v0 }
0x1420   :  { %6606 = vperm.xlu0 %8396, %v6583_v16   ;;  %v9126_v16 = vld [vmem:[%s10439_s25 + $0x344] ss:$8 sps:$4 sm:$0xff]  }
0x1422   :  { %6450 = vmatpush1.bf16.msra.mxu1 %v9067_v49  ;;  %v9124_v49 = vld [vmem:[%s10439_s25 + $0x340] ss:$8 sps:$4 sm:$0xff]  }
0x1423   :  { %6451 = vmatprep.subr.bf16.mxu1 %v9072_v56  ;;  %v9129_v56 = vld [vmem:[%s10439_s25 + $0x354] ss:$8 sps:$4 sm:$0xff]  }
0x1425   :  { %6429 = vmatmul.mubr.bf16.gmra.mrb[76].mxu1 %v5469_v10 }
0x1426   :  { %6438 = vmatprep.mubr.bf16.mxu1 %v5656_v46  ;;  %6452 = vmatpush1.bf16.msra.mxu1 %v9070_v55 }
0x1427   :  { %6453 = vmatprep.subr.bf16.mxu1 %v9075_v63 }
0x142a   :  { %6454 = vmatpush1.bf16.msra.mxu1 %v9073_v41 }
0x142b   :  { %6455 = vmatprep.subr.bf16.mxu1 %v9078_v15 }
0x142d   :  { %6439 = vmatmul.mubr.bf16.gmra.mrb[80].mxu1 %v5473_v7 }
0x142e   :  { %6456 = vmatpush1.bf16.msra.mxu1 %v9076_v18 }
0x142f   :  { %6457 = vmatprep.subr.bf16.mxu1 %v9081_v61 }
0x1432   :  { %6458 = vmatpush1.bf16.msra.mxu1 %v9079_v40 }
0x1433   :  { %6459 = vmatprep.subr.bf16.mxu1 %v9084_v52 }
0x1436   :  { %6460 = vmatpush1.bf16.msra.mxu1 %v9082_v17 }
0x1437   :  { %6461 = vmatprep.subr.bf16.mxu1 %v9087_v42 }
0x143a   :  { %6462 = vmatpush1.bf16.msra.mxu1 %v9085_v19 }
0x143b   :  { %6463 = vmatprep.subr.bf16.mxu1 %v9090_v26 }
0x143e   :  { %6464 = vmatpush1.bf16.msra.mxu1 %v9088_v53 }
0x143f   :  { %6465 = vmatprep.subr.bf16.mxu1 %v9093_v50 }
0x1442   :  { %6466 = vmatpush1.bf16.msra.mxu1 %v9091_v11 }
0x1443   :  { %6467 = vmatprep.subr.bf16.mxu1 %v9096_v14 }
0x1446   :  { %6468 = vmatpush1.bf16.msra.mxu1 %v9094_v62 }
0x1447   :  { %6469 = vmatprep.subr.bf16.mxu1 %v9099_v3 }
0x144a   :  { %6470 = vmatpush1.bf16.msra.mxu1 %v9097_v60 }
0x144b   :  { %6471 = vmatprep.subr.bf16.mxu1 %v9102_v59 }
0x144e   :  { %6472 = vmatpush1.bf16.msra.mxu1 %v9100_v22 }
0x144f   :  { %6473 = vmatprep.subr.bf16.mxu1 %v9105_v38 }
0x1452   :  { %6474 = vmatpush1.bf16.msra.mxu1 %v9103_v31 }
0x1453   :  { %6475 = vmatprep.subr.bf16.mxu1 %v9108_v2 }
0x1456   :  { %6476 = vmatpush1.bf16.msra.mxu1 %v9106_v43 }
0x1457   :  { %6477 = vmatprep.subr.bf16.mxu1 %v9111_v29 }
0x145a   :  { %6478 = vmatpush1.bf16.msra.mxu1 %v9109_v24 }
0x145b   :  { %6508 = vmatprep.subr.bf16.mxu1 %v9114_v21 }
0x1462   :  { %v5609_v23 = vpop.permute.xlu0 %5608 }
0x1463   :  { %v5631_v9 = vsel %vm993_vm12, %v10605_v51, %v5609_v23  ;;  %v9123_v51 = vld [vmem:[%s10439_s25 + $0x334] ss:$8 sps:$4 sm:$0xff]  }
0x1466   :  { %v5577_v12 = vpop.permute.xlu0 %5576 }
0x1467   :  { %v5580_v28 = vsel %vm629_vm11, %v10640_v44, %v5577_v12  ;;  %v9120_v44 = vld [vmem:[%s10439_s25 + $0x324] ss:$8 sps:$4 sm:$0xff]  }
0x1468   :  { %5628 = vrot.lane.b32.xlu1 %v5580_v28, %s9258_s5  ;;  %s9270_s5 = smov 35  }
0x1469   :  { %v5611_v30 = vpop.permute.xlu1 %5610  ;;  %s10768_s3 = sld [smem:[%s10989_s0 + %s9270_s5]]  }
0x146a   :  { %v5632_v36 = vsel %vm993_vm12, %v5609_v23, %v5611_v30 }
0x146b   :  { %6479 = vmatprep.mubr.bf16.mxu1 %v5632_v36 }
0x146c   :  { %6591 = vperm.xlu1 %8397, %v6580_v5   ;;  %6480 = vmatmul.mubr.bf16.vlgmr.msra.gmra.mrb[72].mxu1 %v5631_v9  ;;  %v5766_v5 = vld [vmem:[%s10802_s8] sm:$0xff] }
0x146d   :  { %6509 = vmatpush1.bf16.msra.mxu1 %v9112_v32  ;;  %v5617_v54 = vpop.permute.xlu1 %5616  ;;  %v5767_v32 = vld [vmem:[%s10802_s8 + $0x8] sm:$0xff] }
0x146e   :  { %6510 = vmatprep.subr.bf16.mxu1 %v9117_v37  ;;  %v5634_v0 = vsel %vm993_vm12, %v10672_v25, %v5617_v54  ;;  %v9127_v25 = vld [vmem:[%s10439_s25 + $0x350] ss:$8 sps:$4 sm:$0xff]  }
0x146f   :  { %v9130_v41 = vld [vmem:[%s10768_s3] ss:$8 sps:$4 sm:$0xff]   ;;  %v9132_v15 = vld [vmem:[%s10768_s3 + $0x4] ss:$8 sps:$4 sm:$0xff]   ;;  %v9135_v48 = vld [vmem:[%s10768_s3 + $0x14] ss:$8 sps:$4 sm:$0xff]  }
0x1470   :  { %6601 = vperm.xlu1 %8397, %v6582_v1   ;;  %v5619_v4 = vpop.permute.xlu0 %5618  ;;  %7102 = vmatprep.subr.bf16.mxu0 %v9132_v15  ;;  %v9133_v18 = vld [vmem:[%s10768_s3 + $0x10] ss:$8 sps:$4 sm:$0xff]   ;;  %v9138_v61 = vld [vmem:[%s10768_s3 + $0x24] ss:$8 sps:$4 sm:$0xff]   ;;  %v9136_v7 = vld [vmem:[%s10768_s3 + $0x20] ss:$8 sps:$4 sm:$0xff]  }
0x1471   :  { %6511 = vmatpush1.bf16.msra.mxu1 %v9115_v33  ;;  %v5635_v6 = vsel %vm993_vm12, %v5617_v54, %v5619_v4  ;;  %v5625_v27 = vpop.permute.xlu1 %5624  ;;  %7103 = vmatpush1.bf16.msra.mxu0 %v9130_v41  ;;  %v9141_v40 = vld [vmem:[%s10768_s3 + $0x34] ss:$8 sps:$4 sm:$0xff]   ;;  %v9139_v52 = vld [vmem:[%s10768_s3 + $0x30] ss:$8 sps:$4 sm:$0xff]   ;;  %v9144_v17 = vld [vmem:[%s10768_s3 + $0x44] ss:$8 sps:$4 sm:$0xff]  }
0x1472   :  { %6489 = vmatprep.mubr.bf16.mxu1 %v5635_v6  ;;  %6512 = vmatprep.subr.bf16.mxu1 %v9120_v44  ;;  %v5637_v35 = vsel %vm993_vm12, %v10691_v45, %v5625_v27  ;;  %v9142_v42 = vld [vmem:[%s10768_s3 + $0x40] ss:$8 sps:$4 sm:$0xff]   ;;  %v9147_v19 = vld [vmem:[%s10768_s3 + $0x54] ss:$8 sps:$4 sm:$0xff]   ;;  %v9145_v26 = vld [vmem:[%s10768_s3 + $0x50] ss:$8 sps:$4 sm:$0xff]  }
0x1473   :  { %7104 = vmatprep.subr.bf16.mxu0 %v9135_v48  ;;  %v9150_v53 = vld [vmem:[%s10768_s3 + $0x64] ss:$8 sps:$4 sm:$0xff]   ;;  %v9148_v50 = vld [vmem:[%s10768_s3 + $0x60] ss:$8 sps:$4 sm:$0xff]   ;;  %v9153_v11 = vld [vmem:[%s10768_s3 + $0x74] ss:$8 sps:$4 sm:$0xff]  }
0x1474   :  { %6490 = vmatmul.mubr.bf16.gmra.mrb[76].mxu1 %v5634_v0  ;;  %v9151_v14 = vld [vmem:[%s10768_s3 + $0x70] ss:$8 sps:$4 sm:$0xff]   ;;  %v9156_v62 = vld [vmem:[%s10768_s3 + $0x84] ss:$8 sps:$4 sm:$0xff]   ;;  %v9154_v3 = vld [vmem:[%s10768_s3 + $0x80] ss:$8 sps:$4 sm:$0xff]  }
0x1475   :  { %v5627_v47 = vpop.permute.xlu0 %5626  ;;  %6513 = vmatpush1.bf16.msra.mxu1 %v9118_v8  ;;  %7105 = vmatpush1.bf16.msra.mxu0 %v9133_v18  ;;  %v9157_v60 = vld [vmem:[%s10768_s3 + $0x90] ss:$8 sps:$4 sm:$0xff]   ;;  %v9159_v59 = vld [vmem:[%s10768_s3 + $0x94] ss:$8 sps:$4 sm:$0xff]   ;;  %v9160_v22 = vld [vmem:[%s10768_s3 + $0xa0] ss:$8 sps:$4 sm:$0xff]  }
0x1476   :  { %v5638_v39 = vsel %vm993_vm12, %v5625_v27, %v5627_v47  ;;  %6514 = vmatprep.subr.bf16.mxu1 %v9123_v51  ;;  %7106 = vmatprep.subr.bf16.mxu0 %v9138_v61  ;;  %v9162_v38 = vld [vmem:[%s10768_s3 + $0xa4] ss:$8 sps:$4 sm:$0xff]   ;;  %v9163_v31 = vld [vmem:[%s10768_s3 + $0xb0] ss:$8 sps:$4 sm:$0xff]   ;;  %v9165_v2 = vld [vmem:[%s10768_s3 + $0xb4] ss:$8 sps:$4 sm:$0xff]  }
0x1477   :  { %6499 = vmatprep.mubr.bf16.mxu1 %v5638_v39  ;;  %v9166_v43 = vld [vmem:[%s10768_s3 + $0xc0] ss:$8 sps:$4 sm:$0xff]   ;;  %v9168_v29 = vld [vmem:[%s10768_s3 + $0xc4] ss:$8 sps:$4 sm:$0xff]   ;;  %v9171_v24 = vld [vmem:[%s10768_s3 + $0xd4] ss:$8 sps:$4 sm:$0xff]  }
0x1478   :  { %v5613_v55 = vpop.permute.xlu1 %5612  ;;  %v9169_v21 = vld [vmem:[%s10768_s3 + $0xd0] ss:$8 sps:$4 sm:$0xff]   ;;  %v9174_v23 = vld [vmem:[%s10768_s3 + $0xe4] ss:$8 sps:$4 sm:$0xff]   ;;  %v9172_v12 = vld [vmem:[%s10768_s3 + $0xe0] ss:$8 sps:$4 sm:$0xff]  }
0x1479   :  { %6515 = vmatpush1.bf16.msra.mxu1 %v9121_v58  ;;  %v5633_v13 = vsel %vm993_vm12, %v5611_v30, %v5613_v55  ;;  %7107 = vmatpush1.bf16.msra.mxu0 %v9136_v7  ;;  %v9177_v28 = vld [vmem:[%s10768_s3 + $0xf4] ss:$8 sps:$4 sm:$0xff]   ;;  %v9175_v30 = vld [vmem:[%s10768_s3 + $0xf0] ss:$8 sps:$4 sm:$0xff]  }
0x147a   :  { %6516 = vmatprep.subr.bf16.mxu1 %v9126_v16  ;;  %7108 = vmatprep.subr.bf16.mxu0 %v9141_v40  ;;  %v5768_v37 = vld [vmem:[%s10802_s8 + $0x10] sm:$0xff]  ;;  %v5769_v33 = vld [vmem:[%s10802_s8 + $0x18] sm:$0xff]  ;;  %v5770_v16 = vld [vmem:[%s10802_s8 + $0x20] sm:$0xff] }
0x147b   :  { %v5773_v41 = vld [vmem:[%s10802_s8 + $0x38] sm:$0xff] }
0x147c   :  { %6500 = vmatmul.mubr.bf16.gmra.mrb[80].mxu1 %v5637_v35  ;;  %v5771_v35 = vld [vmem:[%s10802_s8 + $0x28] sm:$0xff] }
0x147d   :  { %6517 = vmatpush1.bf16.msra.mxu1 %v9124_v49  ;;  %6540 = vmatprep.mubr.bf16.mxu1 %v9234_v34 }
0x147e   :  { %6518 = vmatprep.subr.bf16.mxu1 %v9129_v56  ;;  %7109 = vmatpush1.bf16.msra.mxu0 %v9139_v52 }
0x147f   :  { %7110 = vmatprep.subr.bf16.mxu0 %v9144_v17 }
0x1481   :  { %6519 = vmatpush1.bf16.msra.mxu1 %v9127_v25 }
0x1482   :  { %7336 = vmatprep.subr.bf16.mxu1 %v9234_v34  ;;  %7111 = vmatpush1.bf16.msra.mxu0 %v9142_v42 }
0x1483   :  { %7112 = vmatprep.subr.bf16.mxu0 %v9147_v19 }
0x1484   :  { %8053 = vmatmul.mubr.msk.bf16.vlgmr.msra.gmra.mrb[72].mxu1 %vm2357_vm5, %v5633_v13 }
0x1485   :  { %6550 = vmatprep.mubr.bf16.mxu1 %v9234_v34 }
0x1486   :  { %v5621_v63 = vpop.permute.xlu0 %5620  ;;  %7113 = vmatpush1.bf16.msra.mxu0 %v9145_v26 }
0x1487   :  { %v5636_v10 = vsel %vm993_vm12, %v5619_v4, %v5621_v63  ;;  %7114 = vmatprep.subr.bf16.mxu0 %v9150_v53  ;;  %v5772_v63 = vld [vmem:[%s10802_s8 + $0x30] sm:$0xff] }
0x148a   :  { %7115 = vmatpush1.bf16.msra.mxu0 %v9148_v50 }
0x148b   :  { %7116 = vmatprep.subr.bf16.mxu0 %v9153_v11 }
0x148c   :  { %8054 = vmatmul.mubr.msk.bf16.gmra.mrb[76].mxu1 %vm2357_vm5, %v5636_v10 }
0x148d   :  { %6560 = vmatprep.mubr.bf16.mxu1 %v9234_v34 }
0x148e   :  { %7117 = vmatpush1.bf16.msra.mxu0 %v9151_v14 }
0x148f   :  { %7118 = vmatprep.subr.bf16.mxu0 %v9156_v62 }
0x1492   :  { %7119 = vmatpush1.bf16.msra.mxu0 %v9154_v3  ;;  %v9180_v3 = vld [vmem:[%s10768_s3 + $0x104] ss:$8 sps:$4 sm:$0xff]  }
0x1493   :  { %7120 = vmatprep.subr.bf16.mxu0 %v9159_v59 }
0x1496   :  { %7121 = vmatpush1.bf16.msra.mxu0 %v9157_v60 }
0x1497   :  { %7122 = vmatprep.subr.bf16.mxu0 %v9162_v38 }
0x149a   :  { %7123 = vmatpush1.bf16.msra.mxu0 %v9160_v22 }
0x149b   :  { %7124 = vmatprep.subr.bf16.mxu0 %v9165_v2 }
0x149e   :  { %7125 = vmatpush1.bf16.msra.mxu0 %v9163_v31 }
0x149f   :  { %7126 = vmatprep.subr.bf16.mxu0 %v9168_v29 }
0x14a2   :  { %7127 = vmatpush1.bf16.msra.mxu0 %v9166_v43 }
0x14a3   :  { %7128 = vmatprep.subr.bf16.mxu0 %v9171_v24 }
0x14a6   :  { %7129 = vmatpush1.bf16.msra.mxu0 %v9169_v21 }
0x14a7   :  { %7130 = vmatprep.subr.bf16.mxu0 %v9174_v23 }
0x14aa   :  { %7131 = vmatpush1.bf16.msra.mxu0 %v9172_v12 }
0x14ab   :  { %7132 = vmatprep.subr.bf16.mxu0 %v9177_v28 }
0x14ae   :  { %7133 = vmatpush1.bf16.msra.mxu0 %v9175_v30 }
0x14af   :  { %7163 = vmatprep.subr.bf16.mxu0 %v9180_v3 }
0x14da   :  { %v5629_v45 = vpop.permute.xlu1 %5628 }
0x14db   :  { %v5639_v46 = vsel %vm993_vm12, %v5627_v47, %v5629_v45  ;;  %v10811_v47 = vpop.permute.xlu0 %6586 }
0x14dc   :  { %8055 = vmatmul.mubr.msk.bf16.gmra.mrb[80].mxu1 %vm2357_vm5, %v5639_v46 }
0x14df   :  { %v10828_v53 = vpop.permute.xlu0 %6596 }
0x14eb   :  { %v10813_v58 = vpop.permute.xlu1 %6591 }
0x14ef   :  { %v10830_v50 = vpop.permute.xlu1 %6601 }
0x1557   :  { %v6542_v36 = vpop.f32.mrb[72].mxu1 }
0x1558   :  { %v8238_v9 = vadd.f32 %v6542_v36, %v5766_v5  ;;  %v6544_v1 = vpop.f32.mrb[73].mxu1 }
0x1559   :  { %v8239_v44 = vadd.f32 %v6544_v1, %v5767_v32  ;;  %v6546_v54 = vpop.f32.mrb[74].mxu1 }
0x155a   :  { %v6569_v4 = vmax.f32 %v8238_v9, 0.0  ;;  %v8240_v6 = vadd.f32 %v6546_v54, %v5768_v37  ;;  %v6548_v8 = vpop.f32.mrb[75].mxu1 }
0x155b   :  { %v6570_v51 = vmax.f32 %v8239_v44, 0.0  ;;  %v8241_v0 = vadd.f32 %v6548_v8, %v5769_v33 }
0x155c   :  { %v6571_v27 = vmax.f32 %v8240_v6, 0.0  ;;  %v6609_v49 = vmul.f32 %v10811_v47, %v6569_v4 }
0x155d   :  { %v6572_v39 = vmax.f32 %v8241_v0, 0.0  ;;  %v6610_v25 = vmul.f32 %v10811_v47, %v6570_v51  ;;  %v5774_v0 = vld [vmem:[%s10802_s8 + $0x40] sm:$0xf] }
0x155e   :  { %v6611_v56 = vmul.f32 %v10813_v58, %v6571_v27  ;;  %v5775_v27 = vld [vmem:[%s10802_s8 + $0x48] sm:$0xf] }
0x155f   :  { %v6612_v55 = vmul.f32 %v10813_v58, %v6572_v39  ;;  %v6552_v13 = vpop.f32.mrb[76].mxu1 }
0x1560   :  { %v10822_v10 = vpack.c.bf16 %v6611_v56, %v6609_v49  ;;  %v8242_v45 = vadd.f32 %v6552_v13, %v5770_v16  ;;  %v6554_v46 = vpop.f32.mrb[77].mxu1  ;;  %v10861_v13 = vpop.permute.xlu0 %6606 }
0x1561   :  { %v6620_v15 = vpack.c.bf16 %v6612_v55, %v6610_v25  ;;  %v8243_v48 = vadd.f32 %v6554_v46, %v5771_v35  ;;  %v6556_v18 = vpop.f32.mrb[78].mxu1 }
0x1562   :  { %v6573_v61 = vmax.f32 %v8242_v45, 0.0  ;;  %v8244_v7 = vadd.f32 %v6556_v18, %v5772_v63  ;;  %v6558_v40 = vpop.f32.mrb[79].mxu1  ;;  %6703 = vrot.lane.b32.xlu1 %v10822_v10, %s9235_s16  ;;  %v6629_v19 = vshll.u32 %v10822_v10, 16  ;;  %v6626_v24 = vshrl.u32 %v10822_v10, 16 }
0x1563   :  { %v6633_v52 = vshrl.u32 %v6620_v15, 16  ;;  %v6574_v17 = vmax.f32 %v8243_v48, 0.0  ;;  %v8245_v42 = vadd.f32 %v6558_v40, %v5773_v41  ;;  %v6636_v11 = vshll.u32 %v6620_v15, 16 }
0x1564   :  { %v6575_v26 = vmax.f32 %v8244_v7, 0.0  ;;  %v6613_v60 = vmul.f32 %v10828_v53, %v6573_v61  ;;  %v6677_v43 = vrot.slane %v6629_v19, 1  ;;  %v6628_v33 = vrot.slane %v6626_v24, 7 }
0x1565   :  { %v6576_v14 = vmax.f32 %v8245_v42, 0.0  ;;  %v6635_v62 = vrot.slane %v6633_v52, 7  ;;  %v6614_v22 = vmul.f32 %v10828_v53, %v6574_v17  ;;  %v6681_v30 = vrot.slane %v6636_v11, 1 }
0x1566   :  { %v6615_v59 = vmul.f32 %v10830_v50, %v6575_v26  ;;  %v6678_v5 = vor.u32 %v6677_v43, %v6626_v24  ;;  %v9213_v24 = vld [vmem:[%s9353_s19 + $0x10] sm:$0xff]   ;;  %v6631_v20 = vor.u32 %v6629_v19, %v6628_v33  ;;  %v9216_v19 = vld [vmem:[%s9353_s19 + $0x28] sm:$0xff]  }
0x1567   :  { %v6616_v38 = vmul.f32 %v10830_v50, %v6576_v14  ;;  %v10837_v31 = vor.u32 %v6636_v11, %v6635_v62  ;;  %v6682_v54 = vor.u32 %v6681_v30, %v6633_v52  ;;  %v9178_v30 = vld [vmem:[%s10768_s3 + $0x100] ss:$8 sps:$4 sm:$0xff]  }
0x1568   :  { %v6621_v2 = vpack.c.bf16 %v6615_v59, %v6613_v60  ;;  %v6675_v10 = vsel %vm9336_vm6, 0, %v6631_v20 }
0x1569   :  { %v6622_v29 = vpack.c.bf16 %v6616_v38, %v6614_v22 }
0x156a   :  { %v6640_v21 = vshrl.u32 %v6621_v2, 16  ;;  %v6643_v23 = vshll.u32 %v6621_v2, 16  ;;  %6707 = vrot.lane.b32.xlu0 %v6621_v2, %s9235_s16  ;;  %v9211_v2 = vld [vmem:[%s9353_s19] sm:$0xff]  }
0x156b   :  { %v6648_v12 = vshrl.u32 %v6622_v29, 16  ;;  %v6651_v28 = vshll.u32 %v6622_v29, 16  ;;  %7337 = vmatpush1.bf16.msra.mxu1 %v9211_v2  ;;  %v9218_v2 = vld [vmem:[%s9353_s19 + $0x38] sm:$0xff]  }
0x156c   :  { %v6679_v32 = vrot.slane %v6643_v23, 1  ;;  %v10843_v36 = vrot.slane %v6640_v21, 7  ;;  %7338 = vmatprep.subr.bf16.mxu1 %v9234_v34 }
0x156d   :  { %v6683_v37 = vrot.slane %v6651_v28, 1  ;;  %v10845_v9 = vrot.slane %v6648_v12, 7 }
0x156e   :  { %6705 = vrot.lane.b32.xlu0 %v6620_v15, %s9235_s16  ;;  %v6680_v1 = vsel %vm197_vm0, %v6678_v5, %v6679_v32  ;;  %v6645_v44 = vor.u32 %v6643_v23, %v10843_v36  ;;  %v6685_v40 = vor.u32 %v6679_v32, %v6640_v21  ;;  %v9214_v21 = vld [vmem:[%s9353_s19 + $0x18] sm:$0xff]   ;;  %v9215_v23 = vld [vmem:[%s9353_s19 + $0x20] sm:$0xff]  }
0x156f   :  { %v6653_v4 = vor.u32 %v6651_v28, %v10845_v9  ;;  %v6684_v8 = vsel %vm197_vm0, %v6682_v54, %v6683_v37  ;;  %v6688_v42 = vor.u32 %v6683_v37, %v6648_v12  ;;  %v6676_v28 = vsel %vm9336_vm6, 0, %v10837_v31  ;;  %v9183_v32 = vld [vmem:[%s10768_s3 + $0x114] ss:$8 sps:$4 sm:$0xff]   ;;  %v9181_v37 = vld [vmem:[%s10768_s3 + $0x110] ss:$8 sps:$4 sm:$0xff]  }
0x1570   :  { %v10852_v6 = vsel %vm169_vm4, %v6628_v33, %v6645_v44  ;;  %v9186_v31 = vld [vmem:[%s10768_s3 + $0x124] ss:$8 sps:$4 sm:$0xff]   ;;  %v9184_v33 = vld [vmem:[%s10768_s3 + $0x120] ss:$8 sps:$4 sm:$0xff]   ;;  %v9189_v44 = vld [vmem:[%s10768_s3 + $0x134] ss:$8 sps:$4 sm:$0xff]  }
0x1571   :  { %v10856_v51 = vsel %vm169_vm4, %v6635_v62, %v6653_v4  ;;  %v9187_v54 = vld [vmem:[%s10768_s3 + $0x130] ss:$8 sps:$4 sm:$0xff]   ;;  %v9192_v4 = vld [vmem:[%s10768_s3 + $0x144] ss:$8 sps:$4 sm:$0xff]  }
0x1572   :  { %6722 = vrot.lane.b32.xlu0 %v6684_v8, %s9238_s28  ;;  %v9190_v8 = vld [vmem:[%s10768_s3 + $0x140] ss:$8 sps:$4 sm:$0xff]  }
0x15af   :  { %v6562_v39 = vpop.f32.mrb[80].mxu1 }
0x15b0   :  { %v8246_v16 = vadd.f32 %v6562_v39, %v5774_v0  ;;  %v6564_v49 = vpop.f32.mrb[81].mxu1  ;;  %v9195_v0 = vld [vmem:[%s10768_s3 + $0x154] ss:$8 sps:$4 sm:$0xff]  }
0x15b1   :  { %v8247_v56 = vadd.f32 %v6564_v49, %v5775_v27  ;;  %v6566_v35 = vpop.f32.mrb[82].mxu1  ;;  %v9198_v27 = vld [vmem:[%s10768_s3 + $0x164] ss:$8 sps:$4 sm:$0xff]   ;;  %v9201_v39 = vld [vmem:[%s10768_s3 + $0x174] ss:$8 sps:$4 sm:$0xff]  }
0x15b2   :  { %v6577_v25 = vmax.f32 %v8246_v16, 0.0  ;;  %v6567_v55 = vpop.f32.mrb[83].mxu1  ;;  %v9199_v16 = vld [vmem:[%s10768_s3 + $0x170] ss:$8 sps:$4 sm:$0xff]   ;;  %v9204_v49 = vld [vmem:[%s10768_s3 + $0x184] ss:$8 sps:$4 sm:$0xff]  }
0x15b3   :  { %v6578_v63 = vmax.f32 %v8247_v56, 0.0  ;;  %v9202_v56 = vld [vmem:[%s10768_s3 + $0x180] ss:$8 sps:$4 sm:$0xff]   ;;  %v9207_v35 = vld [vmem:[%s10768_s3 + $0x194] ss:$8 sps:$4 sm:$0xff]  }
0x15b4   :  { %v6617_v45 = vmul.f32 %v10861_v13, %v6577_v25  ;;  %v9205_v25 = vld [vmem:[%s10768_s3 + $0x190] ss:$8 sps:$4 sm:$0xff]   ;;  %v9210_v55 = vld [vmem:[%s10768_s3 + $0x1a4] ss:$8 sps:$4 sm:$0xff]  }
0x15b5   :  { %v6618_v46 = vmul.f32 %v10861_v13, %v6578_v63  ;;  %v9208_v63 = vld [vmem:[%s10768_s3 + $0x1a0] ss:$8 sps:$4 sm:$0xff]  }
0x15b6   :  { %v6623_v41 = vpack.c.bf16 %v6617_v45, %v6617_v45 }
0x15b7   :  { %v6624_v15 = vpack.c.bf16 %v6618_v46, %v6618_v46 }
0x15b8   :  { %v6659_v48 = vshll.u32 %v6623_v41, 16  ;;  %6711 = vrot.lane.b32.xlu1 %v6623_v41, %s9235_s16  ;;  %v6656_v18 = vshrl.u32 %v6623_v41, 16 }
0x15b9   :  { %v6667_v61 = vshll.u32 %v6624_v15, 16  ;;  %v6664_v7 = vshrl.u32 %v6624_v15, 16 }
0x15ba   :  { %v6686_v52 = vrot.slane %v6659_v48, 1  ;;  %v6658_v17 = vrot.slane %v6656_v18, 7 }
0x15bb   :  { %v6689_v26 = vrot.slane %v6667_v61, 1  ;;  %v6666_v11 = vrot.slane %v6664_v7, 7 }
0x15bc   :  { %6720 = vrot.lane.b32.xlu1 %v6680_v1, %s9238_s28  ;;  %v6687_v14 = vsel %vm197_vm0, %v6685_v40, %v6686_v52  ;;  %v10868_v62 = vor.u32 %v6659_v48, %v6658_v17  ;;  %v6691_v22 = vor.u32 %v6686_v52, %v6656_v18 }
0x15bd   :  { %6724 = vrot.lane.b32.xlu0 %v6687_v14, %s9238_s28  ;;  %v6690_v3 = vsel %vm197_vm0, %v6688_v42, %v6689_v26  ;;  %v10872_v60 = vor.u32 %v6667_v61, %v6666_v11  ;;  %v6692_v59 = vor.u32 %v6689_v26, %v6664_v7 }
0x15be   :  { %v6695_v43 = vsel %vm9295_vm3, %v6691_v22, 0  ;;  %v6662_v18 = vsel %vm169_vm4, %v10843_v36, %v10868_v62 }
0x15bf   :  { %v6696_v38 = vsel %vm9295_vm3, %v6692_v59, 0  ;;  %v6670_v41 = vsel %vm169_vm4, %v10845_v9, %v10872_v60 }
0x15c0   :  { %6709 = vrot.lane.b32.xlu1 %v6622_v29, %s9235_s16  ;;  %v9212_v29 = vld [vmem:[%s9353_s19 + $0x8] sm:$0xff]  }
0x15c1   :  { %6713 = vrot.lane.b32.xlu0 %v6624_v15, %s9235_s16  ;;  %7339 = vmatpush1.bf16.msra.mxu1 %v9212_v29  ;;  %s9272_s16 = smov 30  }
0x15c2   :  { %7340 = vmatprep.subr.bf16.mxu1 %v9234_v34  ;;  %s10958_s9 = sld [smem:[%s10989_s0 + %s9272_s16]]  }
0x15c4   :  { %6726 = vrot.lane.b32.xlu1 %v6690_v3, %s9238_s28 }
0x15c5   :  { %6730 = vrot.lane.b32.xlu0 %v6696_v38, %s9238_s28  ;;  %7341 = vmatpush1.bf16.msra.mxu1 %v9213_v24  ;;  %v9217_v38 = vld [vmem:[%s9353_s19 + $0x30] sm:$0xff]  }
0x15c6   :  { %7342 = vmatprep.subr.bf16.mxu1 %v9234_v34 }
0x15c8   :  { %6728 = vrot.lane.b32.xlu1 %v6695_v43, %s9238_s28  ;;  %v9219_v43 = vld [vmem:[%s9353_s19 + $0x40] sm:$0xff]   ;;  %v6814_v24 = vld [vmem:[%s10958_s9 + $0x8] sm:$0xff]  ;;  %v6815_v20 = vld [vmem:[%s10958_s9 + $0x10] sm:$0xff]  ;;  %s9273_s19 = smov 15  }
0x15c9   :  { %7343 = vmatpush1.bf16.msra.mxu1 %v9214_v21  ;;  %v6813_v29 = vld [vmem:[%s10958_s9] sm:$0xff]  ;;  %s7420_s12 = sld [smem:[%s10989_s0 + %s9273_s19]]  }
0x15ca   :  { %7344 = vmatprep.subr.bf16.mxu1 %v9234_v34 }
0x15cd   :  { %7345 = vmatpush1.bf16.msra.mxu1 %v9215_v23 }
0x15ce   :  { %7346 = vmatprep.subr.bf16.mxu1 %v9234_v34 }
0x15d1   :  { %7347 = vmatpush1.bf16.msra.mxu1 %v9216_v19 }
0x15d2   :  { %7348 = vmatprep.subr.bf16.mxu1 %v9234_v34 }
0x15d4   :  { %v10893_v12 = vpop.permute.xlu1 %6703 }
0x15d5   :  { %v6737_v5 = vsel %vm611_vm10, %v6676_v28, %v10893_v12  ;;  %7349 = vmatpush1.bf16.msra.mxu1 %v9217_v38  ;;  %v7269_v38 = vld [vmem:[%s7420_s12 + $0x8] sm:$0xff] }
0x15d6   :  { %7134 = vmatprep.mubr.bf16.mxu0 %v6737_v5  ;;  %7350 = vmatprep.subr.bf16.mxu1 %v9234_v34 }
0x15d7   :  { %7135 = vmatmul.mubr.bf16.vlgmr.msra.gmra.mrb[88].mxu0 %v6675_v10 }
0x15d8   :  { %7164 = vmatpush1.bf16.msra.mxu0 %v9178_v30 }
0x15d9   :  { %7165 = vmatprep.subr.bf16.mxu0 %v9183_v32  ;;  %7351 = vmatpush1.bf16.msra.mxu1 %v9218_v2 }
0x15da   :  { %7352 = vmatprep.subr.bf16.mxu1 %v9234_v34 }
0x15dc   :  { %v6708_v1 = vpop.permute.xlu0 %6707  ;;  %7166 = vmatpush1.bf16.msra.mxu0 %v9181_v37 }
0x15dd   :  { %v6741_v57 = vsel %vm611_vm10, %v10856_v51, %v6708_v1  ;;  %7167 = vmatprep.subr.bf16.mxu0 %v9186_v31  ;;  %v9193_v51 = vld [vmem:[%s10768_s3 + $0x150] ss:$8 sps:$4 sm:$0xff]   ;;  %7353 = vmatpush1.bf16.msra.mxu1 %v9219_v43 }
0x15de   :  { %7144 = vmatprep.mubr.bf16.mxu0 %v6741_v57 }
0x15df   :  { %7145 = vmatmul.mubr.bf16.gmra.mrb[92].mxu0 %v10852_v6  ;;  %v9196_v6 = vld [vmem:[%s10768_s3 + $0x160] ss:$8 sps:$4 sm:$0xff]  }
0x15e0   :  { %7168 = vmatpush1.bf16.msra.mxu0 %v9184_v33  ;;  %v6706_v45 = vpop.permute.xlu0 %6705  ;;  %v6817_v33 = vld [vmem:[%s10958_s9 + $0x20] sm:$0xff] }
0x15e1   :  { %7169 = vmatprep.subr.bf16.mxu0 %v9189_v44  ;;  %v6715_v17 = vsel %vm611_vm10, %v10893_v12, %v6706_v45  ;;  %v6816_v12 = vld [vmem:[%s10958_s9 + $0x18] sm:$0xff] }
0x15e4   :  { %7170 = vmatpush1.bf16.msra.mxu0 %v9187_v54  ;;  %v6723_v48 = vpop.permute.xlu0 %6722  ;;  %v6818_v54 = vld [vmem:[%s10958_s9 + $0x28] sm:$0xff] }
0x15e5   :  { %7171 = vmatprep.subr.bf16.mxu0 %v9192_v4 }
0x15e8   :  { %7172 = vmatpush1.bf16.msra.mxu0 %v9190_v8 }
0x15e9   :  { %7173 = vmatprep.subr.bf16.mxu0 %v9195_v0 }
0x15ec   :  { %7174 = vmatpush1.bf16.msra.mxu0 %v9193_v51  ;;  %v6819_v51 = vld [vmem:[%s10958_s9 + $0x30] sm:$0xff] }
0x15ed   :  { %7175 = vmatprep.subr.bf16.mxu0 %v9198_v27 }
0x15f0   :  { %7176 = vmatpush1.bf16.msra.mxu0 %v9196_v6 }
0x15f1   :  { %7177 = vmatprep.subr.bf16.mxu0 %v9201_v39 }
0x15f4   :  { %7178 = vmatpush1.bf16.msra.mxu0 %v9199_v16  ;;  %v6820_v16 = vld [vmem:[%s10958_s9 + $0x38] sm:$0xff] }
0x15f5   :  { %7179 = vmatprep.subr.bf16.mxu0 %v9204_v49 }
0x15f8   :  { %7180 = vmatpush1.bf16.msra.mxu0 %v9202_v56 }
0x15f9   :  { %7181 = vmatprep.subr.bf16.mxu0 %v9207_v35 }
0x15fc   :  { %7182 = vmatpush1.bf16.msra.mxu0 %v9205_v25 }
0x15fd   :  { %7183 = vmatprep.subr.bf16.mxu0 %v9210_v55 }
0x1600   :  { %7184 = vmatpush1.bf16.msra.mxu0 %v9208_v63 }
0x162a   :  { %v6712_v46 = vpop.permute.xlu1 %6711 }
0x162b   :  { %v6745_v15 = vsel %vm611_vm10, %v6670_v41, %v6712_v46  ;;  %v6821_v41 = vld [vmem:[%s10958_s9 + $0x40] sm:$0xf] }
0x162c   :  { %7154 = vmatprep.mubr.bf16.mxu0 %v6745_v15 }
0x162d   :  { %7155 = vmatmul.mubr.bf16.gmra.mrb[96].mxu0 %v6662_v18  ;;  %v6822_v18 = vld [vmem:[%s10958_s9 + $0x48] sm:$0xf] }
0x162e   :  { %v6721_v61 = vpop.permute.xlu1 %6720 }
0x162f   :  { %v6732_v7 = vsel %vm629_vm11, %v6721_v61, %v6723_v48  ;;  %v6725_v40 = vpop.permute.xlu0 %6724  ;;  %v6749_v9 = vsel %vm629_vm11, %v6715_v17, %v6721_v61 }
0x1630   :  { %8110 = vmatprep.mubr.msk.bf16.mxu0 %vm993_vm12, %v6732_v7 }
0x1632   :  { %v6710_v52 = vpop.permute.xlu1 %6709 }
0x1633   :  { %v6714_v42 = vpop.permute.xlu0 %6713  ;;  %v6716_v11 = vsel %vm611_vm10, %v6708_v1, %v6710_v52 }
0x1634   :  { %v6753_v3 = vsel %vm629_vm11, %v6716_v11, %v6725_v40  ;;  %v6717_v59 = vsel %vm611_vm10, %v6712_v46, %v6714_v42 }
0x1635   :  { %7196 = vmatmul.mubr.bf16.vlgmr.msra.gmra.mrb[88].mxu0 %v6749_v9 }
0x1636   :  { %v6727_v26 = vpop.permute.xlu1 %6726 }
0x1637   :  { %v6733_v36 = vsel %vm629_vm11, %v6725_v40, %v6727_v26  ;;  %v6731_v62 = vpop.permute.xlu0 %6730 }
0x1638   :  { %8111 = vmatprep.mubr.msk.bf16.mxu0 %vm993_vm12, %v6733_v36 }
0x163a   :  { %v6729_v14 = vpop.permute.xlu1 %6728 }
0x163b   :  { %v6734_v60 = vsel %vm629_vm11, %v6729_v14, %v6731_v62  ;;  %v6757_v22 = vsel %vm629_vm11, %v6717_v59, %v6729_v14  ;;  %v7268_v59 = vld [vmem:[%s7420_s12] sm:$0xff] }
0x163d   :  { %7206 = vmatmul.mubr.bf16.gmra.mrb[92].mxu0 %v6753_v3 }
0x163e   :  { %8112 = vmatprep.mubr.msk.bf16.mxu0 %vm993_vm12, %v6734_v60 }
0x1645   :  { %7216 = vmatmul.mubr.bf16.gmra.mrb[96].mxu0 %v6757_v22 }
0x1708   :  { %v7197_v21 = vpop.f32.mrb[88].mxu0 }
0x1709   :  { %v8248_v23 = vadd.f32 %v7197_v21, %v6813_v29  ;;  %v7199_v34 = vpop.f32.mrb[89].mxu0 }
0x170a   :  { %v8249_v28 = vadd.f32 %v7199_v34, %v6814_v24  ;;  %v7201_v30 = vpop.f32.mrb[90].mxu0 }
0x170b   :  { %v7224_v5 = vmax.f32 %v8248_v23, 0.0  ;;  %v8250_v32 = vadd.f32 %v7201_v30, %v6815_v20  ;;  %v7203_v10 = vpop.f32.mrb[91].mxu0  ;;  %v7271_v23 = vld [vmem:[%s7420_s12 + $0x18] sm:$0xff] }
0x170c   :  { %v7225_v19 = vmax.f32 %v8249_v28, 0.0  ;;  %v8251_v37 = vadd.f32 %v7203_v10, %v6816_v12  ;;  %v7272_v10 = vld [vmem:[%s7420_s12 + $0x20] sm:$0xf] }
0x170d   :  { %v7226_v31 = vmax.f32 %v8250_v32, 0.0  ;;  %v7234_v57 = vmul.f32 %v7224_v5, %v10811_v47 }
0x170e   :  { %v7227_v1 = vmax.f32 %v8251_v37, 0.0  ;;  %v7235_v4 = vmul.f32 %v7225_v19, %v10811_v47 }
0x170f   :  { %v7236_v44 = vmul.f32 %v7226_v31, %v10813_v58 }
0x1710   :  { %v7237_v8 = vmul.f32 %v7227_v1, %v10813_v58  ;;  %v7207_v0 = vpop.f32.mrb[92].mxu0 }
0x1711   :  { %v7244_v27 = vpack.c.bf16 %v7236_v44, %v7234_v57  ;;  %v8252_v6 = vadd.f32 %v7207_v0, %v6817_v33  ;;  %v7209_v39 = vpop.f32.mrb[93].mxu0 }
0x1712   :  { %v7245_v49 = vpack.c.bf16 %v7237_v8, %v7235_v4  ;;  %v8253_v56 = vadd.f32 %v7209_v39, %v6818_v54  ;;  %v7211_v35 = vpop.f32.mrb[94].mxu0 }
0x1713   :  { %v7228_v25 = vmax.f32 %v8252_v6, 0.0  ;;  %v8254_v55 = vadd.f32 %v7211_v35, %v6819_v51  ;;  %v7213_v63 = vpop.f32.mrb[95].mxu0 }
0x1714   :  { %v7229_v45 = vmax.f32 %v8253_v56, 0.0  ;;  %v8255_v46 = vadd.f32 %v7213_v63, %v6820_v16  ;;  %8122 = vmatprep.mubr.msk.bf16.mxu1 %vm611_vm10, %v7245_v49 }
0x1715   :  { %v7230_v47 = vmax.f32 %v8254_v55, 0.0  ;;  %7369 = vmatmul.mubr.bf16.vlgmr.msra.gmra.mrb[84].mxu1 %v7244_v27  ;;  %v7238_v15 = vmul.f32 %v7228_v25, %v10828_v53 }
0x1716   :  { %v7231_v58 = vmax.f32 %v8255_v46, 0.0  ;;  %v7239_v61 = vmul.f32 %v7229_v45, %v10828_v53 }
0x1717   :  { %v7240_v48 = vmul.f32 %v7230_v47, %v10830_v50 }
0x1718   :  { %v7241_v7 = vmul.f32 %v7231_v58, %v10830_v50  ;;  %v7217_v40 = vpop.f32.mrb[96].mxu0 }
0x1719   :  { %v8256_v52 = vadd.f32 %v7217_v40, %v6821_v41  ;;  %v7219_v17 = vpop.f32.mrb[97].mxu0  ;;  %v7246_v9 = vpack.c.bf16 %v7240_v48, %v7238_v15 }
0x171a   :  { %v7247_v42 = vpack.c.bf16 %v7241_v7, %v7239_v61  ;;  %v8257_v26 = vadd.f32 %v7219_v17, %v6822_v18  ;;  %v7221_v36 = vpop.f32.mrb[98].mxu0 }
0x171b   :  { %v7232_v11 = vmax.f32 %v8256_v52, 0.0  ;;  %v7222_v14 = vpop.f32.mrb[99].mxu0 }
0x171c   :  { %v7233_v62 = vmax.f32 %v8257_v26, 0.0  ;;  %8123 = vmatprep.mubr.msk.bf16.mxu1 %vm611_vm10, %v7247_v42 }
0x171d   :  { %7377 = vmatmul.mubr.bf16.gmra.mrb[88].mxu1 %v7246_v9  ;;  %v7242_v60 = vmul.f32 %v7232_v11, %v10861_v13 }
0x171e   :  { %v7243_v3 = vmul.f32 %v7233_v62, %v10861_v13  ;;  %v7270_v13 = vld [vmem:[%s7420_s12 + $0x10] sm:$0xff] }
0x171f   :  { %v7248_v50 = vpack.c.bf16 %v7242_v60, %v7242_v60 }
0x1720   :  { %v7249_v53 = vpack.c.bf16 %v7243_v3, %v7243_v3 }
0x1722   :  { %8124 = vmatprep.mubr.msk.bf16.mxu1 %vm611_vm10, %v7249_v53 }
0x1725   :  { %7385 = vmatmul.mubr.bf16.gmra.mrb[92].mxu1 %v7248_v50 }
0x17e8   :  { %v7370_v22 = vpop.f32.mrb[84].mxu1 }
0x17e9   :  { %v7371_v2 = vadd.f32 %v7370_v22, %v7268_v59  ;;  %v7372_v43 = vpop.f32.mrb[85].mxu1 }
0x17ea   :  { %v7373_v29 = vpop.f32.mrb[86].mxu1 }
0x17eb   :  { %9220 = vtanh.f32 %v7371_v2  ;;  %v7374_v24 = vadd.f32 %v7373_v29, %v7269_v38  ;;  %v7375_v21 = vpop.f32.mrb[87].mxu1 }
0x17ed   :  { %9222 = vtanh.f32 %v7374_v24 }
0x17f0   :  { %v7378_v20 = vpop.f32.mrb[88].mxu1 }
0x17f1   :  { %v7379_v34 = vadd.f32 %v7378_v20, %v7270_v13  ;;  %v7380_v12 = vpop.f32.mrb[89].mxu1 }
0x17f2   :  { %v7381_v28 = vpop.f32.mrb[90].mxu1 }
0x17f3   :  { %9224 = vtanh.f32 %v7379_v34  ;;  %v7382_v30 = vadd.f32 %v7381_v28, %v7271_v23  ;;  %v7383_v5 = vpop.f32.mrb[91].mxu1 }
0x17f5   :  { %v9221_v32 = vpop.eup %9220  ;;  %9226 = vtanh.f32 %v7382_v30 }
0x17f6   :  { %7397 = vst [vmem:[%s7441_s17] sm:$0xff] %v9221_v32 }
0x17f7   :  { %v9223_v19 = vpop.eup %9222 }
0x17f8   :  { %7398 = vst [vmem:[%s7441_s17 + $0x8] sm:$0xff] %v9223_v19  ;;  %v7386_v37 = vpop.f32.mrb[92].mxu1 }
0x17f9   :  { %v7387_v31 = vadd.f32 %v7386_v37, %v7272_v10  ;;  %v7388_v1 = vpop.f32.mrb[93].mxu1 }
0x17fa   :  { %v7389_v33 = vpop.f32.mrb[94].mxu1 }
0x17fb   :  { %9228 = vtanh.f32 %v7387_v31  ;;  %v7390_v57 = vpop.f32.mrb[95].mxu1 }
0x17fd   :  { %v9225_v44 = vpop.eup %9224 }
0x17fe   :  { %7399 = vst [vmem:[%s7441_s17 + $0x10] sm:$0xff] %v9225_v44 }
0x17ff   :  { %v9227_v54 = vpop.eup %9226 }
0x1800   :  { %7400 = vst [vmem:[%s7441_s17 + $0x18] sm:$0xff] %v9227_v54 }
0x1805   :  { %v9229_v4 = vpop.eup %9228 }
0x1806   :  { %7401 = vst [vmem:[%s7441_s17 + $0x20] sm:$0xf] %v9229_v4 }

</bundles_post_ra>
